<compile_context>
chip_gen: v7x
topology: tpu7x:2x2x1
jax: 0.10.0
libtpu: 0.0.40
codegen_flags: <defaults>
</compile_context>

<pallas_src>
import jax
import jax.numpy as jnp
from jax.experimental import pallas as pl
from jax.experimental.pallas import tpu as pltpu

_BN_EPS = 1e-5
_LANE = 128
# MXU operand dtype (accumulation is always f32 via preferred_element_type).
_MATMUL_DTYPE = jnp.bfloat16


def _round_up(x, m):
    return ((x + m - 1) // m) * m


_VMEM_LIMIT = None


def _vmem_limit_bytes():
    """Per-generation VMEM limit: ~96 MiB on 128-MiB parts, 48 MiB on v7x."""
    global _VMEM_LIMIT
    if _VMEM_LIMIT is None:
        limit = 64 * 1024 * 1024
        try:
            cap = getattr(pltpu.get_tpu_info(), "vmem_capacity_bytes", None)
            if cap is not None:
                limit = (96 * 1024 * 1024 if cap >= 100 * 1024 * 1024
                         else 48 * 1024 * 1024)
        except Exception:
            pass
        _VMEM_LIMIT = limit
    return _VMEM_LIMIT


# --------------------------------------------------------------------------
# Pallas kernel: fused [BN(scale,shift) -> ReLU -> KxK conv (stride s, pad p)]
# with optional fused residual add.  One grid step == one batch image.
# The KxK conv is a direct conv: KH*KW accumulated MXU matmuls with K = Cp,
# read straight out of the padded-activation scratch (no im2col slab).
# --------------------------------------------------------------------------
def _make_bn_relu_conv_kernel(H, W, Cp, Coutp, KH, KW, stride, pad, has_res):
    Ho = (H + 2 * pad - KH) // stride + 1
    Wo = (W + 2 * pad - KW) // stride + 1
    Hp, Wp = H + 2 * pad, W + 2 * pad
    use_pad = (KH > 1) or (KW > 1) or (pad > 0)

    def kernel(*refs):
        x_ref, scale_ref, shift_ref, w_ref = refs[:4]
        i = 4
        res_ref = None
        if has_res:
            res_ref = refs[i]
            i += 1
        o_ref = refs[i]
        i += 1
        pad_ref = refs[i] if use_pad else None

        # ---- folded BN (x*scale + shift) + ReLU on the VPU, cast once ------
        x = x_ref[0]                                         # (H, W, Cp) f32
        a = jnp.maximum(x * scale_ref[...] + shift_ref[...], 0.0)
        a = a.astype(_MATMUL_DTYPE)

        if not use_pad:
            # 1x1 conv, pad 0 (stride handled in the wrapper): one MXU matmul.
            cols = a.reshape(H * W, Cp)
            out = jnp.dot(cols, w_ref[0], preferred_element_type=jnp.float32)
        else:
            # ---- zero only the 1-px halo of the padded scratch -------------
            if pad > 0:
                pad_ref[0:pad, :, :] = jnp.zeros((pad, Wp, Cp), pad_ref.dtype)
                pad_ref[pad + H:Hp, :, :] = jnp.zeros(
                    (Hp - pad - H, Wp, Cp), pad_ref.dtype)
                pad_ref[pad:pad + H, 0:pad, :] = jnp.zeros(
                    (H, pad, Cp), pad_ref.dtype)
                pad_ref[pad:pad + H, pad + W:Wp, :] = jnp.zeros(
                    (H, Wp - pad - W, Cp), pad_ref.dtype)
            pad_ref[pad:pad + H, pad:pad + W, :] = a

            # ---- direct conv: accumulate KH*KW matmuls (K=Cp) in f32 --------
            out = None
            for ky in range(KH):
                for kx in range(KW):
                    t = ky * KW + kx
                    if stride == 1:
                        win = pad_ref[ky:ky + Ho, kx:kx + Wo, :]
                    else:
                        win = pad_ref[pl.ds(ky, Ho, stride=stride),
                                      pl.ds(kx, Wo, stride=stride), :]
                    contrib = jnp.dot(win.reshape(Ho * Wo, Cp), w_ref[t],
                                      preferred_element_type=jnp.float32)
                    out = contrib if out is None else out + contrib

        out = out.reshape(1, Ho, Wo, Coutp)
        if has_res:
            out = out + res_ref[...]                         # fused residual
        o_ref[...] = out

    return kernel


def bn_relu_conv(x, scale, shift, w_slab, *, kernel_size, stride, pad,
                 residual=None):
    """x: (N, H, W, Cp) f32 with Cp a multiple of 128.
    scale/shift: (1, 1, Cp) f32 (folded BN).
    w_slab: (KH*KW, Cp, Coutp) bf16."""
    if kernel_size == 1 and pad == 0 and stride > 1:
        # 1x1 conv: BN/ReLU commute with spatial subsampling -> subsample in
        # the wrapper so the kernel only DMAs the pixels it actually uses.
        x = x[:, ::stride, ::stride, :]
        stride = 1

    N, H, W, Cp = x.shape
    KH = KW = kernel_size
    Coutp = w_slab.shape[-1]
    Ho = (H + 2 * pad - KH) // stride + 1
    Wo = (W + 2 * pad - KW) // stride + 1
    has_res = residual is not None
    use_pad = (KH > 1) or (KW > 1) or (pad > 0)

    kernel = _make_bn_relu_conv_kernel(H, W, Cp, Coutp, KH, KW, stride, pad,
                                       has_res)

    in_specs = [
        pl.BlockSpec((1, H, W, Cp), lambda n: (n, 0, 0, 0)),
        pl.BlockSpec((1, 1, Cp), lambda n: (0, 0, 0)),
        pl.BlockSpec((1, 1, Cp), lambda n: (0, 0, 0)),
        pl.BlockSpec(w_slab.shape, lambda n: (0, 0, 0)),
    ]
    args = [x, scale, shift, w_slab]
    if has_res:
        in_specs.append(pl.BlockSpec((1, Ho, Wo, Coutp),
                                     lambda n: (n, 0, 0, 0)))
        args.append(residual)

    scratch_shapes = []
    if use_pad:
        scratch_shapes = [
            pltpu.VMEM((H + 2 * pad, W + 2 * pad, Cp), _MATMUL_DTYPE),
        ]

    return pl.pallas_call(
        kernel,
        out_shape=jax.ShapeDtypeStruct((N, Ho, Wo, Coutp), jnp.float32),
        grid_spec=pltpu.PrefetchScalarGridSpec(
            num_scalar_prefetch=0,
            grid=(N,),
            in_specs=in_specs,
            out_specs=pl.BlockSpec((1, Ho, Wo, Coutp),
                                   lambda n: (n, 0, 0, 0)),
            scratch_shapes=scratch_shapes),
        compiler_params=pltpu.CompilerParams(
            # batch axis sharded across the 2 TensorCores on v7x; harmless on
            # single-TC v5e/v6e.
            dimension_semantics=("parallel",),
            vmem_limit_bytes=_vmem_limit_bytes()),
    )(*args)


# --------------------------------------------------------------------------
# Parameter prep: fold BN, pad channels to 128 lanes, pack conv weight slab.
# --------------------------------------------------------------------------
def _fold_bn_params(p, c_pad):
    scale = p["gamma"] * jax.lax.rsqrt(p["var"] + _BN_EPS)
    shift = p["beta"] - p["mean"] * scale
    c = scale.shape[0]
    scale = jnp.pad(scale, (0, c_pad - c)).reshape(1, 1, c_pad)
    shift = jnp.pad(shift, (0, c_pad - c)).reshape(1, 1, c_pad)
    return scale.astype(jnp.float32), shift.astype(jnp.float32)


def _pack_weight(w, cin_pad, cout_pad):
    KH, KW, cin, cout = w.shape
    w = jnp.pad(w, ((0, 0), (0, 0), (0, cin_pad - cin), (0, cout_pad - cout)))
    # (KH, KW, Cp, Coutp) -> (KH*KW, Cp, Coutp); per-tap (Cp, Coutp) slabs.
    return w.reshape(KH * KW, cin_pad, cout_pad).astype(_MATMUL_DTYPE)


# --------------------------------------------------------------------------
# Parameter init (deterministic, shapes follow the PyTorch __init__)
# --------------------------------------------------------------------------
def init_basic_block(key, c_in, c_out, l=2, is_downsample=False):
    assert l >= 2, "error"
    identity_flag = True if (is_downsample or c_in != c_out) else False
    stride = 2 if is_downsample else 1

    def bn_conv_params(k, c_x, c_o, ksize):
        kg, kb, km, kv, kw = jax.random.split(k, 5)
        return {
            "gamma": jax.random.normal(kg, (c_x,), jnp.float32) * 0.1 + 1.0,
            "beta":  jax.random.normal(kb, (c_x,), jnp.float32) * 0.1,
            "mean":  jax.random.normal(km, (c_x,), jnp.float32) * 0.1,
            "var":   jax.random.uniform(kv, (c_x,), jnp.float32, 0.5, 1.5),
            # stored as (KH, KW, Cin, Cout) == transposed PyTorch (Cout,Cin,KH,KW)
            "w":     jax.random.normal(kw, (ksize, ksize, c_x, c_o), jnp.float32)
                     * (1.0 / float(ksize * ksize * c_x) ** 0.5),
        }

    keys = jax.random.split(key, l + 1)
    params = {"l": l, "identity_flag": identity_flag, "stride": stride,
              "convs": [], "identity": None}
    for i in range(1, l + 1):
        c_x = c_in if i == 1 else c_out
        params["convs"].append(bn_conv_params(keys[i - 1], c_x, c_out, 3))
    if identity_flag:
        params["identity"] = bn_conv_params(keys[l], c_in, c_out, 1)
    return params


# --------------------------------------------------------------------------
# Forward pass (mirrors BasicBlock.forward)
# --------------------------------------------------------------------------
def basic_block_forward(params, x_nchw):
    x = jnp.transpose(x_nchw, (0, 2, 3, 1)).astype(jnp.float32)  # NCHW -> NHWC
    N, H, W, c_in = x.shape
    c_out = params["convs"][0]["w"].shape[-1]
    stride = params["stride"]
    cp_in = _round_up(c_in, _LANE)
    cp_out = _round_up(c_out, _LANE)

    # channel pad once at block entry (lane-dense layout for every kernel)
    xp = jnp.pad(x, ((0, 0), (0, 0), (0, 0), (0, cp_in - c_in)))

    # conv1: BN(c_in) -> ReLU -> 3x3 conv, stride `stride`
    p = params["convs"][0]
    scale, shift = _fold_bn_params(p, cp_in)
    w = _pack_weight(p["w"], cp_in, cp_out)
    y = bn_relu_conv(xp, scale, shift, w, kernel_size=3, stride=stride, pad=1)

    # conv2..convl: BN(c_out) -> ReLU -> 3x3 conv, stride 1.
    # In the non-identity case the residual add is fused into the last conv.
    for i in range(1, params["l"]):
        p = params["convs"][i]
        scale, shift = _fold_bn_params(p, cp_out)
        w = _pack_weight(p["w"], cp_out, cp_out)
        is_last = (i == params["l"] - 1)
        res = xp if (is_last and not params["identity_flag"]) else None
        y = bn_relu_conv(y, scale, shift, w, kernel_size=3, stride=1, pad=1,
                         residual=res)

    if params["identity_flag"]:
        # identity branch (BN->ReLU->1x1 conv) with residual add fused in-kernel
        p = params["identity"]
        scale, shift = _fold_bn_params(p, cp_in)
        w = _pack_weight(p["w"], cp_in, cp_out)
        out = bn_relu_conv(xp, scale, shift, w, kernel_size=1, stride=stride,
                           pad=0, residual=y)
    else:
        out = y  # residual already fused into the last conv kernel

    out = out[..., :c_out]                                     # drop lane pad
    return jnp.transpose(out, (0, 3, 1, 2))                    # NHWC -> NCHW


# --------------------------------------------------------------------------
# Pure-JAX reference (for correctness check; full f32)
# --------------------------------------------------------------------------
def _ref_bn_relu_conv(x, p, stride, pad):
    inv = jax.lax.rsqrt(p["var"] + _BN_EPS)
    a = jnp.maximum((x - p["mean"]) * (p["gamma"] * inv) + p["beta"], 0.0)
    return jax.lax.conv_general_dilated(
        a, p["w"], window_strides=(stride, stride),
        padding=[(pad, pad), (pad, pad)],
        dimension_numbers=("NHWC", "HWIO", "NHWC"))


def _ref_forward(params, x_nchw):
    x = jnp.transpose(x_nchw, (0, 2, 3, 1)).astype(jnp.float32)
    stride = params["stride"]
    y = _ref_bn_relu_conv(x, params["convs"][0], stride, 1)
    for i in range(1, params["l"]):
        y = _ref_bn_relu_conv(y, params["convs"][i], 1, 1)
    if params["identity_flag"]:
        x = _ref_bn_relu_conv(x, params["identity"], stride, 0)
    return jnp.transpose(x + y, (0, 3, 1, 2))


if __name__ == "__main__":
    key = jax.random.PRNGKey(0)
    kx, kp = jax.random.split(key)

    N, C_IN, C_OUT, H, W = 2, 4, 8, 16, 16   # c_in != c_out -> identity branch
    x = jax.random.normal(kx, (N, C_IN, H, W), jnp.float32)
    params = init_basic_block(kp, C_IN, C_OUT, l=2, is_downsample=False)

    out = jax.block_until_ready(basic_block_forward(params, x))
    ref = jax.block_until_ready(_ref_forward(params, x))

    assert out.shape == (N, C_OUT, H, W), out.shape
    # bf16 MXU operands (f32 accumulation) vs f32 reference -> relaxed tol.
    max_err = float(jnp.max(jnp.abs(out - ref)))
    assert jnp.allclose(out, ref, atol=5e-2, rtol=5e-2), max_err
    print("KERNEL_OK")
</pallas_src>

<mosaic_0001>
module attributes {stable_mosaic.version = 11 : i64} {
  func.func @kernel(%arg0: i32, %arg1: memref<1x16x16x128xf32, #tpu.memory_space<vmem>>, %arg2: memref<1x1x128xf32, #tpu.memory_space<vmem>>, %arg3: memref<1x1x128xf32, #tpu.memory_space<vmem>>, %arg4: memref<9x128x128xbf16, #tpu.memory_space<vmem>>, %arg5: memref<1x16x16x128xf32, #tpu.memory_space<vmem>>, %arg6: memref<18x18x128xbf16, #tpu.memory_space<vmem>>) attributes {dimension_semantics = [#tpu.dimension_semantics<parallel>], iteration_bounds = array<i64: 2>, scalar_prefetch = 0 : i64, scratch_operands = 1 : i64, tpu.core_type = #tpu.core_type<tc>, window_params = [{transform_indices = @transform_0, window_bounds = array<i64: 1, 16, 16, 128>}, {pipeline_mode = #tpu.pipeline_mode<synchronous>, transform_indices = @transform_1, window_bounds = array<i64: 1, 1, 128>}, {pipeline_mode = #tpu.pipeline_mode<synchronous>, transform_indices = @transform_2, window_bounds = array<i64: 1, 1, 128>}, {pipeline_mode = #tpu.pipeline_mode<synchronous>, transform_indices = @transform_3, window_bounds = array<i64: 9, 128, 128>}, {transform_indices = @transform_4, window_bounds = array<i64: 1, 16, 16, 128>}]} {
    %c0 = arith.constant 0 : index
    %c0_0 = arith.constant 0 : index
    %c0_1 = arith.constant 0 : index
    %c0_2 = arith.constant 0 : index
    %0 = vector.load %arg1[%c0, %c0_0, %c0_1, %c0_2] : memref<1x16x16x128xf32, #tpu.memory_space<vmem>>, vector<1x16x16x128xf32>
    %1 = vector.shape_cast %0 : vector<1x16x16x128xf32> to vector<16x16x128xf32>
    %c0_3 = arith.constant 0 : index
    %c0_4 = arith.constant 0 : index
    %c0_5 = arith.constant 0 : index
    %2 = vector.load %arg2[%c0_3, %c0_4, %c0_5] : memref<1x1x128xf32, #tpu.memory_space<vmem>>, vector<1x1x128xf32>
    %3 = vector.broadcast %2 : vector<1x1x128xf32> to vector<16x16x128xf32>
    %4 = arith.mulf %1, %3 : vector<16x16x128xf32>
    %c0_6 = arith.constant 0 : index
    %c0_7 = arith.constant 0 : index
    %c0_8 = arith.constant 0 : index
    %5 = vector.load %arg3[%c0_6, %c0_7, %c0_8] : memref<1x1x128xf32, #tpu.memory_space<vmem>>, vector<1x1x128xf32>
    %6 = vector.broadcast %5 : vector<1x1x128xf32> to vector<16x16x128xf32>
    %7 = arith.addf %4, %6 : vector<16x16x128xf32>
    %cst = arith.constant 0.000000e+00 : f32
    %8 = vector.broadcast %cst : f32 to vector<16x16x128xf32>
    %9 = arith.maximumf %7, %8 : vector<16x16x128xf32>
    %10 = arith.truncf %9 : vector<16x16x128xf32> to vector<16x16x128xbf16>
    %cst_9 = arith.constant 0.000000e+00 : bf16
    %11 = vector.broadcast %cst_9 : bf16 to vector<1x18x128xbf16>
    %c0_10 = arith.constant 0 : index
    %c0_11 = arith.constant 0 : index
    %c0_12 = arith.constant 0 : index
    %12 = vector.load %arg6[%c0_10, %c0_11, %c0_12] : memref<18x18x128xbf16, #tpu.memory_space<vmem>>, vector<1x18x128xbf16>
    tpu.vector_store %arg6[%c0_10, %c0_11, %c0_12], %11 {strides = array<i32>} : memref<18x18x128xbf16, #tpu.memory_space<vmem>>, vector<1x18x128xbf16>,
    %cst_13 = arith.constant 0.000000e+00 : bf16
    %13 = vector.broadcast %cst_13 : bf16 to vector<1x18x128xbf16>
    %c17 = arith.constant 17 : index
    %c0_14 = arith.constant 0 : index
    %c0_15 = arith.constant 0 : index
    %14 = vector.load %arg6[%c17, %c0_14, %c0_15] : memref<18x18x128xbf16, #tpu.memory_space<vmem>>, vector<1x18x128xbf16>
    tpu.vector_store %arg6[%c17, %c0_14, %c0_15], %13 {strides = array<i32>} : memref<18x18x128xbf16, #tpu.memory_space<vmem>>, vector<1x18x128xbf16>,
    %cst_16 = arith.constant 0.000000e+00 : bf16
    %15 = vector.broadcast %cst_16 : bf16 to vector<16x1x128xbf16>
    %c1 = arith.constant 1 : index
    %c0_17 = arith.constant 0 : index
    %c0_18 = arith.constant 0 : index
    %16 = vector.load %arg6[%c1, %c0_17, %c0_18] : memref<18x18x128xbf16, #tpu.memory_space<vmem>>, vector<16x1x128xbf16>
    tpu.vector_store %arg6[%c1, %c0_17, %c0_18], %15 {strides = array<i32>} : memref<18x18x128xbf16, #tpu.memory_space<vmem>>, vector<16x1x128xbf16>,
    %cst_19 = arith.constant 0.000000e+00 : bf16
    %17 = vector.broadcast %cst_19 : bf16 to vector<16x1x128xbf16>
    %c1_20 = arith.constant 1 : index
    %c17_21 = arith.constant 17 : index
    %c0_22 = arith.constant 0 : index
    %18 = vector.load %arg6[%c1_20, %c17_21, %c0_22] : memref<18x18x128xbf16, #tpu.memory_space<vmem>>, vector<16x1x128xbf16>
    tpu.vector_store %arg6[%c1_20, %c17_21, %c0_22], %17 {strides = array<i32>} : memref<18x18x128xbf16, #tpu.memory_space<vmem>>, vector<16x1x128xbf16>,
    %c1_23 = arith.constant 1 : index
    %c1_24 = arith.constant 1 : index
    %c0_25 = arith.constant 0 : index
    %19 = vector.load %arg6[%c1_23, %c1_24, %c0_25] : memref<18x18x128xbf16, #tpu.memory_space<vmem>>, vector<16x16x128xbf16>
    tpu.vector_store %arg6[%c1_23, %c1_24, %c0_25], %10 {strides = array<i32>} : memref<18x18x128xbf16, #tpu.memory_space<vmem>>, vector<16x16x128xbf16>,
    %c0_26 = arith.constant 0 : index
    %c0_27 = arith.constant 0 : index
    %c0_28 = arith.constant 0 : index
    %20 = vector.load %arg6[%c0_26, %c0_27, %c0_28] : memref<18x18x128xbf16, #tpu.memory_space<vmem>>, vector<16x16x128xbf16>
    %21 = vector.shape_cast %20 : vector<16x16x128xbf16> to vector<256x128xbf16>
    %c0_29 = arith.constant 0 : index
    %c0_30 = arith.constant 0 : index
    %c0_31 = arith.constant 0 : index
    %22 = vector.load %arg4[%c0_29, %c0_30, %c0_31] : memref<9x128x128xbf16, #tpu.memory_space<vmem>>, vector<1x128x128xbf16>
    %23 = vector.shape_cast %22 : vector<1x128x128xbf16> to vector<128x128xbf16>
    %cst_32 = arith.constant dense<0.000000e+00> : vector<256x128xf32>
    %24 = tpu.matmul %21, %23, %cst_32 {dimension_numbers = #tpu.dot_dimension_numbers<[1], [0], [0], [1], [0, 0, 1, 1], [], []>} : vector<256x128xbf16>, vector<128x128xbf16>, vector<256x128xf32> -> vector<256x128xf32>
    %c0_33 = arith.constant 0 : index
    %c1_34 = arith.constant 1 : index
    %c0_35 = arith.constant 0 : index
    %25 = vector.load %arg6[%c0_33, %c1_34, %c0_35] : memref<18x18x128xbf16, #tpu.memory_space<vmem>>, vector<16x16x128xbf16>
    %26 = vector.shape_cast %25 : vector<16x16x128xbf16> to vector<256x128xbf16>
    %c1_36 = arith.constant 1 : index
    %c0_37 = arith.constant 0 : index
    %c0_38 = arith.constant 0 : index
    %27 = vector.load %arg4[%c1_36, %c0_37, %c0_38] : memref<9x128x128xbf16, #tpu.memory_space<vmem>>, vector<1x128x128xbf16>
    %28 = vector.shape_cast %27 : vector<1x128x128xbf16> to vector<128x128xbf16>
    %cst_39 = arith.constant dense<0.000000e+00> : vector<256x128xf32>
    %29 = tpu.matmul %26, %28, %cst_39 {dimension_numbers = #tpu.dot_dimension_numbers<[1], [0], [0], [1], [0, 0, 1, 1], [], []>} : vector<256x128xbf16>, vector<128x128xbf16>, vector<256x128xf32> -> vector<256x128xf32>
    %30 = arith.addf %24, %29 : vector<256x128xf32>
    %c0_40 = arith.constant 0 : index
    %c2 = arith.constant 2 : index
    %c0_41 = arith.constant 0 : index
    %31 = vector.load %arg6[%c0_40, %c2, %c0_41] : memref<18x18x128xbf16, #tpu.memory_space<vmem>>, vector<16x16x128xbf16>
    %32 = vector.shape_cast %31 : vector<16x16x128xbf16> to vector<256x128xbf16>
    %c2_42 = arith.constant 2 : index
    %c0_43 = arith.constant 0 : index
    %c0_44 = arith.constant 0 : index
    %33 = vector.load %arg4[%c2_42, %c0_43, %c0_44] : memref<9x128x128xbf16, #tpu.memory_space<vmem>>, vector<1x128x128xbf16>
    %34 = vector.shape_cast %33 : vector<1x128x128xbf16> to vector<128x128xbf16>
    %cst_45 = arith.constant dense<0.000000e+00> : vector<256x128xf32>
    %35 = tpu.matmul %32, %34, %cst_45 {dimension_numbers = #tpu.dot_dimension_numbers<[1], [0], [0], [1], [0, 0, 1, 1], [], []>} : vector<256x128xbf16>, vector<128x128xbf16>, vector<256x128xf32> -> vector<256x128xf32>
    %36 = arith.addf %30, %35 : vector<256x128xf32>
    %c1_46 = arith.constant 1 : index
    %c0_47 = arith.constant 0 : index
    %c0_48 = arith.constant 0 : index
    %37 = vector.load %arg6[%c1_46, %c0_47, %c0_48] : memref<18x18x128xbf16, #tpu.memory_space<vmem>>, vector<16x16x128xbf16>
    %38 = vector.shape_cast %37 : vector<16x16x128xbf16> to vector<256x128xbf16>
    %c3 = arith.constant 3 : index
    %c0_49 = arith.constant 0 : index
    %c0_50 = arith.constant 0 : index
    %39 = vector.load %arg4[%c3, %c0_49, %c0_50] : memref<9x128x128xbf16, #tpu.memory_space<vmem>>, vector<1x128x128xbf16>
    %40 = vector.shape_cast %39 : vector<1x128x128xbf16> to vector<128x128xbf16>
    %cst_51 = arith.constant dense<0.000000e+00> : vector<256x128xf32>
    %41 = tpu.matmul %38, %40, %cst_51 {dimension_numbers = #tpu.dot_dimension_numbers<[1], [0], [0], [1], [0, 0, 1, 1], [], []>} : vector<256x128xbf16>, vector<128x128xbf16>, vector<256x128xf32> -> vector<256x128xf32>
    %42 = arith.addf %36, %41 : vector<256x128xf32>
    %c1_52 = arith.constant 1 : index
    %c1_53 = arith.constant 1 : index
    %c0_54 = arith.constant 0 : index
    %43 = vector.load %arg6[%c1_52, %c1_53, %c0_54] : memref<18x18x128xbf16, #tpu.memory_space<vmem>>, vector<16x16x128xbf16>
    %44 = vector.shape_cast %43 : vector<16x16x128xbf16> to vector<256x128xbf16>
    %c4 = arith.constant 4 : index
    %c0_55 = arith.constant 0 : index
    %c0_56 = arith.constant 0 : index
    %45 = vector.load %arg4[%c4, %c0_55, %c0_56] : memref<9x128x128xbf16, #tpu.memory_space<vmem>>, vector<1x128x128xbf16>
    %46 = vector.shape_cast %45 : vector<1x128x128xbf16> to vector<128x128xbf16>
    %cst_57 = arith.constant dense<0.000000e+00> : vector<256x128xf32>
    %47 = tpu.matmul %44, %46, %cst_57 {dimension_numbers = #tpu.dot_dimension_numbers<[1], [0], [0], [1], [0, 0, 1, 1], [], []>} : vector<256x128xbf16>, vector<128x128xbf16>, vector<256x128xf32> -> vector<256x128xf32>
    %48 = arith.addf %42, %47 : vector<256x128xf32>
    %c1_58 = arith.constant 1 : index
    %c2_59 = arith.constant 2 : index
    %c0_60 = arith.constant 0 : index
    %49 = vector.load %arg6[%c1_58, %c2_59, %c0_60] : memref<18x18x128xbf16, #tpu.memory_space<vmem>>, vector<16x16x128xbf16>
    %50 = vector.shape_cast %49 : vector<16x16x128xbf16> to vector<256x128xbf16>
    %c5 = arith.constant 5 : index
    %c0_61 = arith.constant 0 : index
    %c0_62 = arith.constant 0 : index
    %51 = vector.load %arg4[%c5, %c0_61, %c0_62] : memref<9x128x128xbf16, #tpu.memory_space<vmem>>, vector<1x128x128xbf16>
    %52 = vector.shape_cast %51 : vector<1x128x128xbf16> to vector<128x128xbf16>
    %cst_63 = arith.constant dense<0.000000e+00> : vector<256x128xf32>
    %53 = tpu.matmul %50, %52, %cst_63 {dimension_numbers = #tpu.dot_dimension_numbers<[1], [0], [0], [1], [0, 0, 1, 1], [], []>} : vector<256x128xbf16>, vector<128x128xbf16>, vector<256x128xf32> -> vector<256x128xf32>
    %54 = arith.addf %48, %53 : vector<256x128xf32>
    %c2_64 = arith.constant 2 : index
    %c0_65 = arith.constant 0 : index
    %c0_66 = arith.constant 0 : index
    %55 = vector.load %arg6[%c2_64, %c0_65, %c0_66] : memref<18x18x128xbf16, #tpu.memory_space<vmem>>, vector<16x16x128xbf16>
    %56 = vector.shape_cast %55 : vector<16x16x128xbf16> to vector<256x128xbf16>
    %c6 = arith.constant 6 : index
    %c0_67 = arith.constant 0 : index
    %c0_68 = arith.constant 0 : index
    %57 = vector.load %arg4[%c6, %c0_67, %c0_68] : memref<9x128x128xbf16, #tpu.memory_space<vmem>>, vector<1x128x128xbf16>
    %58 = vector.shape_cast %57 : vector<1x128x128xbf16> to vector<128x128xbf16>
    %cst_69 = arith.constant dense<0.000000e+00> : vector<256x128xf32>
    %59 = tpu.matmul %56, %58, %cst_69 {dimension_numbers = #tpu.dot_dimension_numbers<[1], [0], [0], [1], [0, 0, 1, 1], [], []>} : vector<256x128xbf16>, vector<128x128xbf16>, vector<256x128xf32> -> vector<256x128xf32>
    %60 = arith.addf %54, %59 : vector<256x128xf32>
    %c2_70 = arith.constant 2 : index
    %c1_71 = arith.constant 1 : index
    %c0_72 = arith.constant 0 : index
    %61 = vector.load %arg6[%c2_70, %c1_71, %c0_72] : memref<18x18x128xbf16, #tpu.memory_space<vmem>>, vector<16x16x128xbf16>
    %62 = vector.shape_cast %61 : vector<16x16x128xbf16> to vector<256x128xbf16>
    %c7 = arith.constant 7 : index
    %c0_73 = arith.constant 0 : index
    %c0_74 = arith.constant 0 : index
    %63 = vector.load %arg4[%c7, %c0_73, %c0_74] : memref<9x128x128xbf16, #tpu.memory_space<vmem>>, vector<1x128x128xbf16>
    %64 = vector.shape_cast %63 : vector<1x128x128xbf16> to vector<128x128xbf16>
    %cst_75 = arith.constant dense<0.000000e+00> : vector<256x128xf32>
    %65 = tpu.matmul %62, %64, %cst_75 {dimension_numbers = #tpu.dot_dimension_numbers<[1], [0], [0], [1], [0, 0, 1, 1], [], []>} : vector<256x128xbf16>, vector<128x128xbf16>, vector<256x128xf32> -> vector<256x128xf32>
    %66 = arith.addf %60, %65 : vector<256x128xf32>
    %c2_76 = arith.constant 2 : index
    %c2_77 = arith.constant 2 : index
    %c0_78 = arith.constant 0 : index
    %67 = vector.load %arg6[%c2_76, %c2_77, %c0_78] : memref<18x18x128xbf16, #tpu.memory_space<vmem>>, vector<16x16x128xbf16>
    %68 = vector.shape_cast %67 : vector<16x16x128xbf16> to vector<256x128xbf16>
    %c8 = arith.constant 8 : index
    %c0_79 = arith.constant 0 : index
    %c0_80 = arith.constant 0 : index
    %69 = vector.load %arg4[%c8, %c0_79, %c0_80] : memref<9x128x128xbf16, #tpu.memory_space<vmem>>, vector<1x128x128xbf16>
    %70 = vector.shape_cast %69 : vector<1x128x128xbf16> to vector<128x128xbf16>
    %cst_81 = arith.constant dense<0.000000e+00> : vector<256x128xf32>
    %71 = tpu.matmul %68, %70, %cst_81 {dimension_numbers = #tpu.dot_dimension_numbers<[1], [0], [0], [1], [0, 0, 1, 1], [], []>} : vector<256x128xbf16>, vector<128x128xbf16>, vector<256x128xf32> -> vector<256x128xf32>
    %72 = arith.addf %66, %71 : vector<256x128xf32>
    %73 = vector.shape_cast %72 : vector<256x128xf32> to vector<1x16x16x128xf32>
    %c0_82 = arith.constant 0 : index
    %c0_83 = arith.constant 0 : index
    %c0_84 = arith.constant 0 : index
    %c0_85 = arith.constant 0 : index
    %74 = vector.load %arg5[%c0_82, %c0_83, %c0_84, %c0_85] : memref<1x16x16x128xf32, #tpu.memory_space<vmem>>, vector<1x16x16x128xf32>
    tpu.vector_store %arg5[%c0_82, %c0_83, %c0_84, %c0_85], %73 {strides = array<i32>} : memref<1x16x16x128xf32, #tpu.memory_space<vmem>>, vector<1x16x16x128xf32>,
    return
  }
  func.func @transform_0(%arg0: i32) -> (i32, i32, i32, i32) {
    %c0_i32 = arith.constant 0 : i32
    %c0_i32_0 = arith.constant 0 : i32
    %c0_i32_1 = arith.constant 0 : i32
    %c0_i32_2 = arith.constant 0 : i32
    return %arg0, %c0_i32, %c0_i32_0, %c0_i32_1 : i32, i32, i32, i32
  }
  func.func @transform_1(%arg0: i32) -> (i32, i32, i32) {
    %c0_i32 = arith.constant 0 : i32
    %c0_i32_0 = arith.constant 0 : i32
    %c0_i32_1 = arith.constant 0 : i32
    %c0_i32_2 = arith.constant 0 : i32
    return %c0_i32, %c0_i32_0, %c0_i32_1 : i32, i32, i32
  }
  func.func @transform_2(%arg0: i32) -> (i32, i32, i32) {
    %c0_i32 = arith.constant 0 : i32
    %c0_i32_0 = arith.constant 0 : i32
    %c0_i32_1 = arith.constant 0 : i32
    %c0_i32_2 = arith.constant 0 : i32
    return %c0_i32, %c0_i32_0, %c0_i32_1 : i32, i32, i32
  }
  func.func @transform_3(%arg0: i32) -> (i32, i32, i32) {
    %c0_i32 = arith.constant 0 : i32
    %c0_i32_0 = arith.constant 0 : i32
    %c0_i32_1 = arith.constant 0 : i32
    %c0_i32_2 = arith.constant 0 : i32
    return %c0_i32, %c0_i32_0, %c0_i32_1 : i32, i32, i32
  }
  func.func @transform_4(%arg0: i32) -> (i32, i32, i32, i32) {
    %c0_i32 = arith.constant 0 : i32
    %c0_i32_0 = arith.constant 0 : i32
    %c0_i32_1 = arith.constant 0 : i32
    %c0_i32_2 = arith.constant 0 : i32
    return %arg0, %c0_i32, %c0_i32_0, %c0_i32_1 : i32, i32, i32, i32
  }
}

</mosaic_0001>

<bundles_post_ra>
// kernel: tpu_custom_call.1
= control target key start
LH: loop header
LB: loop body
LE: loop exit
PB: predicated region body
PF: predicated region fallthrough
CT: control target
= control target key end

     0   :  { %9 = vsyncpa [#allocation4], 0  ;;  %s9628_s0 = inlined_call_operand.hbm [shape: f32[2,16,16,128], index: 0, kind: input, shape index: {}]   ;;  %s9629_s1 = inlined_call_operand.hbm [shape: f32[1,1,128], index: 1, kind: input, shape index: {}]   ;;  %s9630_s2 = inlined_call_operand.hbm [shape: f32[1,1,128], index: 2, kind: input, shape index: {}]   ;;  %s9631_s3 = inlined_call_operand.hbm [shape: bf16[9,128,128], index: 3, kind: input, shape index: {}]   ;;  %s9632_s4 = inlined_call_operand.hbm [shape: f32[2,16,16,128], index: 4, kind: output, shape index: {}]  }
   0x1   :  { %11 = vsyncpa [#allocation4 + $0x1], 0 }
   0x2   :  { %12 = vsyncpa [#allocation7], 0 }
   0x3   :  { %13 = vsyncpa [#allocation10], 0 }
   0x4   :  { %14 = vsyncpa [#allocation5], 0 }
   0x5   :  { %16 = vsyncpa [#allocation5 + $0x1], 0  ;;  %s7785_s15 = smov 0   ;;  %s7787_s16 = smov 0  }
   0x6   :  { %s7789_s17 = smov 0   ;;  %s7791_s18 = smov 0  }
   0x7 LB: > { %s7806_s19 = sadd.s32 4294967295, %s7746_s18   ;;  %s5996_s20 = sadd.s32 4294967294, %s7746_s18   ;;  %s7746_s18 = sphi %s7791_s18, %s9728_s18   ;;  %s7742_s17 = sphi %s7789_s17, %s9727_s17   ;;  %s7738_s16 = sphi %s7787_s16, %s9726_s16   ;;  %s7734_s15 = sphi %s7785_s15, %s9725_s15  }
   0x8   : > { %p42_p0 = scmp.ne.s32.totalorder %s7738_s16, %s7734_s15  ;;  %p9633_p1 = scmp.eq.s32.totalorder %s7806_s19, 0 }
   0x9   : > { %p135_p3 = scmp.eq.s32.totalorder %s5996_s20, 1  ;;  %p5997_p5 = scmp.ge.s32.totalorder %s7746_s18, 1 }
   0xa   : > { %p7815_p4 = por %p9633_p1, %p42_p0  ;;  %p142_p7 = scmp.lt.s32.totalorder %s7746_s18, 3 }
   0xb   : > { %p7820_p6 = por %p135_p3, %p42_p0  ;;  %s7748_s24 = smov [#allocation6]  }
   0xc   : > { %s9648_s21 = scalar_select %p7815_p4, 1, 0 }
   0xd   : > { %s9649_s22 = scalar_select %p7820_p6, 1, 0 }
   0xe   : > { %p7825_p8 = pnand %p5997_p5, %p142_p7  ;;  %s155_s25 = sshll.u32 %s7748_s24, 4  ;;  %s156_s25 = int_to_ptr.vmem [resolvable:$true] %s155_s25 }
   0xf   : > { %s7749_s26 = smov [#allocation8]   ;;  %s7750_s29 = smov [#allocation9]  }
  0x10   : > { %s9650_s23 = scalar_select %p7825_p8, 1, 0 }
  0x11   : > { %p7284_p10 = pneg %p7825_p8  ;;  %s166_s27 = sshll.u32 %s7749_s26, 4  ;;  %s7838_s27 = int_to_ptr.vmem [resolvable:$true] %s166_s27 }
  0x12   : > { %s176_s30 = sshll.u32 %s7750_s29, 4  ;;  %s7558_s7 = scalar_lea.hbm %s9629_s1, 16  ;;  %s7840_s30 = int_to_ptr.vmem [resolvable:$true] %s176_s30 }
  0x13   : > { %p7834_p11 = pnand %p7284_p10, %p9633_p1  ;;  %p7559_p12 = scmp.ne.s32.totalorder %s9629_s1, %s7558_s7 }
  0x14   : > { %p7565_p5 = scmp.lt.u32.totalorder %s7558_s7, %s9629_s1 }
  0x15   : > { %p7850_p13 = pneg %p7834_p11 }
  0x17   : > { %p7561_p0 = pnand %p7850_p13, %p7559_p12 }
  0x19   : > { %p7562_p3 = pneg %p7561_p0 }
  0x1b   : > { %p7567_p7 = pnand %p7565_p5, %p7562_p3 }
  0x1d   : > { %7570 = shalt.err (!%p7567_p7)
}
  0x1e   : > { %s7571_s13 = scalar_lea.vmem %s156_s25, 16  ;;  %s7578_s14 = scalar_lea.vmem %s156_s25, 32 }
  0x1f   : > { %p7572_p10 = scmp.ne.s32.totalorder %s156_s25, %s7571_s13  ;;  %p7579_p2 = scmp.lt.s32.totalorder %s156_s25, %s156_s25 }
  0x20   : > { %p7580_p6 = scmp.lt.s32.totalorder %s7578_s14, %s7571_s13 }
  0x21   : > { %p7574_p9 = pnand %p7572_p10, %p7850_p13 }
  0x22   : > { %p7581_p4 = por %p7580_p6, %p7579_p2 }
  0x23   : > { %p7575_p1 = pneg %p7574_p9 }
  0x25   : > { %p7582_p8 = pnand %p7581_p4, %p7575_p1 }
  0x27   : > { %7585 = shalt.err (!%p7582_p8)
}
  0x28   : > { %7287 = dma.hbm_to_vmem [thread:$0]  (!%p7834_p11), %s9629_s1, 16, %s156_s25, [#allocation7]  }
  0x29   : > { %s7586_s5 = scalar_lea.hbm %s9630_s2, 16 }
  0x2a   : > { %p7587_p9 = scmp.ne.s32.totalorder %s9630_s2, %s7586_s5  ;;  %p7593_p1 = scmp.lt.u32.totalorder %s7586_s5, %s9630_s2 }
  0x2c   : > { %p7589_p12 = pnand %p7587_p9, %p7850_p13 }
  0x2e   : > { %p7590_p2 = pneg %p7589_p12 }
  0x30   : > { %p7595_p4 = pnand %p7593_p1, %p7590_p2 }
  0x32   : > { %7598 = shalt.err (!%p7595_p4)
}
  0x33   : > { %s7599_s25 = scalar_lea.vmem %s7838_s27, 16  ;;  %s7606_s11 = scalar_lea.vmem %s7838_s27, 32 }
  0x34   : > { %p7600_p6 = scmp.ne.s32.totalorder %s7838_s27, %s7599_s25  ;;  %p7607_p3 = scmp.lt.s32.totalorder %s7838_s27, %s7838_s27 }
  0x35   : > { %p7608_p5 = scmp.lt.s32.totalorder %s7606_s11, %s7599_s25 }
  0x36   : > { %p7602_p8 = pnand %p7600_p6, %p7850_p13 }
  0x37   : > { %p7609_p7 = por %p7608_p5, %p7607_p3 }
  0x38   : > { %p7603_p0 = pneg %p7602_p8 }
  0x3a   : > { %p7610_p10 = pnand %p7609_p7, %p7603_p0 }
  0x3c   : > { %7613 = shalt.err (!%p7610_p10)
}
  0x3d   : > { %7290 = dma.hbm_to_vmem [thread:$0]  (!%p7834_p11), %s9630_s2, 16, %s7838_s27, [#allocation7]  }
  0x3e   : > { %s7614_s24 = scalar_lea.hbm %s9631_s3, 9216 }
  0x3f   : > { %p7615_p9 = scmp.ne.s32.totalorder %s9631_s3, %s7614_s24  ;;  %p7621_p1 = scmp.lt.u32.totalorder %s7614_s24, %s9631_s3 }
  0x41   : > { %p7617_p12 = pnand %p7615_p9, %p7850_p13 }
  0x43   : > { %p7618_p2 = pneg %p7617_p12 }
  0x45   : > { %p7623_p4 = pnand %p7621_p1, %p7618_p2 }
  0x47   : > { %7626 = shalt.err (!%p7623_p4)
}
  0x48   : > { %s7627_s27 = scalar_lea.vmem %s7840_s30, 9216  ;;  %p7635_p3 = scmp.lt.s32.totalorder %s7840_s30, %s7840_s30 }
  0x49   : > { %p7628_p6 = scmp.ne.s32.totalorder %s7840_s30, %s7627_s27  ;;  %p7636_p5 = scmp.lt.s32.totalorder %s7627_s27, %s7627_s27 }
  0x4b   : > { %p7630_p8 = pnand %p7628_p6, %p7850_p13  ;;  %p7637_p7 = por %p7636_p5, %p7635_p3 }
  0x4d   : > { %p7631_p0 = pneg %p7630_p8 }
  0x4f   : > { %p7638_p10 = pnand %p7637_p7, %p7631_p0 }
  0x51   : > { %7641 = shalt.err (!%p7638_p10)
}
  0x52   : > { %s7751_s7 = smov 64   ;;  %s7752_s10 = smov 4  }
  0x53   : > { %7293 = dma.hbm_to_vmem [thread:$0]  (!%p7834_p11), %s9631_s3, 9216, %s7840_s30, [#allocation10], %s7751_s7, %s7751_s7, %s7752_s10  }
  0x54   : > { %s7914_s25 = sadd.s32 1, %s7746_s18   ;;  %s29_s12 = sadd.s32 1, %s7742_s17 }
  0x55   : > { %s26_s11 = ssub.s32 %s7746_s18, %s7914_s25  ;;  %p36_p9 = scmp.ne.s32.totalorder %s7742_s17, %s7738_s16 }
  0x56   : > { %p27_p13 = scmp.eq.s32.totalorder %s26_s11, 0  ;;  %p37_p12 = scmp.eq.s32.totalorder %s7746_s18, 0 }
  0x57   : > { %p7305_p2 = scmp.lt.s32.totalorder %s7746_s18, 2  ;;  %p9653_p4 = scmp.eq.s32.totalorder %s7806_s19, 1 }
  0x58   : > { %s7924_s13 = scalar_select %p27_p13, %s7742_s17, %s29_s12  }
  0x59   : > { %p38_p1 = por %p37_p12, %p36_p9  ;;  %p7928_p6 = por %p9653_p4, %p36_p9 }
  0x5a   : > { %s190_s28 = sand.u32 1, %s7742_s17   ;;  %s6314_s20 = sshll.u32 %s7746_s18, 12 }
  0x5b   : > { %s6002_s30 = sshll.u32 %s190_s28, 8  ;;  %s7937_s29 = scalar_lea.hbm %s9628_s0, %s6314_s20 }
  0x5c   : > { %s194_s5 = scalar_lea.vmem [#allocation3], %s6002_s30  ;;  %p7939_p11 = pnand %p7305_p2, %p38_p1 }
  0x5d   : > { %s201_s6 = sshll.u32 %s194_s5, 4  ;;  %s7945_s7 = scalar_lea.sflag [#allocation4], %s190_s28  ;;  %s7943_s6 = int_to_ptr.vmem [resolvable:$true] %s201_s6 }
  0x5e   : > { %s7642_s10 = scalar_lea.hbm %s7937_s29, 4096  ;;  %p7644_p0 = pneg %p7939_p11 }
  0x5f   : > { %p7643_p8 = scmp.ne.s32.totalorder %s7937_s29, %s7642_s10  ;;  %s7647_s11 = scalar_lea.hbm %s9628_s0, 8192 }
  0x60   : > { %p7648_p7 = scmp.lt.u32.totalorder %s7937_s29, %s9628_s0  ;;  %p7649_p10 = scmp.lt.u32.totalorder %s7647_s11, %s7642_s10 }
  0x61   : > { %p7645_p3 = pnand %p7644_p0, %p7643_p8  ;;  %p7651_p9 = scmp.lt.u32.totalorder %s7642_s10, %s7937_s29 }
  0x62   : > { %p7650_p13 = por %p7649_p10, %p7648_p7 }
  0x63   : > { %p7646_p5 = pneg %p7645_p3 }
  0x64   : > { %p7652_p12 = por %p7651_p9, %p7650_p13 }
  0x66   : > { %p7653_p2 = pnand %p7652_p12, %p7646_p5 }
  0x68   : > { %7656 = shalt.err (!%p7653_p2)
}
  0x69   : > { %s7657_s28 = scalar_lea.vmem %s7943_s6, 4096  ;;  %s7753_s30 = smov [#allocation3]  }
  0x6a   : > { %p7658_p1 = scmp.ne.s32.totalorder %s7943_s6, %s7657_s28  ;;  %s7662_s24 = sshll.u32 %s7753_s30, 4  ;;  %s7663_s24 = int_to_ptr.vmem [resolvable:$false] %s7662_s24 }
  0x6b   : > { %s7664_s26 = scalar_lea.vmem %s7663_s24, 8192  ;;  %p7665_p3 = scmp.lt.s32.totalorder %s7943_s6, %s7663_s24 }
  0x6c   : > { %p7660_p4 = pnand %p7658_p1, %p7644_p0  ;;  %p7666_p7 = scmp.lt.s32.totalorder %s7664_s26, %s7657_s28 }
  0x6e   : > { %p7661_p8 = pneg %p7660_p4  ;;  %p7667_p10 = por %p7666_p7, %p7665_p3 }
  0x70   : > { %p7668_p13 = pnand %p7667_p10, %p7661_p8 }
  0x72   : > { %7671 = shalt.err (!%p7668_p13)
}
  0x73   : > { %s7754_s5 = smov 128   ;;  %s7755_s10 = smov 8  }
  0x74   : > { %7297 = dma.hbm_to_vmem [thread:$0]  (!%p7939_p11), %s7937_s29, 4096, %s7943_s6, %s7945_s7, %s7754_s5, %s7754_s5, %s7755_s10  }
  0x75   : > { %p9656_p0 = scmp.ne.s32.totalorder %s9650_s23, 0 }
  0x77   : > { %213 = sbr.rel (%p9656_p0) target bundleno = 822 (0x336), region = 36 }
  0x7e   : > { %s7976_s8 = sand.u32 1, %s7738_s16   ;;  %p9657_p5 = scmp.ne.s32.totalorder %s9648_s21, 0 }
  0x7f   : > { %s6006_s9 = sshll.u32 %s7976_s8, 8  ;;  %s216_s11 = scalar_lea.sflag [#allocation4], %s7976_s8 }
  0x80   : > { %s7982_s12 = scalar_lea.vmem [#allocation3], %s6006_s9 }
  0x81   : > { %7717 = dma.done.wait (%p9657_p5), %s216_s11, 4096  }
  0x82   : > { %7719 = vsyncadd (%p9657_p5), %s216_s11, 4294963200  ;;  %p9658_p11 = scmp.eq.s32.totalorder %s7806_s19, 0 }
  0x84   : > { %7721 = dma.done.wait (%p9658_p11), [#allocation7], 32   ;;  %p9659_p9 = pmov %p9658_p11 }
  0x86   : > { %7723 = vsyncadd (%p9659_p9), [#allocation7], 4294967264  ;;  %p9660_p12 = pmov %p9659_p9 }
  0x87   : > { %p9661_p2 = pmov %p9659_p9 }
  0x88   : > { %7725 = dma.done.wait (%p9660_p12), [#allocation10], 9216  }
  0x89   : > { %7727 = vsyncadd (%p9661_p2), [#allocation10], 4294958080  ;;  %v7756_v0 = vmov 0   ;;  %v7352_v1 = vld [vmem:[#allocation9 + $0x40] sm:$0xff]   ;;  %v7354_v3 = vld [vmem:[#allocation9 + $0x48] sm:$0xff]   ;;  %vm423_vm1 = vcmask 1040384  }
  0x8a   : > { %415 = vst [vmem:[#allocation2] sm:$0xf] %v7756_v0  ;;  %416 = vst [vmem:[#allocation2 + $0x4] sm:$0xf] %v7756_v0  ;;  %v7353_v2 = vld [vmem:[#allocation9 + $0x100] sm:$0xff]   ;;  %6564 = vmatprep.subr.bf16.mxu1 %v7352_v1  ;;  %v7355_v4 = vld [vmem:[#allocation9 + $0x108] sm:$0xff]  }
  0x8b   : > { %417 = vst [vmem:[#allocation2 + $0x8] sm:$0x1] %v7756_v0  ;;  %419 = vst [vmem:[#allocation2 + $0xcc] sm:$0xf] %v7756_v0  ;;  %6756 = vmatprep.subr.bf16.mxu0 %v7353_v2  ;;  %6565 = vmatpush3.bf16.msra.mxu1 %v7352_v1  ;;  %v7356_v5 = vld [vmem:[#allocation9 + $0x50] sm:$0xff]   ;;  %v7358_v7 = vld [vmem:[#allocation9 + $0x58] sm:$0xff]  }
  0x8c   : > { %420 = vst [vmem:[#allocation2 + $0xd0] sm:$0xf] %v7756_v0  ;;  %421 = vst [vmem:[#allocation2 + $0xd4] sm:$0x1] %v7756_v0  ;;  %6757 = vmatpush3.bf16.msra.mxu0 %v7353_v2  ;;  %6566 = vmatprep.subr.bf16.mxu1 %v7354_v3  ;;  %v7357_v6 = vld [vmem:[#allocation9 + $0x110] sm:$0xff]   ;;  %v7359_v8 = vld [vmem:[#allocation9 + $0x118] sm:$0xff]  }
  0x8d   : > { %6758 = vmatprep.subr.bf16.mxu0 %v7355_v4  ;;  %vm424_vm0 = vsmask.f32 256  ;;  %vm1104_vm2 = vsmask.f32 3328  ;;  %vm1105_vm3 = vsmask.f32 7440 }
  0x8e   : > { %vm7998_vm4 = vmand %vm423_vm1, %vm424_vm0  ;;  %vm474_vm5 = vsmask.f32 7938  ;;  %v7360_v10 = vld [vmem:[#allocation9 + $0x60] sm:$0xff]   ;;  %v7362_v12 = vld [vmem:[#allocation9 + $0x68] sm:$0xff]   ;;  %vm604_vm7 = vsmask.f32 4368 }
  0x8f   : > { %6567 = vmatpush3.bf16.msra.mxu1 %v7354_v3  ;;  %v7361_v11 = vld [vmem:[#allocation9 + $0x120] sm:$0xff]   ;;  %v7363_v13 = vld [vmem:[#allocation9 + $0x128] sm:$0xff]   ;;  %vm8006_vm6 = vmand %vm423_vm1, %vm474_vm5  ;;  %vm926_vm9 = vcmask 1043456   ;;  %vm2134_vm12 = vcmask 1042432   ;;  %vm2135_vm13 = vcmask 1046532   ;;  %s9543_s21 = scalar_lea.vmem [#allocation11], %s6006_s9 }
  0x90   : > { %6759 = vmatpush3.bf16.msra.mxu0 %v7355_v4  ;;  %6568 = vmatprep.subr.bf16.mxu1 %v7356_v5  ;;  %v257_v21 = vld [vmem:[%s7982_s12] sm:$0xff]  ;;  %v258_v22 = vld [vmem:[%s7982_s12 + $0x8] sm:$0xff]  ;;  %v7364_v24 = vld [vmem:[#allocation9 + $0x70] sm:$0xff]   ;;  %s6347_s23 = sshll.u32 %s7806_s19, 12  ;;  %s5894_s29 = sshll.u32 %s9543_s21, 4  ;;  %s9581_s29 = int_to_ptr.vmem [resolvable:$true] %s5894_s29 }
  0x91   : > { %6760 = vmatprep.subr.bf16.mxu0 %v7357_v6  ;;  %v1040_v14 = vld [vmem:[#allocation2] sm:$0xf]  ;;  %v1041_v15 = vld [vmem:[#allocation2 + $0x4] sm:$0xf]  ;;  %v8010_v26 = vld [vmem:[#allocation6] ss:$0 sm:$0xff]  ;;  %s9579_s7 = scalar_lea.hbm %s9632_s4, %s6347_s23 }
  0x92   : > { %v1088_v16 = vld [vmem:[#allocation2 + $0x8] sm:$0x1]  ;;  %v1108_v17 = vshrl.u32 %v1040_v14, 16  ;;  %v1111_v18 = vshll.u32 %v1040_v14, 16  ;;  %v1117_v19 = vshll.u32 %v1041_v15, 16  ;;  %v1121_v20 = vshrl.u32 %v1041_v15, 16  ;;  %vm8020_vm8 = vmor %vm1104_vm2, %vm1105_vm3 }
  0x93   : > { %6569 = vmatpush3.bf16.msra.mxu1 %v7356_v5  ;;  %v1127_v25 = vshll.u32 %v1088_v16, 16  ;;  %v8012_v27 = vld [vmem:[#allocation8] ss:$0 sm:$0xff]  ;;  %v426_v32 = vld [vmem:[#allocation2 + $0xc] sm:$0x1]  ;;  %v296_v34 = vmul.f32 %v8010_v26, %v257_v21  ;;  %v297_v35 = vmul.f32 %v8010_v26, %v258_v22  ;;  %v260_v50 = vld [vmem:[%s7982_s12 + $0x18] sm:$0xff] }
  0x94   : > { %6761 = vmatpush3.bf16.msra.mxu0 %v7357_v6  ;;  %6570 = vmatprep.subr.bf16.mxu1 %v7358_v7  ;;  %v1110_v28 = vrot.slane %v1108_v17, 4  ;;  %v1113_v29 = vrot.slane %v1111_v18, 5  ;;  %v1119_v30 = vrot.slane %v1117_v19, 5  ;;  %v1123_v31 = vrot.slane %v1121_v20, 4  ;;  %v7365_v33 = vld [vmem:[#allocation9 + $0x130] sm:$0xff]   ;;  %v7366_v43 = vld [vmem:[#allocation9 + $0x78] sm:$0xff]   ;;  %vm8057_vm10 = vmor %vm424_vm0, %vm604_vm7 }
  0x95   : > { %6762 = vmatprep.subr.bf16.mxu0 %v7359_v8  ;;  %v427_v36 = vsel %vm7998_vm4, 0, %v426_v32  ;;  %v476_v37 = vld [vmem:[#allocation2 + $0x14] sm:$0x1]  ;;  %v1129_v41 = vrot.slane %v1127_v25, 5  ;;  %v335_v44 = vadd.f32 %v8012_v27, %v296_v34  ;;  %v336_v45 = vadd.f32 %v8012_v27, %v297_v35  ;;  %v259_v46 = vld [vmem:[%s7982_s12 + $0x10] sm:$0xff]  ;;  %v261_v58 = vld [vmem:[%s7982_s12 + $0x20] sm:$0xff] }
  0x96   : > { %v1114_v39 = vor.u32 %v1113_v29, %v1110_v28  ;;  %v1124_v40 = vor.u32 %v1123_v31, %v1119_v30  ;;  %428 = vst [vmem:[#allocation2 + $0xc] sm:$0x1] %v427_v36  ;;  %v477_v42 = vsel %vm8006_vm6, 0, %v476_v37  ;;  %v7367_v47 = vld [vmem:[#allocation9 + $0x138] sm:$0xff]   ;;  %v298_v51 = vmul.f32 %v8010_v26, %v259_v46  ;;  %v479_v57 = vld [vmem:[#allocation2 + $0x20] sm:$0x1]  ;;  %vm8066_vm11 = vmand %vm926_vm9, %vm474_vm5 }
  0x97   : > { %6571 = vmatpush3.bf16.msra.mxu1 %v7358_v7  ;;  %478 = vst [vmem:[#allocation2 + $0x14] sm:$0x1] %v477_v42  ;;  %v429_v52 = vld [vmem:[#allocation2 + $0x18] sm:$0x1]  ;;  %v367_v53 = vmax.f32 %v335_v44, 0.0  ;;  %v368_v54 = vmax.f32 %v336_v45, 0.0  ;;  %v299_v55 = vmul.f32 %v8010_v26, %v260_v50  ;;  %v300_v6 = vmul.f32 %v8010_v26, %v261_v58  ;;  %vm8368_vm14 = vmor %vm2134_vm12, %vm2135_vm13 }
  0x98   : > { %6763 = vmatpush3.bf16.msra.mxu0 %v7359_v8  ;;  %6572 = vmatprep.subr.bf16.mxu1 %v7360_v10  ;;  %v1115_v48 = vrot.slane %v1114_v39, 4  ;;  %v1125_v49 = vrot.slane %v1124_v40, 4  ;;  %v430_v56 = vsel %vm7998_vm4, 0, %v429_v52  ;;  %v337_v61 = vadd.f32 %v8012_v27, %v298_v51  ;;  %v262_v63 = vld [vmem:[%s7982_s12 + $0x28] sm:$0xff]  ;;  %v263_v22 = vld [vmem:[%s7982_s12 + $0x30] sm:$0xff]  ;;  %v264_v46 = vld [vmem:[%s7982_s12 + $0x38] sm:$0xff] }
  0x99   : > { %6764 = vmatprep.subr.bf16.mxu0 %v7361_v11  ;;  %431 = vst [vmem:[#allocation2 + $0x18] sm:$0x1] %v430_v56  ;;  %v480_v62 = vsel %vm8006_vm6, 0, %v479_v57  ;;  %v6315_v1 = vpack.c.bf16 %v367_v53, %v367_v53  ;;  %v6316_v2 = vpack.c.bf16 %v368_v54, %v368_v54  ;;  %v338_v3 = vadd.f32 %v8012_v27, %v299_v55  ;;  %v432_v4 = vld [vmem:[#allocation2 + $0x24] sm:$0x1]  ;;  %v8048_v15 = vld [vmem:[#allocation9] sm:$0xff]  }
  0x9a   : > { %v1120_v59 = vsel %vm8020_vm8, %v1115_v48, %v1119_v30  ;;  %v1130_v60 = vsel %vm8020_vm8, %v1125_v49, %v1129_v41  ;;  %481 = vst [vmem:[#allocation2 + $0x20] sm:$0x1] %v480_v62  ;;  %v369_v5 = vmax.f32 %v337_v61, 0.0  ;;  %v301_v7 = vmul.f32 %v8010_v26, %v262_v63  ;;  %v8050_v16 = vld [vmem:[#allocation9 + $0x140] sm:$0xff]   ;;  %v435_v56 = vld [vmem:[#allocation2 + $0x30] sm:$0x1] }
  0x9b   : > { %6573 = vmatpush3.bf16.msra.mxu1 %v7360_v10  ;;  %v6045_v0 = vcombine.low %v1120_v59, %v1130_v60  ;;  %v433_v8 = vsel %vm7998_vm4, 0, %v432_v4  ;;  %v482_v10 = vld [vmem:[#allocation2 + $0x2c] sm:$0x1]  ;;  %v618_v14 = vshll.u32 %v6316_v2, 16  ;;  %v370_v18 = vmax.f32 %v338_v3, 0.0  ;;  %v265_v3 = vld [vmem:[%s7982_s12 + $0x40] sm:$0xff] }
  0x9c   : > { %6765 = vmatpush3.bf16.msra.mxu0 %v7361_v11  ;;  %6574 = vmatprep.subr.bf16.mxu1 %v7362_v12  ;;  %v607_v11 = vshrl.u32 %v6315_v1, 16  ;;  %434 = vst [vmem:[#allocation2 + $0x24] sm:$0x1] %v433_v8  ;;  %v6317_v19 = vpack.c.bf16 %v369_v5, %v369_v5  ;;  %v339_v20 = vadd.f32 %v8012_v27, %v300_v6  ;;  %v483_v29 = vsel %vm8006_vm6, 0, %v482_v10  ;;  %v485_v62 = vld [vmem:[#allocation2 + $0x38] sm:$0x1] }
  0x9d   : > { %6766 = vmatprep.subr.bf16.mxu0 %v7363_v13  ;;  %6580 = vmatprep.mubr.bf16.mxu1 %v6045_v0  ;;  %v928_v17 = vld [vmem:[#allocation2 + $0xc] sm:$0xf]  ;;  %v340_v21 = vadd.f32 %v8012_v27, %v301_v7  ;;  %v302_v30 = vmul.f32 %v8010_v26, %v263_v22  ;;  %484 = vst [vmem:[#allocation2 + $0x2c] sm:$0x1] %v483_v29  ;;  %v266_v10 = vld [vmem:[%s7982_s12 + $0x48] sm:$0xff]  ;;  %s5881_s19 = scalar_lea.sflag [#allocation5], %s7976_s8 }
  0x9e   : > { %v609_v25 = vrot.slane %v607_v11, 7  ;;  %v932_v32 = vld [vmem:[#allocation2 + $0x14] sm:$0x1]  ;;  %v624_v34 = vshrl.u32 %v6317_v19, 16  ;;  %v627_v35 = vshll.u32 %v6317_v19, 16  ;;  %v371_v36 = vmax.f32 %v339_v20, 0.0 }
  0x9f   : > { %6575 = vmatpush3.bf16.msra.mxu1 %v7362_v12  ;;  %v610_v12 = vshll.u32 %v6315_v1, 16  ;;  %v372_v45 = vmax.f32 %v340_v21, 0.0  ;;  %v303_v60 = vmul.f32 %v8010_v26, %v264_v46  ;;  %v341_v61 = vadd.f32 %v8012_v27, %v302_v30  ;;  %v267_v29 = vld [vmem:[%s7982_s12 + $0x50] sm:$0xff]  ;;  %v7489_v23 = vld [vmem:[#allocation9 + $0x80] sm:$0xff]   ;;  %s7672_s20 = scalar_lea.vmem %s9581_s29, 4096  ;;  %s7757_s28 = smov [#allocation11]  }
  0xa0   : > { %6767 = vmatpush3.bf16.msra.mxu0 %v7363_v13  ;;  %6576 = vmatprep.subr.bf16.mxu1 %v7364_v24  ;;  %v615_v13 = vshrl.u32 %v6316_v2, 16  ;;  %v613_v39 = vrot.slane %v609_v25, 4  ;;  %v626_v42 = vrot.slane %v624_v34, 7  ;;  %v935_v50 = vld [vmem:[#allocation2 + $0x18] sm:$0xf]  ;;  %v6319_v51 = vpack.c.bf16 %v371_v36, %v371_v36  ;;  %v7412_v31 = vld [vmem:[#allocation9 + $0xa8] sm:$0xff]   ;;  %p7673_p1 = scmp.ne.s32.totalorder %s9581_s29, %s7672_s20 }
  0xa1   : > { %6768 = vmatprep.subr.bf16.mxu0 %v7365_v33  ;;  %v612_v37 = vor.u32 %v610_v12, %v609_v25  ;;  %v6320_v55 = vpack.c.bf16 %v372_v45, %v372_v45  ;;  %v939_v57 = vld [vmem:[#allocation2 + $0x20] sm:$0x1]  ;;  %v342_v7 = vadd.f32 %v8012_v27, %v303_v60  ;;  %v373_v8 = vmax.f32 %v341_v61, 0.0  ;;  %s7676_s30 = sshll.u32 %s7757_s28, 4  ;;  %s7677_s30 = int_to_ptr.vmem [resolvable:$false] %s7676_s30 }
  0xa2   : > { %v617_v28 = vrot.slane %v615_v13, 7  ;;  %v629_v52 = vor.u32 %v627_v35, %v626_v42  ;;  %v630_v53 = vrot.slane %v626_v42, 4  ;;  %v641_v58 = vshrl.u32 %v6319_v51, 16  ;;  %p7674_p4 = pnand %p7673_p1, %p7928_p6  ;;  %s7678_s24 = scalar_lea.vmem %s7677_s30, 8192 }
  0xa3   : > { %6577 = vmatpush3.bf16.msra.mxu1 %v7364_v24  ;;  %v929_v49 = vsel %vm8066_vm11, %v612_v37, %v928_v17  ;;  %v644_v59 = vshll.u32 %v6319_v51, 16  ;;  %v649_v2 = vshrl.u32 %v6320_v55, 16  ;;  %v652_v5 = vshll.u32 %v6320_v55, 16  ;;  %v942_v6 = vld [vmem:[#allocation2 + $0x24] sm:$0xf]  ;;  %p7679_p3 = scmp.lt.s32.totalorder %s9581_s29, %s7677_s30  ;;  %p7680_p7 = scmp.lt.s32.totalorder %s7678_s24, %s7672_s20 }
  0xa4   : > { %6769 = vmatpush3.bf16.msra.mxu0 %v7365_v33  ;;  %6578 = vmatprep.subr.bf16.mxu1 %v7366_v43  ;;  %v6318_v33 = vpack.c.bf16 %v370_v18, %v370_v18  ;;  %v620_v40 = vor.u32 %v618_v14, %v617_v28  ;;  %v622_v41 = vrot.slane %v617_v28, 4  ;;  %930 = vst [vmem:[#allocation2 + $0xc] sm:$0xf] %v929_v49  ;;  %v643_v4 = vrot.slane %v641_v58, 7  ;;  %v946_v25 = vld [vmem:[#allocation2 + $0x2c] sm:$0x1]  ;;  %p7675_p8 = pneg %p7674_p4 }
  0xa5   : > { %6770 = vmatprep.subr.bf16.mxu0 %v7367_v47  ;;  %v936_v1 = vsel %vm8066_vm11, %v629_v52, %v935_v50  ;;  %v651_v13 = vrot.slane %v649_v2, 7  ;;  %v436_v14 = vsel %vm7998_vm4, 0, %v435_v56  ;;  %v374_v19 = vmax.f32 %v342_v7, 0.0  ;;  %p7681_p10 = por %p7680_p7, %p7679_p3 }
  0xa6   : > { %v635_v44 = vshll.u32 %v6318_v33, 16  ;;  %v621_v48 = vsel %vm8057_vm10, %v613_v39, %v620_v40  ;;  %937 = vst [vmem:[#allocation2 + $0x18] sm:$0xf] %v936_v1  ;;  %v646_v17 = vor.u32 %v644_v59, %v643_v4  ;;  %v647_v18 = vrot.slane %v643_v4, 4  ;;  %437 = vst [vmem:[#allocation2 + $0x30] sm:$0x1] %v436_v14 }
  0xa7   : > { %6579 = vmatpush3.bf16.msra.mxu1 %v7366_v43  ;;  %v632_v43 = vshrl.u32 %v6318_v33, 16  ;;  %931 = vst [vmem:[#allocation2 + $0x10] sm:$0xf] %v621_v48  ;;  %v486_v20 = vsel %vm8006_vm6, 0, %v485_v62  ;;  %v654_v21 = vor.u32 %v652_v5, %v651_v13  ;;  %v656_v22 = vrot.slane %v651_v13, 4  ;;  %p7682_p13 = pnand %p7681_p10, %p7675_p8 }
  0xa8   : > { %6771 = vmatpush3.bf16.msra.mxu0 %v7367_v47  ;;  %6612 = vmatprep.subr.bf16.mxu1 %v8048_v15  ;;  %v933_v47 = vsel %vm7998_vm4, %v622_v41, %v932_v32  ;;  %487 = vst [vmem:[#allocation2 + $0x38] sm:$0x1] %v486_v20  ;;  %v8094_v28 = vpack.c.bf16 %v373_v8, %v373_v8 }
  0xa9   : > { %6804 = vmatprep.subr.bf16.mxu0 %v8050_v16  ;;  %934 = vst [vmem:[#allocation2 + $0x14] sm:$0x1] %v933_v47  ;;  %v634_v54 = vrot.slane %v632_v43, 7  ;;  %v943_v34 = vsel %vm8066_vm11, %v646_v17, %v942_v6  ;;  %v8099_v35 = vpack.c.bf16 %v374_v19, %v374_v19  ;;  %v8102_v36 = vmul.f32 %v8010_v26, %v265_v3 }
  0xaa   : > { %v8105_v37 = vmul.f32 %v8010_v26, %v266_v10  ;;  %944 = vst [vmem:[#allocation2 + $0x24] sm:$0xf] %v943_v34  ;;  %v655_v48 = vsel %vm8057_vm10, %v647_v18, %v654_v21  ;;  %v947_v49 = vsel %vm7998_vm4, %v656_v22, %v946_v25  ;;  %v8114_v47 = vmul.f32 %v8010_v26, %v267_v29 }
  0xab   : > { %v637_v63 = vor.u32 %v635_v44, %v634_v54  ;;  %v639_v0 = vrot.slane %v634_v54, 4  ;;  %v1042_v30 = vld [vmem:[#allocation2 + $0xc] sm:$0xf]  ;;  %945 = vst [vmem:[#allocation2 + $0x28] sm:$0xf] %v655_v48 }
  0xac   : > { %v1132_v39 = vshrl.u32 %v1042_v30, 16  ;;  %v1135_v40 = vshll.u32 %v1042_v30, 16  ;;  %v2957_v43 = vld [vmem:[#allocation2 + $0xc] sm:$0xf]  ;;  %948 = vst [vmem:[#allocation2 + $0x2c] sm:$0x1] %v947_v49 }
  0xad   : > { %v638_v11 = vsel %vm8057_vm10, %v630_v53, %v637_v63  ;;  %v940_v12 = vsel %vm7998_vm4, %v639_v0, %v939_v57  ;;  %v3006_v55 = vshrl.u32 %v2957_v43, 16  ;;  %v3009_v56 = vshll.u32 %v2957_v43, 16  ;;  %v2960_v62 = vld [vmem:[#allocation2 + $0x18] sm:$0xf]  ;;  %v7371_v30 = vld [vmem:[#allocation9 + $0x8] sm:$0xff]  }
  0xae   : > { %938 = vst [vmem:[#allocation2 + $0x1c] sm:$0xf] %v638_v11  ;;  %941 = vst [vmem:[#allocation2 + $0x20] sm:$0x1] %v940_v12  ;;  %v1043_v32 = vld [vmem:[#allocation2 + $0x10] sm:$0xf] }
  0xaf   : > { %v1141_v41 = vshll.u32 %v1043_v32, 16  ;;  %v1145_v42 = vshrl.u32 %v1043_v32, 16  ;;  %v2958_v45 = vld [vmem:[#allocation2 + $0x10] sm:$0xf]  ;;  %v1134_v50 = vrot.slane %v1132_v39, 4  ;;  %v1137_v51 = vrot.slane %v1135_v40, 5 }
  0xb0   : > { %v1089_v33 = vld [vmem:[#allocation2 + $0x14] sm:$0x1]  ;;  %v3015_v57 = vshll.u32 %v2958_v45, 16  ;;  %v3019_v60 = vshrl.u32 %v2958_v45, 16  ;;  %v3008_v0 = vrot.slane %v3006_v55, 4  ;;  %v3011_v1 = vrot.slane %v3009_v56, 5 }
  0xb1   : > { %v1151_v44 = vshll.u32 %v1089_v33, 16  ;;  %v8107_v46 = vld [vmem:[#allocation2 + $0x14] sm:$0x1]  ;;  %v1143_v52 = vrot.slane %v1141_v41, 5  ;;  %v1147_v53 = vrot.slane %v1145_v42, 4  ;;  %v1138_v58 = vor.u32 %v1137_v51, %v1134_v50 }
  0xb2   : > { %v3025_v61 = vshll.u32 %v8107_v46, 16  ;;  %v3017_v2 = vrot.slane %v3015_v57, 5  ;;  %v3780_v3 = vrot.slane %v8107_v46, 5  ;;  %v3021_v6 = vrot.slane %v3019_v60, 4  ;;  %v1044_v29 = vld [vmem:[#allocation2 + $0x18] sm:$0xf] }
  0xb3   : > { %v1153_v54 = vrot.slane %v1151_v44, 5  ;;  %v1148_v59 = vor.u32 %v1147_v53, %v1143_v52  ;;  %v1139_v4 = vrot.slane %v1138_v58, 4  ;;  %v3012_v8 = vor.u32 %v3011_v1, %v3008_v0  ;;  %v7374_v57 = vld [vmem:[#allocation9 + $0x10] sm:$0xff]   ;;  %v2963_v0 = vld [vmem:[#allocation2 + $0x24] sm:$0xf] }
  0xb4   : > { %v3027_v7 = vrot.slane %v3025_v61, 5  ;;  %v3030_v11 = vshrl.u32 %v2960_v62, 16  ;;  %v3033_v12 = vshll.u32 %v2960_v62, 16  ;;  %v3022_v18 = vor.u32 %v3021_v6, %v3017_v2  ;;  %v1047_v62 = vld [vmem:[#allocation2 + $0x28] sm:$0xf] }
  0xb5   : > { %v8117_v63 = vld [vmem:[#allocation2 + $0x1c] sm:$0xf]  ;;  %v1149_v5 = vrot.slane %v1148_v59, 4  ;;  %v8120_v10 = vld [vmem:[#allocation2 + $0x20] sm:$0x1]  ;;  %v1144_v14 = vsel %vm8020_vm8, %v1139_v4, %v1143_v52  ;;  %v3013_v21 = vrot.slane %v3012_v8, 4 }
  0xb6   : > { %v3039_v13 = vshll.u32 %v8117_v63, 16  ;;  %v3043_v19 = vshrl.u32 %v8117_v63, 16  ;;  %v3032_v22 = vrot.slane %v3030_v11, 4  ;;  %v3035_v25 = vrot.slane %v3033_v12, 5  ;;  %v1045_v44 = vld [vmem:[#allocation2 + $0x1c] sm:$0xf] }
  0xb7   : > { %v1154_v17 = vsel %vm8020_vm8, %v1149_v5, %v1153_v54  ;;  %v3023_v32 = vrot.slane %v3022_v18, 4  ;;  %v3049_v39 = vshll.u32 %v8120_v10, 16  ;;  %v3018_v40 = vsel %vm8020_vm8, %v3013_v21, %v3017_v2  ;;  %v1090_v45 = vld [vmem:[#allocation2 + $0x20] sm:$0x1]  ;;  %v1046_v52 = vld [vmem:[#allocation2 + $0x24] sm:$0xf] }
  0xb8   : > { %v6046_v20 = vcombine.low %v1144_v14, %v1154_v17  ;;  %v3041_v33 = vrot.slane %v3039_v13, 5  ;;  %v3045_v34 = vrot.slane %v3043_v19, 4  ;;  %v3036_v41 = vor.u32 %v3035_v25, %v3032_v22  ;;  %v7370_v1 = vld [vmem:[#allocation9 + $0x148] sm:$0xff]   ;;  %v1091_v5 = vld [vmem:[#allocation2 + $0x2c] sm:$0x1]  ;;  %v7377_v13 = vld [vmem:[#allocation9 + $0x18] sm:$0xff]  }
  0xb9   : > { %v3784_v42 = vrot.slane %v8117_v63, 5  ;;  %v3787_v43 = vrot.slane %v8120_v10, 5  ;;  %v3028_v48 = vsel %vm8020_vm8, %v3023_v32, %v3027_v7  ;;  %v3051_v50 = vrot.slane %v3049_v39, 5 }
  0xba   : > { %6581 = vmatmul.mubr.bf16.vlgmr.msra.gmra.mrb[0].mxu1 %v6046_v20  ;;  %v3046_v49 = vor.u32 %v3045_v34, %v3041_v33  ;;  %v1156_v51 = vshrl.u32 %v1044_v29, 16  ;;  %v6157_v53 = vcombine.low %v3018_v40, %v3028_v48  ;;  %v3037_v54 = vrot.slane %v3036_v41, 4 }
  0xbb   : > { %6613 = vmatpush3.bf16.msra.mxu1 %v8048_v15  ;;  %v8138_v55 = vrot.slane %v3784_v42, 4  ;;  %v1159_v56 = vshll.u32 %v1044_v29, 16  ;;  %v1165_v60 = vshll.u32 %v1045_v44, 16  ;;  %v1169_v61 = vshrl.u32 %v1045_v44, 16 }
  0xbc   : > { %6614 = vmatprep.subr.bf16.mxu1 %v7371_v30  ;;  %v3047_v58 = vrot.slane %v3046_v49, 4  ;;  %v1158_v59 = vrot.slane %v1156_v51, 4  ;;  %6772 = vmatprep.mubr.bf16.mxu0 %v6157_v53  ;;  %v3042_v15 = vsel %vm8020_vm8, %v3037_v54, %v3041_v33  ;;  %v1175_v4 = vshll.u32 %v1090_v45, 16  ;;  %v2964_v33 = vld [vmem:[#allocation2 + $0x28] sm:$0xf] }
  0xbd   : > { %v1161_v2 = vrot.slane %v1159_v56, 5  ;;  %v1180_v6 = vshrl.u32 %v1046_v52, 16  ;;  %v1167_v8 = vrot.slane %v1165_v60, 5  ;;  %v1171_v11 = vrot.slane %v1169_v61, 4  ;;  %v2965_v45 = vld [vmem:[#allocation2 + $0x2c] sm:$0x1] }
  0xbe   : > { %v3052_v7 = vsel %vm8020_vm8, %v3047_v58, %v3051_v50  ;;  %v1183_v12 = vshll.u32 %v1046_v52, 16  ;;  %v1177_v18 = vrot.slane %v1175_v4, 5  ;;  %v1189_v22 = vshll.u32 %v1047_v62, 16  ;;  %v7372_v52 = vld [vmem:[#allocation9 + $0x150] sm:$0xff]   ;;  %v7380_v58 = vld [vmem:[#allocation9 + $0x20] sm:$0xff]   ;;  %v7373_v4 = vld [vmem:[#allocation9 + $0x158] sm:$0xff]  }
  0xbf   : > { %6615 = vmatpush3.bf16.msra.mxu1 %v7371_v30  ;;  %v6158_v14 = vcombine.low %v3042_v15, %v3052_v7  ;;  %v1162_v17 = vor.u32 %v1161_v2, %v1158_v59  ;;  %v1182_v19 = vrot.slane %v1180_v6, 4  ;;  %v1172_v20 = vor.u32 %v1171_v11, %v1167_v8 }
  0xc0   : > { %6616 = vmatprep.subr.bf16.mxu1 %v7374_v57  ;;  %v1185_v21 = vrot.slane %v1183_v12, 5  ;;  %v1193_v25 = vshrl.u32 %v1047_v62, 16  ;;  %v1199_v32 = vshll.u32 %v1091_v5, 16  ;;  %v3054_v34 = vshrl.u32 %v2963_v0, 16  ;;  %v438_v5 = vld [vmem:[#allocation2 + $0x3c] sm:$0x1] }
  0xc1   : > { %6773 = vmatmul.mubr.bf16.vlgmr.msra.gmra.mrb[0].mxu0 %v6158_v14  ;;  %v1163_v29 = vrot.slane %v1162_v17, 4  ;;  %v3057_v39 = vshll.u32 %v2963_v0, 16  ;;  %v1173_v40 = vrot.slane %v1172_v20, 4  ;;  %v1191_v41 = vrot.slane %v1189_v22, 5  ;;  %v488_v12 = vld [vmem:[#allocation2 + $0x44] sm:$0x1] }
  0xc2   : > { %6805 = vmatpush3.bf16.msra.mxu0 %v8050_v16  ;;  %v1186_v30 = vor.u32 %v1185_v21, %v1182_v19  ;;  %v1195_v44 = vrot.slane %v1193_v25, 4  ;;  %v1201_v49 = vrot.slane %v1199_v32, 5  ;;  %v3056_v50 = vrot.slane %v3054_v34, 4  ;;  %v949_v21 = vld [vmem:[#allocation2 + $0x30] sm:$0xf] }
  0xc3   : > { %6617 = vmatpush3.bf16.msra.mxu1 %v7374_v57  ;;  %6806 = vmatprep.subr.bf16.mxu0 %v7370_v1  ;;  %v1168_v48 = vsel %vm8020_vm8, %v1163_v29, %v1167_v8  ;;  %v3059_v51 = vrot.slane %v3057_v39, 5  ;;  %v1178_v53 = vsel %vm8020_vm8, %v1173_v40, %v1177_v18  ;;  %v3063_v56 = vshll.u32 %v2964_v33, 16  ;;  %v268_v34 = vld [vmem:[%s7982_s12 + $0x58] sm:$0xff]  ;;  %v953_v39 = vld [vmem:[#allocation2 + $0x38] sm:$0x1] }
  0xc4   : > { %6618 = vmatprep.subr.bf16.mxu1 %v7377_v13  ;;  %v1187_v54 = vrot.slane %v1186_v30, 4  ;;  %v1196_v16 = vor.u32 %v1195_v44, %v1191_v41  ;;  %v6047_v59 = vcombine.low %v1168_v48, %v1178_v53  ;;  %v3067_v61 = vshrl.u32 %v2964_v33, 16  ;;  %v7375_v33 = vld [vmem:[#allocation9 + $0x160] sm:$0xff]  }
  0xc5   : > { %v3060_v60 = vor.u32 %v3059_v51, %v3056_v50  ;;  %v3073_v57 = vshll.u32 %v2965_v45, 16  ;;  %v3065_v15 = vrot.slane %v3063_v56, 5  ;;  %v658_v2 = vshrl.u32 %v8094_v28, 16  ;;  %v269_v50 = vld [vmem:[%s7982_s12 + $0x60] sm:$0xff]  ;;  %v7382_v56 = vld [vmem:[#allocation9 + $0x28] sm:$0xff]  }
  0xc6   : > { %6807 = vmatpush3.bf16.msra.mxu0 %v7370_v1  ;;  %v1192_v62 = vsel %vm8020_vm8, %v1187_v54, %v1191_v41  ;;  %v1197_v0 = vrot.slane %v1196_v16, 4  ;;  %6584 = vmatprep.mubr.bf16.mxu1 %v6047_v59  ;;  %v3069_v7 = vrot.slane %v3067_v61, 4  ;;  %v661_v11 = vshll.u32 %v8094_v28, 16  ;;  %v441_v41 = vld [vmem:[#allocation2 + $0x48] sm:$0x1] }
  0xc7   : > { %6619 = vmatpush3.bf16.msra.mxu1 %v7377_v13  ;;  %v3061_v6 = vrot.slane %v3060_v60, 4  ;;  %v3075_v8 = vrot.slane %v3073_v57, 5  ;;  %6808 = vmatprep.subr.bf16.mxu0 %v7372_v52  ;;  %v660_v14 = vrot.slane %v658_v2, 7  ;;  %v666_v17 = vshrl.u32 %v8099_v35, 16  ;;  %v8176_v16 = vld [vmem:[#allocation9 + $0x168] sm:$0xff]  }
  0xc8   : > { %v1202_v1 = vsel %vm8020_vm8, %v1197_v0, %v1201_v49  ;;  %v669_v18 = vshll.u32 %v8099_v35, 16  ;;  %6620 = vmatprep.subr.bf16.mxu1 %v7380_v58  ;;  %v3070_v20 = vor.u32 %v3069_v7, %v3065_v15  ;;  %v343_v28 = vadd.f32 %v8012_v27, %v8102_v36  ;;  %v491_v49 = vld [vmem:[#allocation2 + $0x50] sm:$0x1]  ;;  %v444_v57 = vld [vmem:[#allocation2 + $0x54] sm:$0x1]  ;;  %v270_v2 = vld [vmem:[%s7982_s12 + $0x68] sm:$0xff] }
  0xc9   : > { %v6048_v19 = vcombine.low %v1192_v62, %v1202_v1  ;;  %v3066_v13 = vsel %vm8020_vm8, %v3061_v6, %v3065_v15  ;;  %v663_v22 = vor.u32 %v661_v11, %v660_v14  ;;  %v664_v25 = vrot.slane %v660_v14, 4 }
  0xca   : > { %v668_v29 = vrot.slane %v666_v17, 7  ;;  %6809 = vmatpush3.bf16.msra.mxu0 %v7372_v52  ;;  %v344_v32 = vadd.f32 %v8012_v27, %v8105_v37  ;;  %v3071_v35 = vrot.slane %v3070_v20, 4  ;;  %v375_v40 = vmax.f32 %v343_v28, 0.0  ;;  %v7378_v20 = vld [vmem:[#allocation9 + $0x170] sm:$0xff]  }
  0xcb   : > { %6621 = vmatpush3.bf16.msra.mxu1 %v7380_v58  ;;  %6810 = vmatprep.subr.bf16.mxu0 %v7373_v4  ;;  %v439_v30 = vsel %vm7998_vm4, 0, %v438_v5  ;;  %v489_v36 = vsel %vm8006_vm6, 0, %v488_v12  ;;  %v950_v37 = vsel %vm8066_vm11, %v663_v22, %v949_v21  ;;  %v307_v53 = vmul.f32 %v8010_v26, %v268_v34  ;;  %v494_v5 = vld [vmem:[#allocation2 + $0x5c] sm:$0x1] }
  0xcc   : > { %6585 = vmatmul.mubr.bf16.gmra.mrb[4].mxu1 %v6048_v19  ;;  %v671_v44 = vor.u32 %v669_v18, %v668_v29  ;;  %v673_v45 = vrot.slane %v668_v29, 4  ;;  %v376_v48 = vmax.f32 %v344_v32, 0.0  ;;  %440 = vst [vmem:[#allocation2 + $0x3c] sm:$0x1] %v439_v30  ;;  %490 = vst [vmem:[#allocation2 + $0x44] sm:$0x1] %v489_v36  ;;  %v3076_v51 = vsel %vm8020_vm8, %v3071_v35, %v3075_v8 }
  0xcd   : > { %951 = vst [vmem:[#allocation2 + $0x30] sm:$0xf] %v950_v37  ;;  %v6323_v52 = vpack.c.bf16 %v375_v40, %v375_v40  ;;  %v345_v54 = vadd.f32 %v8012_v27, %v8114_v47  ;;  %v6159_v58 = vcombine.low %v3066_v13, %v3076_v51  ;;  %v346_v47 = vadd.f32 %v8012_v27, %v307_v53  ;;  %v7379_v37 = vld [vmem:[#allocation9 + $0x178] sm:$0xff]  }
  0xce   : > { %v672_v59 = vsel %vm8057_vm10, %v664_v25, %v671_v44  ;;  %v954_v60 = vsel %vm7998_vm4, %v673_v45, %v953_v39  ;;  %6811 = vmatpush3.bf16.msra.mxu0 %v7373_v4  ;;  %v6324_v61 = vpack.c.bf16 %v376_v48, %v376_v48  ;;  %6622 = vmatprep.subr.bf16.mxu1 %v7382_v56  ;;  %v442_v8 = vsel %vm7998_vm4, 0, %v441_v41 }
  0xcf   : > { %952 = vst [vmem:[#allocation2 + $0x34] sm:$0xf] %v672_v59  ;;  %955 = vst [vmem:[#allocation2 + $0x38] sm:$0x1] %v954_v60  ;;  %v675_v62 = vshrl.u32 %v6323_v52, 16  ;;  %v678_v0 = vshll.u32 %v6323_v52, 16  ;;  %6812 = vmatprep.subr.bf16.mxu0 %v7375_v33  ;;  %6776 = vmatprep.mubr.bf16.mxu0 %v6159_v58  ;;  %v308_v14 = vmul.f32 %v8010_v26, %v269_v50 }
  0xd0   : > { %v377_v15 = vmax.f32 %v345_v54, 0.0  ;;  %v683_v6 = vshrl.u32 %v6324_v61, 16  ;;  %v686_v7 = vshll.u32 %v6324_v61, 16  ;;  %v492_v4 = vsel %vm8006_vm6, 0, %v491_v49  ;;  %6623 = vmatpush3.bf16.msra.mxu1 %v7382_v56  ;;  %443 = vst [vmem:[#allocation2 + $0x48] sm:$0x1] %v442_v8 }
  0xd1   : > { %v677_v11 = vrot.slane %v675_v62, 7  ;;  %v378_v12 = vmax.f32 %v346_v47, 0.0  ;;  %493 = vst [vmem:[#allocation2 + $0x50] sm:$0x1] %v492_v4  ;;  %v309_v18 = vmul.f32 %v8010_v26, %v270_v2  ;;  %v445_v19 = vsel %vm7998_vm4, 0, %v444_v57 }
  0xd2   : > { %v8188_v1 = vpack.c.bf16 %v377_v15, %v377_v15  ;;  %v685_v17 = vrot.slane %v683_v6, 7  ;;  %6813 = vmatpush3.bf16.msra.mxu0 %v7375_v33  ;;  %v495_v13 = vsel %vm8006_vm6, 0, %v494_v5  ;;  %446 = vst [vmem:[#allocation2 + $0x54] sm:$0x1] %v445_v19  ;;  %v8202_v30 = vadd.f32 %v8012_v27, %v308_v14  ;;  %v7384_v5 = vld [vmem:[#allocation9 + $0x30] sm:$0xff]   ;;  %v273_v19 = vld [vmem:[%s7982_s12 + $0x80] sm:$0xff] }
  0xd3   : > { %v680_v21 = vor.u32 %v678_v0, %v677_v11  ;;  %v681_v28 = vrot.slane %v677_v11, 4  ;;  %v956_v22 = vld [vmem:[#allocation2 + $0x3c] sm:$0xf]  ;;  %v960_v25 = vld [vmem:[#allocation2 + $0x44] sm:$0x1]  ;;  %v8196_v29 = vpack.c.bf16 %v378_v12, %v378_v12  ;;  %6814 = vmatprep.subr.bf16.mxu0 %v8176_v16  ;;  %v8216_v54 = vadd.f32 %v8012_v27, %v309_v18  ;;  %v271_v11 = vld [vmem:[%s7982_s12 + $0x70] sm:$0xff]  ;;  %6624 = vmatprep.subr.bf16.mxu1 %v7384_v5 }
  0xd4   : > { %v692_v32 = vshrl.u32 %v8188_v1, 16  ;;  %496 = vst [vmem:[#allocation2 + $0x5c] sm:$0x1] %v495_v13  ;;  %v2966_v33 = vld [vmem:[#allocation2 + $0x30] sm:$0xf]  ;;  %v688_v35 = vor.u32 %v686_v7, %v685_v17  ;;  %v690_v39 = vrot.slane %v685_v17, 4  ;;  %6625 = vmatpush3.bf16.msra.mxu1 %v7384_v5 }
  0xd5   : > { %v1048_v34 = vld [vmem:[#allocation2 + $0x30] sm:$0xf]  ;;  %v695_v40 = vshll.u32 %v8188_v1, 16  ;;  %v3078_v36 = vshrl.u32 %v2966_v33, 16  ;;  %v3081_v41 = vshll.u32 %v2966_v33, 16  ;;  %v957_v52 = vsel %vm8066_vm11, %v680_v21, %v956_v22  ;;  %v8226_v13 = vld [vmem:[#allocation9 + $0x180] sm:$0xff]  }
  0xd6   : > { %v1204_v44 = vshrl.u32 %v1048_v34, 16  ;;  %v1207_v45 = vshll.u32 %v1048_v34, 16  ;;  %v8204_v48 = vld [vmem:[#allocation2 + $0x34] sm:$0xf]  ;;  %v8206_v49 = vld [vmem:[#allocation2 + $0x38] sm:$0x1]  ;;  %v689_v51 = vsel %vm8057_vm10, %v681_v28, %v688_v35  ;;  %v961_v53 = vsel %vm7998_vm4, %v690_v39, %v960_v25  ;;  %6815 = vmatpush3.bf16.msra.mxu0 %v8176_v16 }
  0xd7   : > { %v1049_v50 = vld [vmem:[#allocation2 + $0x34] sm:$0xf]  ;;  %v3080_v56 = vrot.slane %v3078_v36, 4  ;;  %v3083_v58 = vrot.slane %v3081_v41, 5  ;;  %v3087_v59 = vshll.u32 %v8204_v48, 16  ;;  %v3091_v60 = vshrl.u32 %v8204_v48, 16  ;;  %6816 = vmatprep.subr.bf16.mxu0 %v7378_v20 }
  0xd8   : > { %v1092_v61 = vld [vmem:[#allocation2 + $0x38] sm:$0x1]  ;;  %958 = vst [vmem:[#allocation2 + $0x3c] sm:$0xf] %v957_v52  ;;  %959 = vst [vmem:[#allocation2 + $0x40] sm:$0xf] %v689_v51 }
  0xd9   : > { %962 = vst [vmem:[#allocation2 + $0x44] sm:$0x1] %v961_v53  ;;  %v3097_v57 = vshll.u32 %v8206_v49, 16  ;;  %v1206_v62 = vrot.slane %v1204_v44, 4  ;;  %v1209_v0 = vrot.slane %v1207_v45, 5  ;;  %v1213_v16 = vshll.u32 %v1049_v50, 16 }
  0xda   : > { %v3084_v27 = vor.u32 %v3083_v58, %v3080_v56  ;;  %v3089_v47 = vrot.slane %v3087_v59, 5  ;;  %v3093_v15 = vrot.slane %v3091_v60, 4  ;;  %v1217_v2 = vshrl.u32 %v1049_v50, 16  ;;  %6817 = vmatpush3.bf16.msra.mxu0 %v7378_v20  ;;  %v272_v18 = vld [vmem:[%s7982_s12 + $0x78] sm:$0xff] }
  0xdb   : > { %v3099_v6 = vrot.slane %v3097_v57, 5  ;;  %v1210_v7 = vor.u32 %v1209_v0, %v1206_v62  ;;  %v1215_v8 = vrot.slane %v1213_v16, 5  ;;  %v1223_v4 = vshll.u32 %v1092_v61, 16  ;;  %6818 = vmatprep.subr.bf16.mxu0 %v7379_v37 }
  0xdc   : > { %v3085_v12 = vrot.slane %v3084_v27, 4  ;;  %v3094_v1 = vor.u32 %v3093_v15, %v3089_v47  ;;  %v1219_v14 = vrot.slane %v1217_v2, 4  ;;  %v8222_v17 = vrot.slane %v692_v32, 7  ;;  %v963_v2 = vld [vmem:[#allocation2 + $0x48] sm:$0xf] }
  0xdd   : > { %v1211_v21 = vrot.slane %v1210_v7, 4  ;;  %v1225_v28 = vrot.slane %v1223_v4, 5  ;;  %v700_v22 = vshrl.u32 %v8196_v29, 16  ;;  %v703_v25 = vshll.u32 %v8196_v29, 16 }
  0xde   : > { %v3090_v20 = vsel %vm8020_vm8, %v3085_v12, %v3089_v47  ;;  %v3095_v33 = vrot.slane %v3094_v1, 4  ;;  %v1220_v34 = vor.u32 %v1219_v14, %v1215_v8  ;;  %v697_v32 = vor.u32 %v695_v40, %v8222_v17  ;;  %6819 = vmatpush3.bf16.msra.mxu0 %v7379_v37 }
  0xdf   : > { %v1216_v35 = vsel %vm8020_vm8, %v1211_v21, %v1215_v8  ;;  %v1050_v39 = vld [vmem:[#allocation2 + $0x3c] sm:$0xf]  ;;  %v1051_v36 = vld [vmem:[#allocation2 + $0x40] sm:$0xf]  ;;  %v8236_v44 = vmul.f32 %v8010_v26, %v271_v11  ;;  %v8239_v45 = vmul.f32 %v8010_v26, %v272_v18  ;;  %v8242_v29 = vmul.f32 %v8010_v26, %v273_v19  ;;  %6852 = vmatprep.subr.bf16.mxu0 %v8226_v13 }
  0xe0   : > { %v1093_v41 = vld [vmem:[#allocation2 + $0x44] sm:$0x1]  ;;  %v3100_v50 = vsel %vm8020_vm8, %v3095_v33, %v3099_v6  ;;  %v1221_v40 = vrot.slane %v1220_v34, 4  ;;  %v1228_v51 = vshrl.u32 %v1050_v39, 16  ;;  %v1231_v52 = vshll.u32 %v1050_v39, 16 }
  0xe1   : > { %v2969_v53 = vld [vmem:[#allocation2 + $0x3c] sm:$0xf]  ;;  %v6160_v56 = vcombine.low %v3090_v20, %v3100_v50  ;;  %v1237_v58 = vshll.u32 %v1051_v36, 16  ;;  %v1241_v59 = vshrl.u32 %v1051_v36, 16  ;;  %v1247_v60 = vshll.u32 %v1093_v41, 16 }
  0xe2   : > { %v2970_v61 = vld [vmem:[#allocation2 + $0x40] sm:$0xf]  ;;  %v1226_v37 = vsel %vm8020_vm8, %v1221_v40, %v1225_v28  ;;  %v1230_v57 = vrot.slane %v1228_v51, 4  ;;  %v1233_v26 = vrot.slane %v1231_v52, 5  ;;  %v2971_v62 = vld [vmem:[#allocation2 + $0x44] sm:$0x1]  ;;  %v964_v34 = vsel %vm8066_vm11, %v697_v32, %v963_v2 }
  0xe3   : > { %v3102_v0 = vshrl.u32 %v2969_v53, 16  ;;  %6777 = vmatmul.mubr.bf16.gmra.mrb[4].mxu0 %v6160_v56  ;;  %v6049_v16 = vcombine.low %v1216_v35, %v1226_v37  ;;  %v1239_v27 = vrot.slane %v1237_v58, 5  ;;  %v1243_v47 = vrot.slane %v1241_v59, 4  ;;  %v967_v35 = vld [vmem:[#allocation2 + $0x50] sm:$0x1] }
  0xe4   : > { %v1249_v15 = vrot.slane %v1247_v60, 5  ;;  %v1234_v5 = vor.u32 %v1233_v26, %v1230_v57  ;;  %v3105_v7 = vshll.u32 %v2969_v53, 16  ;;  %v3111_v8 = vshll.u32 %v2970_v61, 16  ;;  %965 = vst [vmem:[#allocation2 + $0x48] sm:$0xf] %v964_v34  ;;  %v274_v57 = vld [vmem:[%s7982_s12 + $0x88] sm:$0xff] }
  0xe5   : > { %v3104_v6 = vrot.slane %v3102_v0, 4  ;;  %6588 = vmatprep.mubr.bf16.mxu1 %v6049_v16  ;;  %v1244_v4 = vor.u32 %v1243_v47, %v1239_v27  ;;  %v3115_v11 = vshrl.u32 %v2970_v61, 16  ;;  %v3121_v12 = vshll.u32 %v2971_v62, 16  ;;  %v447_v40 = vld [vmem:[#allocation2 + $0x60] sm:$0x1] }
  0xe6   : > { %v698_v1 = vrot.slane %v8222_v17, 4  ;;  %v1235_v14 = vrot.slane %v1234_v5, 4  ;;  %v3107_v18 = vrot.slane %v3105_v7, 5  ;;  %v3113_v19 = vrot.slane %v3111_v8, 5  ;;  %v497_v17 = vld [vmem:[#allocation2 + $0x68] sm:$0x1] }
  0xe7   : > { %v702_v21 = vrot.slane %v700_v22, 7  ;;  %v1245_v28 = vrot.slane %v1244_v4, 4  ;;  %v3117_v20 = vrot.slane %v3115_v11, 4  ;;  %v3123_v33 = vrot.slane %v3121_v12, 5  ;;  %v8262_v37 = vld [vmem:[#allocation8] ss:$0 sm:$0xff] }
  0xe8   : > { %v1240_v39 = vsel %vm8020_vm8, %v1235_v14, %v1239_v27  ;;  %v3108_v36 = vor.u32 %v3107_v18, %v3104_v6  ;;  %v379_v52 = vmax.f32 %v8202_v30, 0.0  ;;  %v380_v53 = vmax.f32 %v8216_v54, 0.0  ;;  %v8277_v12 = vld [vmem:[#allocation6] ss:$0 sm:$0xff] }
  0xe9   : > { %v705_v41 = vor.u32 %v703_v25, %v702_v21  ;;  %v707_v50 = vrot.slane %v702_v21, 4  ;;  %v1250_v22 = vsel %vm8020_vm8, %v1245_v28, %v1249_v15  ;;  %v3118_v51 = vor.u32 %v3117_v20, %v3113_v19  ;;  %v7386_v15 = vld [vmem:[#allocation9 + $0x38] sm:$0xff]  }
  0xea   : > { %v6050_v32 = vcombine.low %v1240_v39, %v1250_v22  ;;  %v3109_v56 = vrot.slane %v3108_v36, 4  ;;  %v6327_v60 = vpack.c.bf16 %v379_v52, %v379_v52  ;;  %v6328_v61 = vpack.c.bf16 %v380_v53, %v380_v53  ;;  %6626 = vmatprep.subr.bf16.mxu1 %v7386_v15 }
  0xeb   : > { %v706_v58 = vsel %vm8057_vm10, %v698_v1, %v705_v41  ;;  %v968_v25 = vsel %vm7998_vm4, %v707_v50, %v967_v35  ;;  %v3119_v59 = vrot.slane %v3118_v51, 4  ;;  %v349_v30 = vadd.f32 %v8262_v37, %v8236_v44  ;;  %v1052_v8 = vld [vmem:[#allocation2 + $0x48] sm:$0xf]  ;;  %6627 = vmatpush3.bf16.msra.mxu1 %v7386_v15 }
  0xec   : > { %966 = vst [vmem:[#allocation2 + $0x4c] sm:$0xf] %v706_v58  ;;  %969 = vst [vmem:[#allocation2 + $0x50] sm:$0x1] %v968_v25  ;;  %6589 = vmatmul.mubr.bf16.gmra.mrb[8].mxu1 %v6050_v32  ;;  %v3114_v54 = vsel %vm8020_vm8, %v3109_v56, %v3113_v19  ;;  %v350_v26 = vadd.f32 %v8262_v37, %v8239_v45  ;;  %v448_v62 = vsel %vm7998_vm4, 0, %v447_v40  ;;  %v498_v0 = vsel %vm8006_vm6, 0, %v497_v17 }
  0xed   : > { %v3124_v16 = vsel %vm8020_vm8, %v3119_v59, %v3123_v33  ;;  %v709_v27 = vshrl.u32 %v6327_v60, 16  ;;  %v712_v47 = vshll.u32 %v6327_v60, 16  ;;  %v717_v44 = vshrl.u32 %v6328_v61, 16  ;;  %449 = vst [vmem:[#allocation2 + $0x60] sm:$0x1] %v448_v62 }
  0xee   : > { %499 = vst [vmem:[#allocation2 + $0x68] sm:$0x1] %v498_v0  ;;  %v6161_v2 = vcombine.low %v3114_v54, %v3124_v16  ;;  %v720_v5 = vshll.u32 %v6328_v61, 16  ;;  %v381_v6 = vmax.f32 %v349_v30, 0.0  ;;  %v382_v7 = vmax.f32 %v350_v26, 0.0 }
  0xef   : > { %v2972_v45 = vld [vmem:[#allocation2 + $0x48] sm:$0xf]  ;;  %v711_v4 = vrot.slane %v709_v27, 7  ;;  %v719_v11 = vrot.slane %v717_v44, 7  ;;  %v313_v1 = vmul.f32 %v8277_v12, %v274_v57  ;;  %v8282_v14 = vadd.f32 %v8262_v37, %v8242_v29  ;;  %v970_v40 = vld [vmem:[#allocation2 + $0x54] sm:$0xf] }
  0xf0   : > { %6780 = vmatprep.mubr.bf16.mxu0 %v6161_v2  ;;  %v3126_v18 = vshrl.u32 %v2972_v45, 16  ;;  %v3129_v19 = vshll.u32 %v2972_v45, 16  ;;  %v1252_v21 = vshrl.u32 %v1052_v8, 16  ;;  %v1255_v28 = vshll.u32 %v1052_v8, 16  ;;  %v974_v26 = vld [vmem:[#allocation2 + $0x5c] sm:$0x1] }
  0xf1   : > { %v714_v20 = vor.u32 %v712_v47, %v711_v4  ;;  %v715_v33 = vrot.slane %v711_v4, 4  ;;  %v722_v34 = vor.u32 %v720_v5, %v719_v11  ;;  %v724_v35 = vrot.slane %v719_v11, 4  ;;  %v7390_v47 = vld [vmem:[#allocation9 + $0x80] sm:$0xff]  }
  0xf2   : > { %v3128_v41 = vrot.slane %v3126_v18, 4  ;;  %v3131_v50 = vrot.slane %v3129_v19, 5  ;;  %v6329_v29 = vpack.c.bf16 %v381_v6, %v381_v6  ;;  %v6330_v17 = vpack.c.bf16 %v382_v7, %v382_v7  ;;  %v450_v6 = vld [vmem:[#allocation2 + $0x6c] sm:$0x1]  ;;  %6660 = vmatprep.subr.bf16.mxu1 %v7390_v47 }
  0xf3   : > { %v8284_v39 = vld [vmem:[#allocation2 + $0x4c] sm:$0xf]  ;;  %v8286_v36 = vld [vmem:[#allocation2 + $0x50] sm:$0x1]  ;;  %v1254_v32 = vrot.slane %v1252_v21, 4  ;;  %v1257_v25 = vrot.slane %v1255_v28, 5  ;;  %v723_v2 = vsel %vm8057_vm10, %v715_v33, %v722_v34  ;;  %v971_v5 = vsel %vm8066_vm11, %v714_v20, %v970_v40 }
  0xf4   : > { %v3135_v22 = vshll.u32 %v8284_v39, 16  ;;  %v3139_v51 = vshrl.u32 %v8284_v39, 16  ;;  %v3145_v52 = vshll.u32 %v8286_v36, 16  ;;  %v1053_v53 = vld [vmem:[#allocation2 + $0x4c] sm:$0xf]  ;;  %v3132_v56 = vor.u32 %v3131_v50, %v3128_v41 }
  0xf5   : > { %v1094_v58 = vld [vmem:[#allocation2 + $0x50] sm:$0x1]  ;;  %v1261_v59 = vshll.u32 %v1053_v53, 16  ;;  %v1265_v60 = vshrl.u32 %v1053_v53, 16  ;;  %v1258_v0 = vor.u32 %v1257_v25, %v1254_v32  ;;  %972 = vst [vmem:[#allocation2 + $0x54] sm:$0xf] %v971_v5  ;;  %v975_v4 = vsel %vm7998_vm4, %v724_v35, %v974_v26 }
  0xf6   : > { %v3137_v61 = vrot.slane %v3135_v22, 5  ;;  %v3141_v30 = vrot.slane %v3139_v51, 4  ;;  %v3147_v57 = vrot.slane %v3145_v52, 5  ;;  %v1271_v54 = vshll.u32 %v1094_v58, 16  ;;  %973 = vst [vmem:[#allocation2 + $0x58] sm:$0xf] %v723_v2 }
  0xf7   : > { %v3133_v62 = vrot.slane %v3132_v56, 4  ;;  %v1263_v16 = vrot.slane %v1261_v59, 5  ;;  %v1267_v27 = vrot.slane %v1265_v60, 4  ;;  %v1259_v45 = vrot.slane %v1258_v0, 4  ;;  %976 = vst [vmem:[#allocation2 + $0x5c] sm:$0x1] %v975_v4 }
  0xf8   : > { %v3142_v44 = vor.u32 %v3141_v30, %v3137_v61  ;;  %v1273_v15 = vrot.slane %v1271_v54, 5  ;;  %v726_v18 = vshrl.u32 %v6329_v29, 16  ;;  %v729_v19 = vshll.u32 %v6329_v29, 16  ;;  %v500_v28 = vld [vmem:[#allocation2 + $0x74] sm:$0x1]  ;;  %v275_v50 = vld [vmem:[%s7982_s12 + $0x90] sm:$0xff] }
  0xf9   : > { %v3138_v7 = vsel %vm8020_vm8, %v3133_v62, %v3137_v61  ;;  %v1268_v8 = vor.u32 %v1267_v27, %v1263_v16  ;;  %v734_v21 = vshrl.u32 %v6330_v17, 16  ;;  %v1264_v20 = vsel %vm8020_vm8, %v1259_v45, %v1263_v16  ;;  %v276_v52 = vld [vmem:[%s7982_s12 + $0x98] sm:$0xff]  ;;  %v977_v32 = vld [vmem:[#allocation2 + $0x60] sm:$0xf]  ;;  %v981_v60 = vld [vmem:[#allocation2 + $0x68] sm:$0x1] }
  0xfa   : > { %v3143_v11 = vrot.slane %v3142_v44, 4  ;;  %v737_v34 = vshll.u32 %v6330_v17, 16  ;;  %v352_v41 = vadd.f32 %v8262_v37, %v313_v1  ;;  %v728_v35 = vrot.slane %v726_v18, 7 }
  0xfb   : > { %v1269_v33 = vrot.slane %v1268_v8, 4  ;;  %v736_v22 = vrot.slane %v734_v21, 7  ;;  %v383_v51 = vmax.f32 %v8282_v14, 0.0  ;;  %v451_v17 = vsel %vm7998_vm4, 0, %v450_v6 }
  0xfc   : > { %v3148_v40 = vsel %vm8020_vm8, %v3143_v11, %v3147_v57  ;;  %v384_v56 = vmax.f32 %v352_v41, 0.0  ;;  %v731_v1 = vor.u32 %v729_v19, %v728_v35  ;;  %v732_v25 = vrot.slane %v728_v35, 4  ;;  %452 = vst [vmem:[#allocation2 + $0x6c] sm:$0x1] %v451_v17  ;;  %v1054_v54 = vld [vmem:[#allocation2 + $0x54] sm:$0xf] }
  0xfd   : > { %v6162_v53 = vcombine.low %v3138_v7, %v3148_v40  ;;  %v1274_v29 = vsel %vm8020_vm8, %v1269_v33, %v1273_v15  ;;  %v739_v59 = vor.u32 %v737_v34, %v736_v22  ;;  %v741_v61 = vrot.slane %v736_v22, 4  ;;  %v1055_v26 = vld [vmem:[#allocation2 + $0x58] sm:$0xf]  ;;  %v2975_v62 = vld [vmem:[#allocation2 + $0x54] sm:$0xf] }
  0xfe   : > { %v6051_v58 = vcombine.low %v1264_v20, %v1274_v29  ;;  %v501_v14 = vsel %vm8006_vm6, 0, %v500_v28  ;;  %v8313_v30 = vpack.c.bf16 %v383_v51, %v383_v51  ;;  %v8315_v57 = vpack.c.bf16 %v384_v56, %v384_v56  ;;  %v1095_v44 = vld [vmem:[#allocation2 + $0x5c] sm:$0x1]  ;;  %v2976_v45 = vld [vmem:[#allocation2 + $0x58] sm:$0xf] }
  0xff   : > { %6781 = vmatmul.mubr.bf16.gmra.mrb[8].mxu0 %v6162_v53  ;;  %v740_v0 = vsel %vm8057_vm10, %v732_v25, %v739_v59  ;;  %v978_v16 = vsel %vm8066_vm11, %v731_v1, %v977_v32  ;;  %502 = vst [vmem:[#allocation2 + $0x74] sm:$0x1] %v501_v14  ;;  %v314_v27 = vmul.f32 %v8277_v12, %v275_v50  ;;  %v1276_v15 = vshrl.u32 %v1054_v54, 16  ;;  %v2977_v8 = vld [vmem:[#allocation2 + $0x5c] sm:$0x1]  ;;  %v278_v53 = vld [vmem:[%s7982_s12 + $0xa8] sm:$0xff] }
 0x100   : > { %6592 = vmatprep.mubr.bf16.mxu1 %v6051_v58  ;;  %v315_v47 = vmul.f32 %v8277_v12, %v276_v52  ;;  %v1279_v2 = vshll.u32 %v1054_v54, 16  ;;  %v1285_v5 = vshll.u32 %v1055_v26, 16  ;;  %v1289_v6 = vshrl.u32 %v1055_v26, 16  ;;  %979 = vst [vmem:[#allocation2 + $0x60] sm:$0xf] %v978_v16  ;;  %v277_v52 = vld [vmem:[%s7982_s12 + $0xa0] sm:$0xff] }
 0x101   : > { %980 = vst [vmem:[#allocation2 + $0x64] sm:$0xf] %v740_v0  ;;  %v1295_v7 = vshll.u32 %v1095_v44, 16  ;;  %v3150_v4 = vshrl.u32 %v2975_v62, 16  ;;  %v982_v11 = vsel %vm7998_vm4, %v741_v61, %v981_v60  ;;  %v8326_v18 = vadd.f32 %v8262_v37, %v314_v27 }
 0x102   : > { %v1278_v19 = vrot.slane %v1276_v15, 4  ;;  %v1281_v21 = vrot.slane %v1279_v2, 5  ;;  %v1287_v28 = vrot.slane %v1285_v5, 5  ;;  %v1291_v20 = vrot.slane %v1289_v6, 4  ;;  %983 = vst [vmem:[#allocation2 + $0x68] sm:$0x1] %v982_v11 }
 0x103   : > { %v1297_v33 = vrot.slane %v1295_v7, 5  ;;  %v3152_v34 = vrot.slane %v3150_v4, 4  ;;  %v3153_v41 = vshll.u32 %v2975_v62, 16  ;;  %v3159_v50 = vshll.u32 %v2976_v45, 16 }
 0x104   : > { %v1282_v40 = vor.u32 %v1281_v21, %v1278_v19  ;;  %v1292_v35 = vor.u32 %v1291_v20, %v1287_v28  ;;  %v3163_v22 = vshrl.u32 %v2976_v45, 16  ;;  %v3169_v51 = vshll.u32 %v2977_v8, 16 }
 0x105   : > { %v3155_v29 = vrot.slane %v3153_v41, 5  ;;  %v3161_v32 = vrot.slane %v3159_v50, 5  ;;  %v743_v56 = vshrl.u32 %v8313_v30, 16  ;;  %v746_v17 = vshll.u32 %v8313_v30, 16 }
 0x106   : > { %v1283_v58 = vrot.slane %v1282_v40, 4  ;;  %v1293_v1 = vrot.slane %v1292_v35, 4  ;;  %v3165_v25 = vrot.slane %v3163_v22, 4  ;;  %v3171_v59 = vrot.slane %v3169_v51, 5 }
 0x107   : > { %v3156_v60 = vor.u32 %v3155_v29, %v3152_v34  ;;  %v2978_v61 = vld [vmem:[#allocation2 + $0x60] sm:$0xf]  ;;  %v8335_v54 = vadd.f32 %v8262_v37, %v315_v47  ;;  %v8338_v26 = vmul.f32 %v8277_v12, %v277_v52  ;;  %v8341_v62 = vmul.f32 %v8277_v12, %v278_v53 }
 0x108   : > { %v8332_v14 = vld [vmem:[#allocation2 + $0x64] sm:$0xf]  ;;  %v1288_v30 = vsel %vm8020_vm8, %v1283_v58, %v1287_v28  ;;  %v1298_v0 = vsel %vm8020_vm8, %v1293_v1, %v1297_v33  ;;  %v3166_v16 = vor.u32 %v3165_v25, %v3161_v32  ;;  %v3174_v27 = vshrl.u32 %v2978_v61, 16  ;;  %v1056_v44 = vld [vmem:[#allocation2 + $0x60] sm:$0xf] }
 0x109   : > { %v1057_v15 = vld [vmem:[#allocation2 + $0x64] sm:$0xf]  ;;  %v6052_v2 = vcombine.low %v1288_v30, %v1298_v0  ;;  %v3157_v5 = vrot.slane %v3156_v60, 4  ;;  %v8347_v47 = vld [vmem:[#allocation2 + $0x68] sm:$0x1]  ;;  %v3177_v6 = vshll.u32 %v2978_v61, 16 }
 0x10a   : > { %v3183_v7 = vshll.u32 %v8332_v14, 16  ;;  %v3167_v45 = vrot.slane %v3166_v16, 4  ;;  %v3176_v8 = vrot.slane %v3174_v27, 4  ;;  %v3187_v4 = vshrl.u32 %v8332_v14, 16  ;;  %v1096_v19 = vld [vmem:[#allocation2 + $0x68] sm:$0x1] }
 0x10b   : > { %v3193_v11 = vshll.u32 %v8347_v47, 16  ;;  %6593 = vmatmul.mubr.bf16.gmra.mrb[12].mxu1 %v6052_v2  ;;  %v3162_v21 = vsel %vm8020_vm8, %v3157_v5, %v3161_v32  ;;  %v3179_v28 = vrot.slane %v3177_v6, 5  ;;  %v1300_v33 = vshrl.u32 %v1056_v44, 16  ;;  %v984_v25 = vld [vmem:[#allocation2 + $0x6c] sm:$0xf] }
 0x10c   : > { %v3185_v20 = vrot.slane %v3183_v7, 5  ;;  %v3172_v34 = vsel %vm8020_vm8, %v3167_v45, %v3171_v59  ;;  %v3189_v41 = vrot.slane %v3187_v4, 4  ;;  %v1303_v40 = vshll.u32 %v1056_v44, 16  ;;  %v988_v44 = vld [vmem:[#allocation2 + $0x74] sm:$0x1] }
 0x10d   : > { %v3195_v50 = vrot.slane %v3193_v11, 5  ;;  %v6163_v35 = vcombine.low %v3162_v21, %v3172_v34  ;;  %v3180_v22 = vor.u32 %v3179_v28, %v3176_v8  ;;  %v1302_v51 = vrot.slane %v1300_v33, 4  ;;  %v3711_v2 = vld [vmem:[#allocation2 + $0xc] sm:$0xe]  ;;  %v3712_v5 = vld [vmem:[#allocation2 + $0x18] sm:$0xe] }
 0x10e   : > { %v1309_v52 = vshll.u32 %v1057_v15, 16  ;;  %v3190_v53 = vor.u32 %v3189_v41, %v3185_v20  ;;  %v1305_v29 = vrot.slane %v1303_v40, 5  ;;  %v1313_v58 = vshrl.u32 %v1057_v15, 16  ;;  %v453_v33 = vld [vmem:[#allocation2 + $0x78] sm:$0x1] }
 0x10f   : > { %v1319_v1 = vshll.u32 %v1096_v19, 16  ;;  %6784 = vmatprep.mubr.bf16.mxu0 %v6163_v35  ;;  %v3181_v32 = vrot.slane %v3180_v22, 4  ;;  %v745_v61 = vrot.slane %v743_v56, 7  ;;  %v751_v30 = vshrl.u32 %v8315_v57, 16  ;;  %v503_v41 = vld [vmem:[#allocation2 + $0x80] sm:$0x1] }
 0x110   : > { %v1311_v60 = vrot.slane %v1309_v52, 5  ;;  %v3191_v0 = vrot.slane %v3190_v53, 4  ;;  %v1306_v59 = vor.u32 %v1305_v29, %v1302_v51  ;;  %v1315_v16 = vrot.slane %v1313_v58, 4  ;;  %v7474_v35 = vld [vmem:[#allocation2 + $0x10] sm:$0xf] }
 0x111   : > { %v1321_v27 = vrot.slane %v1319_v1, 5  ;;  %v3186_v6 = vsel %vm8020_vm8, %v3181_v32, %v3185_v20  ;;  %v748_v7 = vor.u32 %v746_v17, %v745_v61  ;;  %v749_v15 = vrot.slane %v745_v61, 4  ;;  %v456_v52 = vld [vmem:[#allocation2 + $0x84] sm:$0x1]  ;;  %v506_v53 = vld [vmem:[#allocation2 + $0x8c] sm:$0x1] }
 0x112   : > { %v753_v45 = vrot.slane %v751_v30, 7  ;;  %v3196_v8 = vsel %vm8020_vm8, %v3191_v0, %v3195_v50  ;;  %v1307_v4 = vrot.slane %v1306_v59, 4  ;;  %v1316_v56 = vor.u32 %v1315_v16, %v1311_v60  ;;  %v7383_v16 = vld [vmem:[#allocation9 + $0x188] sm:$0xff]  }
 0x113   : > { %v754_v11 = vshll.u32 %v8315_v57, 16  ;;  %v6164_v19 = vcombine.low %v3186_v6, %v3196_v8  ;;  %v985_v28 = vsel %vm8066_vm11, %v748_v7, %v984_v25  ;;  %v6181_v40 = vrot.slane %v3711_v2, 9 }
 0x114   : > { %v758_v21 = vrot.slane %v753_v45, 4  ;;  %v1312_v20 = vsel %vm8020_vm8, %v1307_v4, %v1311_v60  ;;  %v1317_v17 = vrot.slane %v1316_v56, 4  ;;  %986 = vst [vmem:[#allocation2 + $0x6c] sm:$0xf] %v985_v28  ;;  %v3777_v22 = vrot.slane %v7474_v35, 5 }
 0x115   : > { %v756_v34 = vor.u32 %v754_v11, %v753_v45  ;;  %6785 = vmatmul.mubr.bf16.gmra.mrb[12].mxu0 %v6164_v19  ;;  %v6182_v51 = vrot.slane %v3712_v5, 9  ;;  %v3788_v1 = vsel %vm8368_vm14, %v8138_v55, %v3787_v43  ;;  %v385_v25 = vmax.f32 %v8326_v18, 0.0  ;;  %v8393_v55 = vld [vmem:[#allocation2 + $0x24] sm:$0xe] }
 0x116   : > { %v989_v50 = vsel %vm7998_vm4, %v758_v21, %v988_v44  ;;  %v1322_v29 = vsel %vm8020_vm8, %v1317_v17, %v1321_v27  ;;  %v3778_v60 = vsel %vm8368_vm14, %v6181_v40, %v3777_v22  ;;  %v3779_v61 = vrot.slane %v3777_v22, 4  ;;  %v7385_v22 = vld [vmem:[#allocation9 + $0x190] sm:$0xff]  }
 0x117   : > { %v757_v58 = vsel %vm8057_vm10, %v749_v15, %v756_v34  ;;  %990 = vst [vmem:[#allocation2 + $0x74] sm:$0x1] %v989_v50  ;;  %v6053_v32 = vcombine.low %v1312_v20, %v1322_v29  ;;  %v3785_v30 = vsel %vm8368_vm14, %v6182_v51, %v3784_v42  ;;  %v386_v10 = vmax.f32 %v8335_v54, 0.0 }
 0x118   : > { %987 = vst [vmem:[#allocation2 + $0x70] sm:$0xf] %v757_v58  ;;  %v6198_v0 = vcombine.low %v3785_v30, %v3788_v1  ;;  %v454_v59 = vsel %vm7998_vm4, 0, %v453_v33  ;;  %v504_v43 = vsel %vm8006_vm6, 0, %v503_v41  ;;  %v3781_v63 = vsel %vm8368_vm14, %v3779_v61, %v3780_v3 }
 0x119   : > { %6596 = vmatprep.mubr.bf16.mxu1 %v6053_v32  ;;  %455 = vst [vmem:[#allocation2 + $0x78] sm:$0x1] %v454_v59  ;;  %505 = vst [vmem:[#allocation2 + $0x80] sm:$0x1] %v504_v43  ;;  %v6333_v42 = vpack.c.bf16 %v385_v25, %v385_v25  ;;  %v355_v18 = vadd.f32 %v8262_v37, %v8338_v26  ;;  %v356_v54 = vadd.f32 %v8262_v37, %v8341_v62 }
 0x11a   : > { %v6197_v27 = vcombine.low %v3778_v60, %v3781_v63  ;;  %v6334_v44 = vpack.c.bf16 %v386_v10, %v386_v10  ;;  %v457_v2 = vsel %vm7998_vm4, 0, %v456_v52  ;;  %v507_v46 = vsel %vm8006_vm6, 0, %v506_v53 }
 0x11b   : > { %v1058_v5 = vld [vmem:[#allocation2 + $0x6c] sm:$0xf]  ;;  %v760_v3 = vshrl.u32 %v6333_v42, 16  ;;  %v763_v6 = vshll.u32 %v6333_v42, 16  ;;  %v387_v7 = vmax.f32 %v355_v18, 0.0  ;;  %v388_v15 = vmax.f32 %v356_v54, 0.0 }
 0x11c   : > { %458 = vst [vmem:[#allocation2 + $0x84] sm:$0x1] %v457_v2  ;;  %508 = vst [vmem:[#allocation2 + $0x8c] sm:$0x1] %v507_v46  ;;  %v1324_v26 = vshrl.u32 %v1058_v5, 16  ;;  %v1327_v45 = vshll.u32 %v1058_v5, 16  ;;  %6820 = vmatprep.mubr.bf16.mxu0 %v6197_v27 }
 0x11d   : > { %v768_v62 = vshrl.u32 %v6334_v44, 16  ;;  %v771_v8 = vshll.u32 %v6334_v44, 16  ;;  %6821 = vmatmul.mubr.bf16.vlgmr.msra.gmra.mrb[0].mxu0 %v6198_v0  ;;  %v762_v56 = vrot.slane %v760_v3, 7  ;;  %v6335_v11 = vpack.c.bf16 %v387_v7, %v387_v7  ;;  %v7387_v54 = vld [vmem:[#allocation9 + $0x198] sm:$0xff]   ;;  %v7475_v44 = vld [vmem:[#allocation2 + $0x28] sm:$0xf] }
 0x11e   : > { %v1097_v4 = vld [vmem:[#allocation2 + $0x74] sm:$0x1]  ;;  %v6336_v19 = vpack.c.bf16 %v388_v15, %v388_v15  ;;  %v6183_v21 = vrot.slane %v8393_v55, 9  ;;  %v1326_v33 = vrot.slane %v1324_v26, 4  ;;  %v1329_v20 = vrot.slane %v1327_v45, 5  ;;  %6853 = vmatpush3.bf16.msra.mxu0 %v8226_v13  ;;  %v279_v45 = vld [vmem:[%s7982_s12 + $0xb0] sm:$0xff] }
 0x11f   : > { %v1059_v28 = vld [vmem:[#allocation2 + $0x70] sm:$0xf]  ;;  %v1343_v17 = vshll.u32 %v1097_v4, 16  ;;  %v770_v34 = vrot.slane %v768_v62, 7  ;;  %v765_v40 = vor.u32 %v763_v6, %v762_v56  ;;  %v766_v35 = vrot.slane %v762_v56, 4  ;;  %6854 = vmatprep.subr.bf16.mxu0 %v7383_v16 }
 0x120   : > { %v1333_v41 = vshll.u32 %v1059_v28, 16  ;;  %v1337_v50 = vshrl.u32 %v1059_v28, 16  ;;  %v1330_v51 = vor.u32 %v1329_v20, %v1326_v33  ;;  %v991_v58 = vld [vmem:[#allocation2 + $0x78] sm:$0xf]  ;;  %v995_v1 = vld [vmem:[#allocation2 + $0x80] sm:$0x1] }
 0x121   : > { %v1345_v52 = vrot.slane %v1343_v17, 5  ;;  %v773_v53 = vor.u32 %v771_v8, %v770_v34  ;;  %v775_v29 = vrot.slane %v770_v34, 4  ;;  %v992_v60 = vsel %vm8066_vm11, %v765_v40, %v991_v58  ;;  %v3714_v13 = vld [vmem:[#allocation2 + $0x30] sm:$0xe]  ;;  %v7476_v46 = vld [vmem:[#allocation2 + $0x2c] sm:$0x1] }
 0x122   : > { %v1335_v25 = vrot.slane %v1333_v41, 5  ;;  %v1339_v32 = vrot.slane %v1337_v50, 4  ;;  %v777_v61 = vshrl.u32 %v6335_v11, 16  ;;  %v1331_v30 = vrot.slane %v1330_v51, 4  ;;  %993 = vst [vmem:[#allocation2 + $0x78] sm:$0xf] %v992_v60  ;;  %6855 = vmatpush3.bf16.msra.mxu0 %v7383_v16 }
 0x123   : > { %v774_v0 = vsel %vm8057_vm10, %v766_v35, %v773_v53  ;;  %v996_v10 = vsel %vm7998_vm4, %v775_v29, %v995_v1  ;;  %v780_v59 = vshll.u32 %v6335_v11, 16  ;;  %v998_v43 = vld [vmem:[#allocation2 + $0x84] sm:$0xf]  ;;  %v785_v42 = vshrl.u32 %v6336_v19, 16  ;;  %6856 = vmatprep.subr.bf16.mxu0 %v7385_v22  ;;  %v1002_v26 = vld [vmem:[#allocation2 + $0x8c] sm:$0x1] }
 0x124   : > { %v1340_v55 = vor.u32 %v1339_v32, %v1335_v25  ;;  %994 = vst [vmem:[#allocation2 + $0x7c] sm:$0xf] %v774_v0  ;;  %997 = vst [vmem:[#allocation2 + $0x80] sm:$0x1] %v996_v10  ;;  %v779_v63 = vrot.slane %v777_v61, 7  ;;  %v788_v18 = vshll.u32 %v6336_v19, 16  ;;  %v1336_v27 = vsel %vm8020_vm8, %v1331_v30, %v1335_v25 }
 0x125   : > { %v3791_v2 = vrot.slane %v7475_v44, 5  ;;  %v3794_v5 = vrot.slane %v7476_v46, 5  ;;  %v6184_v3 = vrot.slane %v3714_v13, 9  ;;  %v787_v15 = vrot.slane %v785_v42, 7  ;;  %v280_v11 = vld [vmem:[%s7982_s12 + $0xb8] sm:$0xff]  ;;  %v7391_v17 = vld [vmem:[#allocation9 + $0x1a0] sm:$0xff]  }
 0x126   : > { %v1341_v6 = vrot.slane %v1340_v55, 4  ;;  %v782_v16 = vor.u32 %v780_v59, %v779_v63  ;;  %v783_v7 = vrot.slane %v779_v63, 4  ;;  %v3798_v4 = vrot.slane %v8204_v48, 5  ;;  %6857 = vmatpush3.bf16.msra.mxu0 %v7385_v22  ;;  %v459_v51 = vld [vmem:[#allocation2 + $0x90] sm:$0x1]  ;;  %v7395_v0 = vld [vmem:[#allocation9 + $0x1a8] sm:$0xff]  }
 0x127   : > { %v3792_v62 = vsel %vm8368_vm14, %v6183_v21, %v3791_v2  ;;  %v3793_v8 = vrot.slane %v3791_v2, 4  ;;  %v3801_v56 = vrot.slane %v8206_v49, 5  ;;  %v790_v28 = vor.u32 %v788_v18, %v787_v15  ;;  %6858 = vmatprep.subr.bf16.mxu0 %v7387_v54  ;;  %v509_v30 = vld [vmem:[#allocation2 + $0x98] sm:$0x1]  ;;  %v282_v42 = vld [vmem:[%s7982_s12 + $0xc8] sm:$0xff] }
 0x128   : > { %v1346_v19 = vsel %vm8020_vm8, %v1341_v6, %v1345_v52  ;;  %v792_v33 = vrot.slane %v787_v15, 4  ;;  %v999_v20 = vsel %vm8066_vm11, %v782_v16, %v998_v43  ;;  %v3799_v48 = vsel %vm8368_vm14, %v6184_v3, %v3798_v4  ;;  %v281_v63 = vld [vmem:[%s7982_s12 + $0xc0] sm:$0xff] }
 0x129   : > { %v6054_v34 = vcombine.low %v1336_v27, %v1346_v19  ;;  %1000 = vst [vmem:[#allocation2 + $0x84] sm:$0xf] %v999_v20  ;;  %v3795_v21 = vsel %vm8368_vm14, %v3793_v8, %v3794_v5  ;;  %v3800_v49 = vrot.slane %v3798_v4, 4  ;;  %v1060_v41 = vld [vmem:[#allocation2 + $0x78] sm:$0xf]  ;;  %v791_v50 = vsel %vm8057_vm10, %v783_v7, %v790_v28 }
 0x12a   : > { %v1003_v40 = vsel %vm7998_vm4, %v792_v33, %v1002_v26  ;;  %v6199_v35 = vcombine.low %v3792_v62, %v3795_v21  ;;  %v318_v22 = vmul.f32 %v8277_v12, %v279_v45  ;;  %v1348_v29 = vshrl.u32 %v1060_v41, 16  ;;  %1001 = vst [vmem:[#allocation2 + $0x88] sm:$0xf] %v791_v50  ;;  %6859 = vmatpush3.bf16.msra.mxu0 %v7387_v54  ;;  %v462_v18 = vld [vmem:[#allocation2 + $0x9c] sm:$0x1]  ;;  %v7399_v62 = vld [vmem:[#allocation9 + $0x1b0] sm:$0xff]  }
 0x12b   : > { %6597 = vmatmul.mubr.bf16.gmra.mrb[16].mxu1 %v6054_v34  ;;  %v1061_v52 = vld [vmem:[#allocation2 + $0x7c] sm:$0xf]  ;;  %v1098_v53 = vld [vmem:[#allocation2 + $0x80] sm:$0x1]  ;;  %v1351_v58 = vshll.u32 %v1060_v41, 16  ;;  %v3802_v1 = vsel %vm8368_vm14, %v3800_v49, %v3801_v56  ;;  %v319_v25 = vmul.f32 %v8277_v12, %v280_v11  ;;  %6860 = vmatprep.subr.bf16.mxu0 %v7391_v17  ;;  %v460_v2 = vsel %vm7998_vm4, 0, %v459_v51 }
 0x12c   : > { %1004 = vst [vmem:[#allocation2 + $0x8c] sm:$0x1] %v1003_v40  ;;  %v1357_v32 = vshll.u32 %v1061_v52, 16  ;;  %v1361_v60 = vshrl.u32 %v1061_v52, 16  ;;  %v1367_v61 = vshll.u32 %v1098_v53, 16  ;;  %6824 = vmatprep.mubr.bf16.mxu0 %v6199_v35  ;;  %v6200_v13 = vcombine.low %v3799_v48, %v3802_v1 }
 0x12d   : > { %v1350_v10 = vrot.slane %v1348_v29, 4  ;;  %v1353_v59 = vrot.slane %v1351_v58, 5  ;;  %v357_v43 = vadd.f32 %v8262_v37, %v318_v22  ;;  %v358_v55 = vadd.f32 %v8262_v37, %v319_v25  ;;  %461 = vst [vmem:[#allocation2 + $0x90] sm:$0x1] %v460_v2  ;;  %v7403_v22 = vld [vmem:[#allocation9 + $0x1b8] sm:$0xff]  }
 0x12e   : > { %v1359_v27 = vrot.slane %v1357_v32, 5  ;;  %v1363_v44 = vrot.slane %v1361_v60, 4  ;;  %v1369_v54 = vrot.slane %v1367_v61, 5  ;;  %6825 = vmatmul.mubr.bf16.gmra.mrb[4].mxu0 %v6200_v13  ;;  %v510_v6 = vsel %vm8006_vm6, 0, %v509_v30  ;;  %v512_v32 = vld [vmem:[#allocation2 + $0xa4] sm:$0x1] }
 0x12f   : > { %v1354_v46 = vor.u32 %v1353_v59, %v1350_v10  ;;  %v389_v5 = vmax.f32 %v357_v43, 0.0  ;;  %v390_v3 = vmax.f32 %v358_v55, 0.0  ;;  %6861 = vmatpush3.bf16.msra.mxu0 %v7391_v17  ;;  %511 = vst [vmem:[#allocation2 + $0x98] sm:$0x1] %v510_v6  ;;  %v320_v15 = vmul.f32 %v8277_v12, %v281_v63  ;;  %v3715_v10 = vld [vmem:[#allocation2 + $0x3c] sm:$0xe] }
 0x130   : > { %v1364_v16 = vor.u32 %v1363_v44, %v1359_v27  ;;  %v1062_v7 = vld [vmem:[#allocation2 + $0x84] sm:$0xf]  ;;  %v321_v26 = vmul.f32 %v8277_v12, %v282_v42  ;;  %v463_v45 = vsel %vm7998_vm4, 0, %v462_v18  ;;  %6862 = vmatprep.subr.bf16.mxu0 %v7395_v0  ;;  %v8457_v18 = vld [vmem:[#allocation9 + $0x1c0] sm:$0xff]   ;;  %v513_v44 = vsel %vm8006_vm6, 0, %v512_v32 }
 0x131   : > { %v1355_v8 = vrot.slane %v1354_v46, 4  ;;  %v1372_v4 = vshrl.u32 %v1062_v7, 16  ;;  %v1375_v56 = vshll.u32 %v1062_v7, 16  ;;  %v6337_v11 = vpack.c.bf16 %v389_v5, %v389_v5  ;;  %464 = vst [vmem:[#allocation2 + $0x9c] sm:$0x1] %v463_v45 }
 0x132   : > { %v1365_v19 = vrot.slane %v1364_v16, 4  ;;  %v1063_v28 = vld [vmem:[#allocation2 + $0x88] sm:$0xf]  ;;  %v6338_v20 = vpack.c.bf16 %v390_v3, %v390_v3  ;;  %v359_v17 = vadd.f32 %v8262_v37, %v320_v15  ;;  %v360_v34 = vadd.f32 %v8262_v37, %v321_v26  ;;  %514 = vst [vmem:[#allocation2 + $0xa4] sm:$0x1] %v513_v44 }
 0x133   : > { %v1099_v33 = vld [vmem:[#allocation2 + $0x8c] sm:$0x1]  ;;  %v1360_v12 = vsel %vm8020_vm8, %v1355_v8, %v1359_v27  ;;  %v1374_v21 = vrot.slane %v1372_v4, 4  ;;  %v1377_v48 = vrot.slane %v1375_v56, 5  ;;  %v1381_v49 = vshll.u32 %v1063_v28, 16  ;;  %6863 = vmatpush3.bf16.msra.mxu0 %v7395_v0 }
 0x134   : > { %v1370_v41 = vsel %vm8020_vm8, %v1365_v19, %v1369_v54  ;;  %v1385_v50 = vshrl.u32 %v1063_v28, 16  ;;  %v1391_v40 = vshll.u32 %v1099_v33, 16  ;;  %v794_v35 = vshrl.u32 %v6337_v11, 16  ;;  %6864 = vmatprep.subr.bf16.mxu0 %v7399_v62  ;;  %v1005_v13 = vld [vmem:[#allocation2 + $0x90] sm:$0xf] }
 0x135   : > { %v6055_v51 = vcombine.low %v1360_v12, %v1370_v41  ;;  %v1378_v52 = vor.u32 %v1377_v48, %v1374_v21  ;;  %v1383_v53 = vrot.slane %v1381_v49, 5  ;;  %v797_v29 = vshll.u32 %v6337_v11, 16  ;;  %v3716_v45 = vld [vmem:[#allocation2 + $0x48] sm:$0xe]  ;;  %v465_v12 = vld [vmem:[#allocation2 + $0xa8] sm:$0x1] }
 0x136   : > { %v1387_v37 = vrot.slane %v1385_v50, 4  ;;  %v1393_v58 = vrot.slane %v1391_v40, 5  ;;  %v796_v1 = vrot.slane %v794_v35, 7  ;;  %v802_v25 = vshrl.u32 %v6338_v20, 16  ;;  %v1009_v42 = vld [vmem:[#allocation2 + $0x98] sm:$0x1] }
 0x137   : > { %6600 = vmatprep.mubr.bf16.mxu1 %v6055_v51  ;;  %v1379_v60 = vrot.slane %v1378_v52, 4  ;;  %v805_v61 = vshll.u32 %v6338_v20, 16  ;;  %v391_v30 = vmax.f32 %v359_v17, 0.0  ;;  %v392_v0 = vmax.f32 %v360_v34, 0.0  ;;  %6865 = vmatpush3.bf16.msra.mxu0 %v7399_v62  ;;  %v283_v11 = vld [vmem:[%s7982_s12 + $0xd0] sm:$0xff]  ;;  %v284_v34 = vld [vmem:[%s7982_s12 + $0xd8] sm:$0xff] }
 0x138   : > { %v1388_v59 = vor.u32 %v1387_v37, %v1383_v53  ;;  %v799_v43 = vor.u32 %v797_v29, %v796_v1  ;;  %v800_v55 = vrot.slane %v796_v1, 4  ;;  %v804_v63 = vrot.slane %v802_v25, 7  ;;  %6866 = vmatprep.subr.bf16.mxu0 %v7403_v22  ;;  %v7477_v20 = vld [vmem:[#allocation2 + $0x40] sm:$0xf]  ;;  %v1012_v21 = vld [vmem:[#allocation2 + $0x9c] sm:$0xf] }
 0x139   : > { %v1384_v27 = vsel %vm8020_vm8, %v1379_v60, %v1383_v53  ;;  %v6339_v54 = vpack.c.bf16 %v391_v30, %v391_v30  ;;  %v6340_v2 = vpack.c.bf16 %v392_v0, %v392_v0  ;;  %v6185_v56 = vrot.slane %v3715_v10, 9  ;;  %v7478_v48 = vld [vmem:[#allocation2 + $0x44] sm:$0x1]  ;;  %v515_v1 = vld [vmem:[#allocation2 + $0xb0] sm:$0x1]  ;;  %v285_v25 = vld [vmem:[%s7982_s12 + $0xe0] sm:$0xff] }
 0x13a   : > { %v1389_v46 = vrot.slane %v1388_v59, 4  ;;  %v807_v5 = vor.u32 %v805_v61, %v804_v63  ;;  %v809_v3 = vrot.slane %v804_v63, 4  ;;  %v1006_v6 = vsel %vm8066_vm11, %v799_v43, %v1005_v13  ;;  %v1016_v32 = vld [vmem:[#allocation2 + $0xa4] sm:$0x1]  ;;  %v8485_v60 = vld [vmem:[#allocation6] ss:$0 sm:$0xff] }
 0x13b   : > { %1007 = vst [vmem:[#allocation2 + $0x90] sm:$0xf] %v1006_v6  ;;  %v811_v16 = vshrl.u32 %v6339_v54, 16  ;;  %v814_v7 = vshll.u32 %v6339_v54, 16  ;;  %v819_v15 = vshrl.u32 %v6340_v2, 16  ;;  %v822_v26 = vshll.u32 %v6340_v2, 16  ;;  %6867 = vmatpush3.bf16.msra.mxu0 %v7403_v22 }
 0x13c   : > { %v1394_v62 = vsel %vm8020_vm8, %v1389_v46, %v1393_v58  ;;  %v808_v8 = vsel %vm8057_vm10, %v800_v55, %v807_v5  ;;  %v1010_v4 = vsel %vm7998_vm4, %v809_v3, %v1009_v42  ;;  %6900 = vmatprep.subr.bf16.mxu0 %v8457_v18  ;;  %v3805_v17 = vrot.slane %v7477_v20, 5  ;;  %v286_v55 = vld [vmem:[%s7982_s12 + $0xe8] sm:$0xff]  ;;  %v8504_v46 = vld [vmem:[#allocation8] ss:$0 sm:$0xff] }
 0x13d   : > { %v6056_v19 = vcombine.low %v1384_v27, %v1394_v62  ;;  %1008 = vst [vmem:[#allocation2 + $0x94] sm:$0xf] %v808_v8  ;;  %1011 = vst [vmem:[#allocation2 + $0x98] sm:$0x1] %v1010_v4  ;;  %v813_v28 = vrot.slane %v811_v16, 7  ;;  %v821_v33 = vrot.slane %v819_v15, 7  ;;  %v322_v61 = vmul.f32 %v8485_v60, %v283_v11 }
 0x13e   : > { %v3808_v49 = vrot.slane %v7478_v48, 5  ;;  %v6186_v41 = vrot.slane %v3716_v45, 9  ;;  %v3812_v50 = vrot.slane %v8284_v39, 5  ;;  %v3815_v40 = vrot.slane %v8286_v36, 5 }
 0x13f   : > { %6601 = vmatmul.mubr.bf16.gmra.mrb[20].mxu1 %v6056_v19  ;;  %v816_v35 = vor.u32 %v814_v7, %v813_v28  ;;  %v817_v22 = vrot.slane %v813_v28, 4  ;;  %v824_v51 = vor.u32 %v822_v26, %v821_v33  ;;  %v826_v52 = vrot.slane %v821_v33, 4 }
 0x140   : > { %v3806_v53 = vsel %vm8368_vm14, %v6185_v56, %v3805_v17  ;;  %v3807_v29 = vrot.slane %v3805_v17, 4  ;;  %v3813_v37 = vsel %vm8368_vm14, %v6186_v41, %v3812_v50  ;;  %v3814_v58 = vrot.slane %v3812_v50, 4 }
 0x141   : > { %v825_v39 = vsel %vm8057_vm10, %v817_v22, %v824_v51  ;;  %v1013_v36 = vsel %vm8066_vm11, %v816_v35, %v1012_v21  ;;  %v323_v13 = vmul.f32 %v8485_v60, %v284_v34  ;;  %v1017_v0 = vsel %vm7998_vm4, %v826_v52, %v1016_v32 }
 0x142   : > { %v8489_v30 = vld [vmem:[#allocation2 + $0x90] sm:$0xf]  ;;  %1014 = vst [vmem:[#allocation2 + $0x9c] sm:$0xf] %v1013_v36  ;;  %1015 = vst [vmem:[#allocation2 + $0xa0] sm:$0xf] %v825_v39  ;;  %v3809_v10 = vsel %vm8368_vm14, %v3807_v29, %v3808_v49  ;;  %v3816_v59 = vsel %vm8368_vm14, %v3814_v58, %v3815_v40  ;;  %v361_v5 = vadd.f32 %v8504_v46, %v322_v61 }
 0x143   : > { %v466_v43 = vsel %vm7998_vm4, 0, %v465_v12  ;;  %v1396_v63 = vshrl.u32 %v8489_v30, 16  ;;  %v1399_v42 = vshll.u32 %v8489_v30, 16  ;;  %1018 = vst [vmem:[#allocation2 + $0xa4] sm:$0x1] %v1017_v0  ;;  %v6201_v27 = vcombine.low %v3806_v53, %v3809_v10 }
 0x144   : > { %v6202_v44 = vcombine.low %v3813_v37, %v3816_v59  ;;  %467 = vst [vmem:[#allocation2 + $0xa8] sm:$0x1] %v466_v43  ;;  %v8502_v54 = vld [vmem:[#allocation2 + $0x94] sm:$0xf]  ;;  %v1100_v2 = vld [vmem:[#allocation2 + $0x98] sm:$0x1]  ;;  %v362_v3 = vadd.f32 %v8504_v46, %v323_v13  ;;  %v324_v16 = vmul.f32 %v8485_v60, %v285_v25  ;;  %v325_v56 = vmul.f32 %v8485_v60, %v286_v55 }
 0x145   : > { %v516_v6 = vsel %vm8006_vm6, 0, %v515_v1  ;;  %v1398_v7 = vrot.slane %v1396_v63, 4  ;;  %v1401_v15 = vrot.slane %v1399_v42, 5  ;;  %v1405_v26 = vshll.u32 %v8502_v54, 16  ;;  %6828 = vmatprep.mubr.bf16.mxu0 %v6201_v27  ;;  %v468_v10 = vld [vmem:[#allocation2 + $0xb4] sm:$0x1] }
 0x146   : > { %v1409_v45 = vshrl.u32 %v8502_v54, 16  ;;  %517 = vst [vmem:[#allocation2 + $0xb0] sm:$0x1] %v516_v6  ;;  %v1415_v62 = vshll.u32 %v1100_v2, 16  ;;  %6829 = vmatmul.mubr.bf16.gmra.mrb[8].mxu0 %v6202_v44  ;;  %v393_v8 = vmax.f32 %v361_v5, 0.0  ;;  %v394_v4 = vmax.f32 %v362_v3, 0.0 }
 0x147   : > { %v1402_v11 = vor.u32 %v1401_v15, %v1398_v7  ;;  %v1407_v19 = vrot.slane %v1405_v26, 5  ;;  %v363_v33 = vadd.f32 %v8504_v46, %v324_v16  ;;  %v364_v41 = vadd.f32 %v8504_v46, %v325_v56  ;;  %v518_v27 = vld [vmem:[#allocation2 + $0xbc] sm:$0x1]  ;;  %v3717_v16 = vld [vmem:[#allocation2 + $0x54] sm:$0xe] }
 0x148   : > { %v1411_v28 = vrot.slane %v1409_v45, 4  ;;  %v1417_v20 = vrot.slane %v1415_v62, 5  ;;  %v6341_v17 = vpack.c.bf16 %v393_v8, %v393_v8  ;;  %v6342_v34 = vpack.c.bf16 %v394_v4, %v394_v4 }
 0x149   : > { %v1403_v12 = vrot.slane %v1402_v11, 4  ;;  %v8515_v48 = vld [vmem:[#allocation2 + $0x9c] sm:$0xf]  ;;  %v8517_v49 = vld [vmem:[#allocation2 + $0xa0] sm:$0xf]  ;;  %v395_v50 = vmax.f32 %v363_v33, 0.0 }
 0x14a   : > { %v1412_v21 = vor.u32 %v1411_v28, %v1407_v19  ;;  %v1101_v40 = vld [vmem:[#allocation2 + $0xa4] sm:$0x1]  ;;  %v1420_v35 = vshrl.u32 %v8515_v48, 16  ;;  %v1423_v22 = vshll.u32 %v8515_v48, 16  ;;  %v1429_v51 = vshll.u32 %v8517_v49, 16 }
 0x14b   : > { %v1433_v52 = vshrl.u32 %v8517_v49, 16  ;;  %v1408_v53 = vsel %vm8020_vm8, %v1403_v12, %v1407_v19  ;;  %v1439_v37 = vshll.u32 %v1101_v40, 16  ;;  %v828_v58 = vshrl.u32 %v6341_v17, 16  ;;  %v1019_v42 = vld [vmem:[#allocation2 + $0xa8] sm:$0xf] }
 0x14c   : > { %v1413_v29 = vrot.slane %v1412_v21, 4  ;;  %v1422_v1 = vrot.slane %v1420_v35, 4  ;;  %v1425_v25 = vrot.slane %v1423_v22, 5  ;;  %v1431_v39 = vrot.slane %v1429_v51, 5  ;;  %v3718_v11 = vld [vmem:[#allocation2 + $0x60] sm:$0xe] }
 0x14d   : > { %v1435_v36 = vrot.slane %v1433_v52, 4  ;;  %v1441_v61 = vrot.slane %v1439_v37, 5  ;;  %v830_v13 = vrot.slane %v828_v58, 7  ;;  %v831_v0 = vshll.u32 %v6341_v17, 16  ;;  %v1023_v3 = vld [vmem:[#allocation2 + $0xb0] sm:$0x1] }
 0x14e   : > { %v1418_v32 = vsel %vm8020_vm8, %v1413_v29, %v1417_v20  ;;  %v1426_v43 = vor.u32 %v1425_v25, %v1422_v1  ;;  %v836_v63 = vshrl.u32 %v6342_v34, 16  ;;  %v839_v5 = vshll.u32 %v6342_v34, 16  ;;  %v3719_v22 = vld [vmem:[#allocation2 + $0x6c] sm:$0xe]  ;;  %v2982_v37 = vld [vmem:[#allocation2 + $0x70] sm:$0xf] }
 0x14f   : > { %v6057_v59 = vcombine.low %v1408_v53, %v1418_v32  ;;  %v1436_v55 = vor.u32 %v1435_v36, %v1431_v39  ;;  %v833_v44 = vor.u32 %v831_v0, %v830_v13  ;;  %v834_v2 = vrot.slane %v830_v13, 4  ;;  %v7481_v53 = vld [vmem:[#allocation2 + $0x58] sm:$0xf]  ;;  %v7482_v58 = vld [vmem:[#allocation2 + $0x5c] sm:$0x1] }
 0x150   : > { %v396_v6 = vmax.f32 %v364_v41, 0.0  ;;  %v1427_v7 = vrot.slane %v1426_v43, 4  ;;  %v838_v26 = vrot.slane %v836_v63, 7  ;;  %v469_v45 = vsel %vm7998_vm4, 0, %v468_v10 }
 0x151   : > { %6604 = vmatprep.mubr.bf16.mxu1 %v6057_v59  ;;  %v1437_v15 = vrot.slane %v1436_v55, 4  ;;  %v1020_v62 = vsel %vm8066_vm11, %v833_v44, %v1019_v42  ;;  %470 = vst [vmem:[#allocation2 + $0xb4] sm:$0x1] %v469_v45  ;;  %v519_v8 = vsel %vm8006_vm6, 0, %v518_v27  ;;  %v6343_v4 = vpack.c.bf16 %v395_v50, %v395_v50 }
 0x152   : > { %v6344_v56 = vpack.c.bf16 %v396_v6, %v396_v6  ;;  %v1432_v19 = vsel %vm8020_vm8, %v1427_v7, %v1431_v39  ;;  %v841_v33 = vor.u32 %v839_v5, %v838_v26  ;;  %v843_v20 = vrot.slane %v838_v26, 4  ;;  %1021 = vst [vmem:[#allocation2 + $0xa8] sm:$0xf] %v1020_v62  ;;  %520 = vst [vmem:[#allocation2 + $0xbc] sm:$0x1] %v519_v8 }
 0x153   : > { %v1442_v28 = vsel %vm8020_vm8, %v1437_v15, %v1441_v61  ;;  %v845_v34 = vshrl.u32 %v6343_v4, 16  ;;  %v848_v12 = vshll.u32 %v6343_v4, 16  ;;  %v6187_v35 = vrot.slane %v3717_v16, 9  ;;  %v2983_v7 = vld [vmem:[#allocation2 + $0x74] sm:$0x1] }
 0x154   : > { %v6058_v17 = vcombine.low %v1432_v19, %v1442_v28  ;;  %v853_v21 = vshrl.u32 %v6344_v56, 16  ;;  %v842_v41 = vsel %vm8057_vm10, %v834_v2, %v841_v33  ;;  %v1024_v50 = vsel %vm7998_vm4, %v843_v20, %v1023_v3 }
 0x155   : > { %v856_v40 = vshll.u32 %v6344_v56, 16  ;;  %1022 = vst [vmem:[#allocation2 + $0xac] sm:$0xf] %v842_v41  ;;  %1025 = vst [vmem:[#allocation2 + $0xb0] sm:$0x1] %v1024_v50  ;;  %v847_v51 = vrot.slane %v845_v34, 7 }
 0x156   : > { %6605 = vmatmul.mubr.bf16.gmra.mrb[24].mxu1 %v6058_v17  ;;  %v855_v52 = vrot.slane %v853_v21, 7  ;;  %v3819_v29 = vrot.slane %v7481_v53, 5  ;;  %v3822_v1 = vrot.slane %v7482_v58, 5  ;;  %v6188_v25 = vrot.slane %v3718_v11, 9  ;;  %v3720_v50 = vld [vmem:[#allocation2 + $0x78] sm:$0xe] }
 0x157   : > { %v3826_v39 = vrot.slane %v8332_v14, 5  ;;  %v3829_v36 = vrot.slane %v8347_v47, 5  ;;  %v850_v32 = vor.u32 %v848_v12, %v847_v51  ;;  %v851_v61 = vrot.slane %v847_v51, 4 }
 0x158   : > { %v858_v13 = vor.u32 %v856_v40, %v855_v52  ;;  %v860_v0 = vrot.slane %v855_v52, 4  ;;  %v1026_v10 = vld [vmem:[#allocation2 + $0xb4] sm:$0xf]  ;;  %v3820_v59 = vsel %vm8368_vm14, %v6187_v35, %v3819_v29  ;;  %v3821_v43 = vrot.slane %v3819_v29, 4 }
 0x159   : > { %v3827_v55 = vsel %vm8368_vm14, %v6188_v25, %v3826_v39  ;;  %v3828_v63 = vrot.slane %v3826_v39, 4  ;;  %v8548_v42 = vld [vmem:[#allocation2 + $0xa8] sm:$0xf]  ;;  %v1027_v47 = vsel %vm8066_vm11, %v850_v32, %v1026_v10  ;;  %v1030_v27 = vld [vmem:[#allocation2 + $0xbc] sm:$0x1]  ;;  %v6189_v44 = vrot.slane %v3719_v22, 9 }
 0x15a   : > { %v859_v14 = vsel %vm8057_vm10, %v851_v61, %v858_v13  ;;  %v3833_v2 = vrot.slane %v2982_v37, 5  ;;  %v1444_v5 = vshrl.u32 %v8548_v42, 16  ;;  %v1447_v3 = vshll.u32 %v8548_v42, 16  ;;  %1028 = vst [vmem:[#allocation2 + $0xb4] sm:$0xf] %v1027_v47 }
 0x15b   : > { %1029 = vst [vmem:[#allocation2 + $0xb8] sm:$0xf] %v859_v14  ;;  %v1031_v6 = vsel %vm7998_vm4, %v860_v0, %v1030_v27  ;;  %v3823_v16 = vsel %vm8368_vm14, %v3821_v43, %v3822_v1  ;;  %v3830_v26 = vsel %vm8368_vm14, %v3828_v63, %v3829_v36  ;;  %v3836_v17 = vrot.slane %v2983_v7, 5  ;;  %v8570_v22 = vld [vmem:[#allocation2 + $0x7c] sm:$0xf] }
 0x15c   : > { %1032 = vst [vmem:[#allocation2 + $0xbc] sm:$0x1] %v1031_v6  ;;  %v6203_v15 = vcombine.low %v3820_v59, %v3823_v16  ;;  %v3835_v45 = vrot.slane %v3833_v2, 4  ;;  %v8562_v62 = vld [vmem:[#allocation2 + $0xac] sm:$0xf]  ;;  %v1446_v4 = vrot.slane %v1444_v5, 4  ;;  %v6204_v11 = vcombine.low %v3827_v55, %v3830_v26 }
 0x15d   : > { %v1102_v8 = vld [vmem:[#allocation2 + $0xb0] sm:$0x1]  ;;  %v1449_v56 = vrot.slane %v1447_v3, 5  ;;  %v3834_v19 = vsel %vm8368_vm14, %v6189_v44, %v3833_v2  ;;  %v1453_v28 = vshll.u32 %v8562_v62, 16  ;;  %v1457_v33 = vshrl.u32 %v8562_v62, 16 }
 0x15e   : > { %v1463_v20 = vshll.u32 %v1102_v8, 16  ;;  %6832 = vmatprep.mubr.bf16.mxu0 %v6203_v15  ;;  %v3837_v41 = vsel %vm8368_vm14, %v3835_v45, %v3836_v17  ;;  %v8579_v39 = vld [vmem:[#allocation2 + $0x80] sm:$0x1]  ;;  %v6190_v36 = vrot.slane %v3720_v50, 9  ;;  %v3721_v32 = vld [vmem:[#allocation2 + $0x84] sm:$0xe] }
 0x15f   : > { %v1450_v34 = vor.u32 %v1449_v56, %v1446_v4  ;;  %6833 = vmatmul.mubr.bf16.gmra.mrb[12].mxu0 %v6204_v11  ;;  %v1455_v12 = vrot.slane %v1453_v28, 5  ;;  %v1459_v21 = vrot.slane %v1457_v33, 4  ;;  %v6205_v35 = vcombine.low %v3834_v19, %v3837_v41  ;;  %v2988_v59 = vld [vmem:[#allocation2 + $0x88] sm:$0xf]  ;;  %v2989_v47 = vld [vmem:[#allocation2 + $0x8c] sm:$0x1] }
 0x160   : > { %v1465_v52 = vrot.slane %v1463_v20, 5  ;;  %v3840_v14 = vrot.slane %v8570_v22, 5  ;;  %v2991_v5 = vld [vmem:[#allocation2 + $0x94] sm:$0xf]  ;;  %v3722_v3 = vld [vmem:[#allocation2 + $0x90] sm:$0xe] }
 0x161   : > { %v1451_v40 = vrot.slane %v1450_v34, 4  ;;  %v1460_v51 = vor.u32 %v1459_v21, %v1455_v12  ;;  %v8572_v53 = vld [vmem:[#allocation2 + $0xb4] sm:$0xf]  ;;  %6836 = vmatprep.mubr.bf16.mxu0 %v6205_v35  ;;  %v3843_v45 = vrot.slane %v8579_v39, 5  ;;  %v6191_v8 = vrot.slane %v3721_v32, 9 }
 0x162   : > { %v8574_v29 = vld [vmem:[#allocation2 + $0xb8] sm:$0xf]  ;;  %v1468_v58 = vshrl.u32 %v8572_v53, 16  ;;  %v1471_v1 = vshll.u32 %v8572_v53, 16  ;;  %v3841_v7 = vsel %vm8368_vm14, %v6190_v36, %v3840_v14  ;;  %v3842_v15 = vrot.slane %v3840_v14, 4  ;;  %v287_v14 = vld [vmem:[%s7982_s12 + $0xf0] sm:$0xff] }
 0x163   : > { %v1103_v37 = vld [vmem:[#allocation2 + $0xbc] sm:$0x1]  ;;  %v1477_v25 = vshll.u32 %v8574_v29, 16  ;;  %v1456_v61 = vsel %vm8020_vm8, %v1451_v40, %v1455_v12  ;;  %v1461_v13 = vrot.slane %v1460_v51, 4  ;;  %v1481_v0 = vshrl.u32 %v8574_v29, 16 }
 0x164   : > { %v1487_v10 = vshll.u32 %v1103_v37, 16  ;;  %v1470_v43 = vrot.slane %v1468_v58, 4  ;;  %v1473_v55 = vrot.slane %v1471_v1, 5  ;;  %v3847_v4 = vrot.slane %v2988_v59, 5  ;;  %v2992_v56 = vld [vmem:[#allocation2 + $0x98] sm:$0x1] }
 0x165   : > { %v1479_v63 = vrot.slane %v1477_v25, 5  ;;  %v1466_v27 = vsel %vm8020_vm8, %v1461_v13, %v1465_v52  ;;  %v1483_v44 = vrot.slane %v1481_v0, 4  ;;  %v3850_v19 = vrot.slane %v2989_v47, 5  ;;  %v2994_v20 = vld [vmem:[#allocation2 + $0xa0] sm:$0xf]  ;;  %v288_v47 = vld [vmem:[%s7982_s12 + $0xf8] sm:$0xff] }
 0x166   : > { %v1489_v2 = vrot.slane %v1487_v10, 5  ;;  %v6059_v6 = vcombine.low %v1456_v61, %v1466_v27  ;;  %v1474_v16 = vor.u32 %v1473_v55, %v1470_v43  ;;  %v6192_v28 = vrot.slane %v3722_v3, 9  ;;  %v2995_v17 = vld [vmem:[#allocation2 + $0xa4] sm:$0x1]  ;;  %v3723_v50 = vld [vmem:[#allocation2 + $0x9c] sm:$0xe] }
 0x167   : > { %v1484_v26 = vor.u32 %v1483_v44, %v1479_v63  ;;  %v3854_v33 = vrot.slane %v2991_v5, 5  ;;  %v3844_v12 = vsel %vm8368_vm14, %v3842_v15, %v3843_v45  ;;  %v3848_v21 = vsel %vm8368_vm14, %v6191_v8, %v3847_v4  ;;  %v3724_v40 = vld [vmem:[#allocation2 + $0xa8] sm:$0xe]  ;;  %v2997_v37 = vld [vmem:[#allocation2 + $0xac] sm:$0xf] }
 0x168   : > { %6608 = vmatprep.mubr.bf16.mxu1 %v6059_v6  ;;  %v1475_v11 = vrot.slane %v1474_v16, 4  ;;  %v3849_v41 = vrot.slane %v3847_v4, 4  ;;  %v6206_v51 = vcombine.low %v3841_v7, %v3844_v12  ;;  %v7483_v1 = vld [vmem:[#allocation2] sm:$0xf]  ;;  %v8598_v25 = vld [vmem:[#allocation2 + $0x4] sm:$0xf] }
 0x169   : > { %v1485_v34 = vrot.slane %v1484_v26, 4  ;;  %v3856_v52 = vrot.slane %v3854_v33, 4  ;;  %v6069_v36 = vcombine.low %v7483_v1, %v8598_v25  ;;  %v3857_v61 = vrot.slane %v2992_v56, 5  ;;  %v2998_v13 = vld [vmem:[#allocation2 + $0xb0] sm:$0x1] }
 0x16a   : > { %v1480_v35 = vsel %vm8020_vm8, %v1475_v11, %v1479_v63  ;;  %v3851_v32 = vsel %vm8368_vm14, %v3849_v41, %v3850_v19  ;;  %6837 = vmatmul.mubr.bf16.gmra.mrb[16].mxu0 %v6206_v51  ;;  %v3855_v59 = vsel %vm8368_vm14, %v6192_v28, %v3854_v33  ;;  %v6193_v43 = vrot.slane %v3723_v50, 9  ;;  %v3000_v55 = vld [vmem:[#allocation2 + $0xb8] sm:$0xf]  ;;  %v3001_v63 = vld [vmem:[#allocation2 + $0xbc] sm:$0x1] }
 0x16b   : > { %v1490_v58 = vsel %vm8020_vm8, %v1485_v34, %v1489_v2  ;;  %v6207_v10 = vcombine.low %v3848_v21, %v3851_v32  ;;  %v3858_v27 = vsel %vm8368_vm14, %v3856_v52, %v3857_v61  ;;  %v3861_v44 = vrot.slane %v2994_v20, 5  ;;  %v3725_v5 = vld [vmem:[#allocation2 + $0xb4] sm:$0xe]  ;;  %v471_v16 = vld [vmem:[#allocation2 + $0xc0] sm:$0x1] }
 0x16c   : > { %v6060_v0 = vcombine.low %v1480_v35, %v1490_v58  ;;  %v3864_v2 = vrot.slane %v2995_v17, 5  ;;  %v6194_v3 = vrot.slane %v3724_v40, 9  ;;  %v3868_v6 = vrot.slane %v2997_v37, 5  ;;  %v521_v19 = vld [vmem:[#allocation2 + $0xc8] sm:$0x1] }
 0x16d   : > { %6840 = vmatprep.mubr.bf16.mxu0 %v6207_v10  ;;  %v6208_v7 = vcombine.low %v3855_v59, %v3858_v27  ;;  %v3862_v15 = vsel %vm8368_vm14, %v6193_v43, %v3861_v44  ;;  %v3863_v26 = vrot.slane %v3861_v44, 4  ;;  %v3871_v45 = vrot.slane %v2998_v13, 5  ;;  %v7485_v34 = vld [vmem:[#allocation2 + $0xc] sm:$0xf]  ;;  %v8617_v12 = vld [vmem:[#allocation2 + $0x10] sm:$0xf] }
 0x16e   : > { %6609 = vmatmul.mubr.bf16.gmra.mrb[28].mxu1 %v6060_v0  ;;  %v3870_v8 = vrot.slane %v3868_v6, 4  ;;  %v6195_v4 = vrot.slane %v3725_v5, 9  ;;  %v3875_v56 = vrot.slane %v3000_v55, 5  ;;  %v3878_v11 = vrot.slane %v3001_v63, 5  ;;  %v7487_v40 = vld [vmem:[#allocation2 + $0x18] sm:$0xf] }
 0x16f   : > { %6628 = vmatprep.mubr.bf16.mxu1 %v6069_v36  ;;  %v3865_v28 = vsel %vm8368_vm14, %v3863_v26, %v3864_v2  ;;  %v326_v33 = vmul.f32 %v8485_v60, %v287_v14  ;;  %v327_v20 = vmul.f32 %v8485_v60, %v288_v47  ;;  %v472_v17 = vsel %vm7998_vm4, 0, %v471_v16  ;;  %v8620_v35 = vld [vmem:[#allocation2 + $0x1c] sm:$0xf]  ;;  %v7394_v58 = vld [vmem:[#allocation9 + $0x88] sm:$0xff]   ;;  %v7398_v59 = vld [vmem:[#allocation9 + $0x90] sm:$0xff]  }
 0x170   : > { %v6070_v21 = vcombine.low %v7485_v34, %v8617_v12  ;;  %v6209_v41 = vcombine.low %v3862_v15, %v3865_v28  ;;  %v3877_v50 = vrot.slane %v3875_v56, 4  ;;  %473 = vst [vmem:[#allocation2 + $0xc0] sm:$0x1] %v472_v17  ;;  %v6071_v51 = vcombine.low %v7487_v40, %v8620_v35  ;;  %v7490_v44 = vld [vmem:[#allocation2 + $0x24] sm:$0xf]  ;;  %v7406_v17 = vld [vmem:[#allocation9 + $0xa0] sm:$0xff]  }
 0x171   : > { %v365_v52 = vadd.f32 %v8504_v46, %v326_v33  ;;  %v366_v60 = vadd.f32 %v8504_v46, %v327_v20  ;;  %v522_v37 = vsel %vm8006_vm6, 0, %v521_v19  ;;  %v3869_v1 = vsel %vm8368_vm14, %v6194_v3, %v3868_v6  ;;  %v8635_v2 = vld [vmem:[#allocation2 + $0x28] sm:$0xf]  ;;  %v7492_v3 = vld [vmem:[#allocation2 + $0x30] sm:$0xf] }
 0x172   : > { %6841 = vmatmul.mubr.bf16.gmra.mrb[20].mxu0 %v6208_v7  ;;  %v3872_v36 = vsel %vm8368_vm14, %v3870_v8, %v3871_v45  ;;  %523 = vst [vmem:[#allocation2 + $0xc8] sm:$0x1] %v522_v37  ;;  %v3876_v32 = vsel %vm8368_vm14, %v6195_v4, %v3875_v56  ;;  %v3879_v61 = vsel %vm8368_vm14, %v3877_v50, %v3878_v11  ;;  %v8638_v6 = vld [vmem:[#allocation2 + $0x34] sm:$0xf]  ;;  %v7494_v34 = vld [vmem:[#allocation2 + $0x3c] sm:$0xf] }
 0x173   : > { %6844 = vmatprep.mubr.bf16.mxu0 %v6209_v41  ;;  %v397_v46 = vmax.f32 %v365_v52, 0.0  ;;  %v398_v13 = vmax.f32 %v366_v60, 0.0  ;;  %v6210_v43 = vcombine.low %v3869_v1, %v3872_v36  ;;  %v6211_v55 = vcombine.low %v3876_v32, %v3879_v61  ;;  %v7402_v7 = vld [vmem:[#allocation9 + $0x98] sm:$0xff]   ;;  %v7496_v50 = vld [vmem:[#allocation2 + $0x48] sm:$0xf]  ;;  %v7418_v32 = vld [vmem:[#allocation9 + $0xb0] sm:$0xff]  }
 0x174   : > { %v6072_v5 = vcombine.low %v7490_v44, %v8635_v2  ;;  %v6073_v16 = vcombine.low %v7492_v3, %v8638_v6  ;;  %v8650_v40 = vld [vmem:[#allocation2 + $0x4c] sm:$0xf]  ;;  %v3231_v9 = vshll.u32 %v8570_v22, 16  ;;  %v7498_v61 = vld [vmem:[#allocation2 + $0x54] sm:$0xf]  ;;  %v2139_v3 = vrot.slane %v8598_v25, 5 }
 0x175   : > { %v6345_v0 = vpack.c.bf16 %v397_v46, %v397_v46  ;;  %v6346_v10 = vpack.c.bf16 %v398_v13, %v398_v13  ;;  %v6075_v24 = vcombine.low %v7496_v50, %v8650_v40  ;;  %v8655_v46 = vld [vmem:[#allocation2 + $0x58] sm:$0xf]  ;;  %v2160_v50 = vrot.slane %v8635_v2, 5  ;;  %v4598_v2 = vld [vmem:[#allocation2 + $0x20] sm:$0x1] }
 0x176   : > { %6629 = vmatmul.mubr.bf16.vlgmr.msra.gmra.mrb[0].mxu1 %v6070_v21  ;;  %v8647_v21 = vld [vmem:[#allocation2 + $0x40] sm:$0xf]  ;;  %v6076_v13 = vcombine.low %v7498_v61, %v8655_v46  ;;  %v2141_v25 = vrot.slane %v2139_v3, 4 }
 0x177   : > { %6661 = vmatpush3.bf16.msra.mxu1 %v7489_v23  ;;  %6632 = vmatprep.mubr.bf16.mxu1 %v6071_v51  ;;  %v862_v63 = vshrl.u32 %v6345_v0, 16  ;;  %v865_v14 = vshll.u32 %v6345_v0, 16  ;;  %v870_v47 = vshrl.u32 %v6346_v10, 16  ;;  %v873_v27 = vshll.u32 %v6346_v10, 16  ;;  %v1033_v45 = vld [vmem:[#allocation2 + $0xc0] sm:$0xf] }
 0x178   : > { %6662 = vmatprep.subr.bf16.mxu1 %v7394_v58  ;;  %v6074_v41 = vcombine.low %v7494_v34, %v8647_v21  ;;  %v3235_v51 = vshrl.u32 %v8570_v22, 16  ;;  %v8660_v0 = vrot.slane %v3231_v9, 5  ;;  %v7506_v9 = vld [vmem:[#allocation2 + $0x78] sm:$0xf] }
 0x179   : > { %v864_v15 = vrot.slane %v862_v63, 7  ;;  %v872_v26 = vrot.slane %v870_v47, 7  ;;  %v1037_v8 = vld [vmem:[#allocation2 + $0xc8] sm:$0x1]  ;;  %v7424_v47 = vld [vmem:[#allocation9 + $0xb8] sm:$0xff]  }
 0x17a   : > { %6845 = vmatmul.mubr.bf16.gmra.mrb[24].mxu0 %v6210_v43  ;;  %9674 = vst [vmem:[#allocation16_spill] sm:$0xff] %v8660_v0  ;;  %v3237_v10 = vrot.slane %v3235_v51, 4  ;;  %v8662_v43 = vld [vmem:[#allocation2 + $0x64] sm:$0xf]  ;;  %v8684_v51 = vld [vmem:[#allocation2 + $0x7c] sm:$0xf] }
 0x17b   : > { %6663 = vmatpush3.bf16.msra.mxu1 %v7394_v58  ;;  %6848 = vmatprep.mubr.bf16.mxu0 %v6211_v55  ;;  %v867_v4 = vor.u32 %v865_v14, %v864_v15  ;;  %v868_v56 = vrot.slane %v864_v15, 4  ;;  %v875_v11 = vor.u32 %v873_v27, %v872_v26  ;;  %v877_v19 = vrot.slane %v872_v26, 4  ;;  %v7407_v14 = vld [vmem:[#allocation2 + $0x18] sm:$0xff]  }
 0x17c   : > { %6664 = vmatprep.subr.bf16.mxu1 %v7398_v59  ;;  %v3241_v27 = vshll.u32 %v8579_v39, 16  ;;  %v2146_v15 = vrot.slane %v8617_v12, 5  ;;  %v3238_v26 = vor.u32 %v3237_v10, %v8660_v0  ;;  %v2153_v12 = vrot.slane %v8620_v35, 5  ;;  %v8689_v35 = vld [vmem:[#allocation2 + $0x88] sm:$0xf] }
 0x17d   : > { %v876_v28 = vsel %vm8057_vm10, %v868_v56, %v875_v11  ;;  %v1034_v33 = vsel %vm8066_vm11, %v867_v4, %v1033_v45  ;;  %v1038_v20 = vsel %vm7998_vm4, %v877_v19, %v1037_v8  ;;  %v2087_v45 = vld [vmem:[#allocation2 + $0xc] sm:$0xe]  ;;  %v2088_v8 = vld [vmem:[#allocation2 + $0x18] sm:$0xe]  ;;  %v7503_v4 = vld [vmem:[#allocation2 + $0x14] sm:$0x1] }
 0x17e   : > { %6633 = vmatmul.mubr.bf16.gmra.mrb[4].mxu1 %v6072_v5  ;;  %1035 = vst [vmem:[#allocation2 + $0xc0] sm:$0xf] %v1034_v33  ;;  %1036 = vst [vmem:[#allocation2 + $0xc4] sm:$0xf] %v876_v28  ;;  %v2086_v5 = vld [vmem:[#allocation2] sm:$0xe] }
 0x17f   : > { %6636 = vmatprep.mubr.bf16.mxu1 %v6073_v16  ;;  %6665 = vmatpush3.bf16.msra.mxu1 %v7398_v59  ;;  %1039 = vst [vmem:[#allocation2 + $0xc8] sm:$0x1] %v1038_v20  ;;  %v7500_v59 = vld [vmem:[#allocation2 + $0x60] sm:$0xf]  ;;  %v7502_v16 = vld [vmem:[#allocation2 + $0x8] sm:$0x1] }
 0x180   : > { %6666 = vmatprep.subr.bf16.mxu1 %v7402_v7  ;;  %v6077_v55 = vcombine.low %v7500_v59, %v8662_v43  ;;  %v2149_v56 = vrot.slane %v7503_v4, 5  ;;  %v6093_v39 = vrot.slane %v2086_v5, 9  ;;  %v8671_v11 = vld [vmem:[#allocation2 + $0x24] sm:$0xe]  ;;  %v8673_v19 = vrot.slane %v3241_v27, 5  ;;  %v8675_v28 = vld [vmem:[#allocation9 + $0xc0] sm:$0xff]  }
 0x181   : > { %v7504_v33 = vld [vmem:[#allocation2 + $0x6c] sm:$0xf]  ;;  %v8678_v20 = vld [vmem:[#allocation2 + $0x70] sm:$0xf]  ;;  %v6094_v34 = vrot.slane %v2087_v45, 9  ;;  %v6095_v61 = vrot.slane %v2088_v8, 9 }
 0x182   : > { %9675 = vst [vmem:[#allocation17_spill] sm:$0xff] %v8673_v19  ;;  %v2155_v59 = vrot.slane %v2153_v12, 4  ;;  %v7511_v5 = vld [vmem:[#allocation2 + $0x2c] sm:$0x1]  ;;  %v2174_v8 = vrot.slane %v8647_v21, 5  ;;  %v7415_v21 = vld [vmem:[#allocation2 + $0x3c] sm:$0xff]  }
 0x183   : > { %6667 = vmatpush3.bf16.msra.mxu1 %v7402_v7  ;;  %v2142_v7 = vrot.slane %v7502_v16, 5  ;;  %v8717_v16 = vld [vmem:[#allocation2 + $0x48] sm:$0xe]  ;;  %v8721_v4 = vld [vmem:[#allocation2 + $0x18] sm:$0xf] }
 0x184   : > { %6668 = vmatprep.subr.bf16.mxu1 %v7406_v17  ;;  %v4601_v0 = vld [vmem:[#allocation2 + $0x2c] sm:$0x1] }
 0x185   : > { %v3003_v52 = vld [vmem:[#allocation2 + $0xc4] sm:$0xf]  ;;  %v3726_v37 = vld [vmem:[#allocation2 + $0xc0] sm:$0xe]  ;;  %v8705_v10 = vsel %vm8368_vm14, %v2141_v25, %v2142_v7  ;;  %v7420_v25 = vld [vmem:[#allocation9 + $0x1d0] sm:$0xff]  }
 0x186   : > { %6637 = vmatmul.mubr.bf16.gmra.mrb[8].mxu1 %v6074_v41  ;;  %v3004_v60 = vld [vmem:[#allocation2 + $0xc8] sm:$0x1]  ;;  %v6196_v58 = vrot.slane %v3726_v37, 9  ;;  %v3882_v1 = vrot.slane %v3003_v52, 5  ;;  %v2148_v41 = vrot.slane %v2146_v15, 4  ;;  %v6079_v52 = vcombine.low %v7506_v9, %v8684_v51 }
 0x187   : > { %6640 = vmatprep.mubr.bf16.mxu1 %v6075_v24  ;;  %6669 = vmatpush3.bf16.msra.mxu1 %v7406_v17  ;;  %v3885_v36 = vrot.slane %v3004_v60, 5  ;;  %v6078_v17 = vcombine.low %v7504_v33, %v8678_v20  ;;  %v8682_v24 = vrot.slane %v3238_v26, 4  ;;  %v8687_v60 = vld [vmem:[#allocation2 + $0x84] sm:$0xf]  ;;  %v2167_v26 = vrot.slane %v8638_v6, 5 }
 0x188   : > { %6670 = vmatprep.subr.bf16.mxu1 %v7412_v31  ;;  %v3883_v23 = vsel %vm8368_vm14, %v6196_v58, %v3882_v1  ;;  %v3884_v22 = vrot.slane %v3882_v1, 4  ;;  %v6080_v37 = vcombine.low %v8687_v60, %v8689_v35  ;;  %v6081_v58 = vcombine.low %v8489_v30, %v8502_v54  ;;  %v7413_v1 = vld [vmem:[#allocation2 + $0x30] sm:$0xff]   ;;  %v7513_v9 = vld [vmem:[#allocation2 + $0x44] sm:$0x1] }
 0x189   : > { %9676 = vst [vmem:[#allocation18_spill] sm:$0xff] %v8682_v24  ;;  %v8715_v27 = vsel %vm8368_vm14, %v2148_v41, %v2149_v56  ;;  %v2181_v6 = vrot.slane %v8650_v40, 5  ;;  %v8745_v41 = vld [vmem:[#allocation2 + $0x60] sm:$0xe]  ;;  %v7419_v40 = vld [vmem:[#allocation2 + $0x48] sm:$0xff]  }
 0x18a   : > { %v3886_v63 = vsel %vm8368_vm14, %v3884_v22, %v3885_v36  ;;  %v7414_v22 = vld [vmem:[#allocation9 + $0x1c8] sm:$0xff]   ;;  %v7522_v24 = vld [vmem:[#allocation2 + $0xa0] sm:$0xf] }
 0x18b   : > { %6671 = vmatpush3.bf16.msra.mxu1 %v7412_v31  ;;  %v6212_v44 = vcombine.low %v3883_v23, %v3886_v63  ;;  %v7409_v31 = vld [vmem:[#allocation2 + $0x24] sm:$0xff]   ;;  %v2091_v23 = vld [vmem:[#allocation2 + $0x3c] sm:$0xe] }
 0x18c   : > { %6672 = vmatprep.subr.bf16.mxu1 %v7418_v32  ;;  %v6098_v45 = vrot.slane %v2091_v23, 9  ;;  %v7426_v23 = vld [vmem:[#allocation9 + $0x1d8] sm:$0xff]  }
 0x18d   : > { %6849 = vmatmul.mubr.bf16.gmra.mrb[28].mxu0 %v6212_v44  ;;  %v2162_v44 = vrot.slane %v2160_v50, 4 }
 0x18e   : > { %6641 = vmatmul.mubr.bf16.gmra.mrb[12].mxu1 %v6076_v13  ;;  %6868 = vmatprep.mubr.bf16.mxu0 %v7407_v14  ;;  %v2090_v13 = vld [vmem:[#allocation2 + $0x30] sm:$0xe]  ;;  %v6096_v14 = vrot.slane %v8671_v11, 9  ;;  %v8733_v11 = vld [vmem:[#allocation2 + $0x54] sm:$0xe] }
 0x18f   : > { %6644 = vmatprep.mubr.bf16.mxu1 %v6077_v55  ;;  %6673 = vmatpush3.bf16.msra.mxu1 %v7418_v32  ;;  %v8701_v32 = vsel %vm8368_vm14, %v6093_v39, %v2139_v3  ;;  %v7510_v55 = vld [vmem:[#allocation2 + $0x20] sm:$0x1]  ;;  %v2163_v3 = vrot.slane %v7511_v5, 5  ;;  %v6097_v7 = vrot.slane %v2090_v13, 9  ;;  %v8730_v39 = vsel %vm8368_vm14, %v6095_v61, %v2153_v12  ;;  %v7512_v12 = vld [vmem:[#allocation2 + $0x38] sm:$0x1] }
 0x190   : > { %6674 = vmatprep.subr.bf16.mxu1 %v7424_v47  ;;  %v2156_v63 = vrot.slane %v7510_v55, 5  ;;  %v9636_v61 = vrot.slane %v8655_v46, 5  ;;  %v4597_v13 = vld [vmem:[#allocation2 + $0x1c] sm:$0xf]  ;;  %v8759_v55 = vsel %vm8368_vm14, %v6098_v45, %v2174_v8  ;;  %v4600_v5 = vld [vmem:[#allocation2 + $0x28] sm:$0xf] }
 0x191   : > { %v4658_v56 = vshrl.u32 %v4597_v13, 16  ;;  %v4678_v60 = vshll.u32 %v4600_v5, 16 }
 0x192   : > { %v8739_v33 = vsel %vm8368_vm14, %v2155_v59, %v2156_v63  ;;  %v2169_v59 = vrot.slane %v2167_v26, 4  ;;  %v2176_v63 = vrot.slane %v2174_v8, 4  ;;  %v4654_v8 = vshll.u32 %v4597_v13, 16  ;;  %v7516_v13 = vld [vmem:[#allocation2 + $0x68] sm:$0x1] }
 0x193   : > { %6675 = vmatpush3.bf16.msra.mxu1 %v7424_v47  ;;  %v8711_v47 = vsel %vm8368_vm14, %v6094_v34, %v2146_v15  ;;  %v2170_v34 = vrot.slane %v7512_v12, 5  ;;  %v2198_v36 = vrot.slane %v7516_v13, 5  ;;  %v4688_v13 = vshll.u32 %v4601_v0, 16 }
 0x194   : > { %6708 = vmatprep.subr.bf16.mxu1 %v8675_v28  ;;  %v9679_v0 = vcombine.low %v8548_v42, %v8562_v62 }
 0x195   : > { %6869 = vmatmul.mubr.bf16.vlgmr.msra.gmra.mrb[0].mxu0 %v7409_v31  ;;  %v8749_v31 = vsel %vm8368_vm14, %v2162_v44, %v2163_v3  ;;  %v4599_v44 = vld [vmem:[#allocation2 + $0x24] sm:$0xf]  ;;  %v2183_v3 = vrot.slane %v2181_v6, 4  ;;  %v8783_v30 = vsel %vm8368_vm14, %v2169_v59, %v2170_v34 }
 0x196   : > { %6645 = vmatmul.mubr.bf16.gmra.mrb[16].mxu1 %v6078_v17  ;;  %6901 = vmatpush3.bf16.msra.mxu0 %v8457_v18  ;;  %v8743_v17 = vsel %vm8368_vm14, %v6096_v14, %v2160_v50  ;;  %v8755_v50 = vsel %vm8368_vm14, %v6097_v7, %v2167_v26  ;;  %v8761_v14 = vld [vmem:[#allocation2 + $0x6c] sm:$0xe]  ;;  %v4648_v18 = vshll.u32 %v8721_v4, 16  ;;  %v6100_v7 = vrot.slane %v8733_v11, 9  ;;  %v8766_v26 = vld [vmem:[#allocation2 + $0x5c] sm:$0x1] }
 0x197   : > { %6648 = vmatprep.mubr.bf16.mxu1 %v6079_v52  ;;  %6872 = vmatprep.mubr.bf16.mxu0 %v7413_v1  ;;  %v2177_v52 = vrot.slane %v7513_v9, 5  ;;  %v6099_v1 = vrot.slane %v8717_v16, 9  ;;  %v7514_v16 = vld [vmem:[#allocation2 + $0x50] sm:$0x1]  ;;  %v4645_v9 = vshrl.u32 %v8721_v4, 16  ;;  %v2191_v45 = vrot.slane %v8766_v26, 5 }
 0x198   : > { %6902 = vmatprep.subr.bf16.mxu0 %v7414_v22  ;;  %v2184_v12 = vrot.slane %v7514_v16, 5  ;;  %v6101_v16 = vrot.slane %v8745_v41, 9  ;;  %v4669_v15 = vshrl.u32 %v4599_v44, 16  ;;  %v4672_v4 = vshll.u32 %v4599_v44, 16  ;;  %v7430_v11 = vld [vmem:[#allocation9 + $0x1e0] sm:$0xff]  }
 0x199   : > { %v2195_v26 = vrot.slane %v8662_v43, 5  ;;  %v2202_v41 = vrot.slane %v8678_v20, 5  ;;  %v4647_v44 = vrot.slane %v4645_v9, 4  ;;  %v8787_v54 = vsel %vm8368_vm14, %v6099_v1, %v2181_v6  ;;  %v7425_v34 = vld [vmem:[#allocation2 + $0x60] sm:$0xff]  }
 0x19a   : > { %6903 = vmatpush3.bf16.msra.mxu0 %v7414_v22  ;;  %v2190_v22 = vrot.slane %v9636_v61, 4  ;;  %v6102_v61 = vrot.slane %v8761_v14, 9  ;;  %v8789_v43 = vrot.slane %v4654_v8, 5  ;;  %v8797_v20 = vsel %vm8368_vm14, %v2183_v3, %v2184_v12  ;;  %v7421_v14 = vld [vmem:[#allocation2 + $0x54] sm:$0xff]   ;;  %v2097_v8 = vld [vmem:[#allocation2 + $0x84] sm:$0xe] }
 0x19b   : > { %6904 = vmatprep.subr.bf16.mxu0 %v7420_v25  ;;  %v2197_v59 = vrot.slane %v2195_v26, 4  ;;  %v8799_v6 = vrot.slane %v4678_v60, 5  ;;  %v4664_v3 = vshll.u32 %v4598_v2, 16  ;;  %v7435_v60 = vld [vmem:[#allocation2 + $0x9c] sm:$0xff]  }
 0x19c   : > { %v8840_v62 = vsel %vm8368_vm14, %v6102_v61, %v2202_v41  ;;  %v6104_v61 = vrot.slane %v2097_v8, 9  ;;  %v8903_v8 = vld [vmem:[#allocation2 + $0x58] sm:$0xf] }
 0x19d   : > { %6873 = vmatmul.mubr.bf16.gmra.mrb[4].mxu0 %v7415_v21  ;;  %v4650_v21 = vrot.slane %v4648_v18, 5  ;;  %v4671_v18 = vrot.slane %v4669_v15, 4  ;;  %v7434_v15 = vld [vmem:[#allocation9 + $0x1e8] sm:$0xff]   ;;  %v8836_v42 = vsel %vm8368_vm14, %v2197_v59, %v2198_v36  ;;  %v7442_v59 = vld [vmem:[#allocation9 + $0x1f8] sm:$0xff]  }
 0x19e   : > { %6649 = vmatmul.mubr.bf16.gmra.mrb[20].mxu1 %v6080_v37  ;;  %v4682_v37 = vshrl.u32 %v4600_v5, 16  ;;  %6876 = vmatprep.mubr.bf16.mxu0 %v7419_v40  ;;  %v4674_v40 = vrot.slane %v4672_v4, 5  ;;  %v7517_v5 = vld [vmem:[#allocation2 + $0x74] sm:$0x1] }
 0x19f   : > { %6652 = vmatprep.mubr.bf16.mxu1 %v6081_v58  ;;  %6905 = vmatpush3.bf16.msra.mxu0 %v7420_v25  ;;  %v4660_v58 = vrot.slane %v4658_v56, 4  ;;  %v8793_v25 = vsel %vm8368_vm14, %v2176_v63, %v2177_v52  ;;  %v2205_v9 = vrot.slane %v7517_v5, 5  ;;  %v6111_v56 = vcombine.low %v8730_v39, %v8739_v33  ;;  %v2096_v52 = vld [vmem:[#allocation2 + $0x78] sm:$0xe] }
 0x1a0   : > { %6906 = vmatprep.subr.bf16.mxu0 %v7426_v23  ;;  %v4684_v1 = vrot.slane %v4682_v37, 4  ;;  %v2204_v63 = vrot.slane %v2202_v41, 4  ;;  %v4651_v4 = vor.u32 %v4650_v21, %v4647_v44  ;;  %v9678_v37 = vrot.slane %v8655_v46, 5  ;;  %v4602_v44 = vld [vmem:[#allocation2 + $0x30] sm:$0xf]  ;;  %v7429_v41 = vld [vmem:[#allocation2 + $0x78] sm:$0xff]  }
 0x1a1   : > { %v4661_v5 = vor.u32 %v4660_v58, %v8789_v43  ;;  %v4675_v12 = vor.u32 %v4674_v40, %v4671_v18  ;;  %v7438_v21 = vld [vmem:[#allocation9 + $0x1f0] sm:$0xff]   ;;  %v6103_v58 = vrot.slane %v2096_v52, 9  ;;  %v2216_v18 = vrot.slane %v8689_v35, 5 }
 0x1a2   : > { %v8818_v2 = vsel %vm8368_vm14, %v6100_v7, %v9678_v37  ;;  %v4685_v46 = vor.u32 %v4684_v1, %v8799_v6  ;;  %v2209_v7 = vrot.slane %v8684_v51, 5  ;;  %v7427_v51 = vld [vmem:[#allocation2 + $0x6c] sm:$0xff]   ;;  %v2230_v39 = vrot.slane %v7522_v24, 5 }
 0x1a3   : > { %6907 = vmatpush3.bf16.msra.mxu0 %v7426_v23  ;;  %v9677_v23 = vcombine.low %v8515_v48, %v8517_v49  ;;  %v8826_v48 = vsel %vm8368_vm14, %v2190_v22, %v2191_v45  ;;  %v8830_v49 = vsel %vm8368_vm14, %v6101_v16, %v2195_v26  ;;  %v8844_v45 = vsel %vm8368_vm14, %v2204_v63, %v2205_v9  ;;  %v4603_v16 = vld [vmem:[#allocation2 + $0x34] sm:$0xf] }
 0x1a4   : > { %6908 = vmatprep.subr.bf16.mxu0 %v7430_v11  ;;  %v8846_v22 = vrot.slane %v4664_v3, 5  ;;  %v4652_v26 = vrot.slane %v4651_v4, 4  ;;  %v4662_v36 = vrot.slane %v4661_v5, 4  ;;  %v4676_v40 = vrot.slane %v4675_v12, 4  ;;  %v4604_v4 = vld [vmem:[#allocation2 + $0x38] sm:$0x1] }
 0x1a5   : > { %6877 = vmatmul.mubr.bf16.gmra.mrb[8].mxu0 %v7421_v14  ;;  %v7518_v14 = vld [vmem:[#allocation2 + $0x80] sm:$0x1]  ;;  %v4686_v1 = vrot.slane %v4685_v46, 4  ;;  %v2211_v9 = vrot.slane %v2209_v7, 4  ;;  %v4693_v63 = vshrl.u32 %v4602_v44, 16  ;;  %v4696_v3 = vshll.u32 %v4602_v44, 16 }
 0x1a6   : > { %6653 = vmatmul.mubr.bf16.gmra.mrb[24].mxu1 %v9677_v23  ;;  %6880 = vmatprep.mubr.bf16.mxu0 %v7425_v34  ;;  %v2212_v34 = vrot.slane %v7518_v14, 5  ;;  %v4702_v35 = vshll.u32 %v4603_v16, 16  ;;  %v4605_v12 = vld [vmem:[#allocation2 + $0x3c] sm:$0xf]  ;;  %v4657_v37 = vsel %vm8020_vm8, %v4652_v26, %v8789_v43  ;;  %v2218_v5 = vrot.slane %v2216_v18, 4  ;;  %v7433_v52 = vld [vmem:[#allocation2 + $0x90] sm:$0xff]  }
 0x1a7   : > { %6656 = vmatprep.mubr.bf16.mxu1 %v9679_v0  ;;  %6909 = vmatpush3.bf16.msra.mxu0 %v7430_v11  ;;  %v4690_v11 = vrot.slane %v4688_v13, 5  ;;  %v4706_v13 = vshrl.u32 %v4603_v16, 16  ;;  %v9680_v46 = vcombine.low %v8572_v53, %v8574_v29  ;;  %v4667_v44 = vsel %vm8020_vm8, %v4662_v36, %v8846_v22  ;;  %v4606_v26 = vld [vmem:[#allocation2 + $0x40] sm:$0xf]  ;;  %v8884_v36 = vld [vmem:[#allocation2 + $0x4c] sm:$0xf] }
 0x1a8   : > { %6910 = vmatprep.subr.bf16.mxu0 %v7434_v15  ;;  %v4681_v16 = vsel %vm8020_vm8, %v4676_v40, %v8799_v6  ;;  %v8869_v14 = vsel %vm8368_vm14, %v6103_v58, %v2209_v7  ;;  %v8873_v43 = vsel %vm8368_vm14, %v6104_v61, %v2216_v18  ;;  %v9681_v53 = vcombine.low %v8701_v32, %v8705_v10  ;;  %v4608_v58 = vld [vmem:[#allocation2 + $0x48] sm:$0xf]  ;;  %v8888_v10 = vld [vmem:[#allocation9 + $0x200] sm:$0xff]   ;;  %v4607_v61 = vld [vmem:[#allocation2 + $0x44] sm:$0x1] }
 0x1a9   : > { %v4691_v29 = vsel %vm8020_vm8, %v4686_v1, %v4690_v11  ;;  %v8882_v6 = vsel %vm8368_vm14, %v2211_v9, %v2212_v34  ;;  %v4695_v22 = vrot.slane %v4693_v63, 4  ;;  %v4698_v7 = vrot.slane %v4696_v3, 5  ;;  %v2099_v23 = vld [vmem:[#allocation2 + $0x9c] sm:$0xe] }
 0x1aa   : > { %v8886_v18 = vrot.slane %v4702_v35, 5  ;;  %v4717_v40 = vshrl.u32 %v4605_v12, 16  ;;  %v4720_v32 = vshll.u32 %v4605_v12, 16  ;;  %v4712_v34 = vshll.u32 %v4604_v4, 16  ;;  %v7431_v35 = vld [vmem:[#allocation2 + $0x84] sm:$0xff]  }
 0x1ab   : > { %6911 = vmatpush3.bf16.msra.mxu0 %v7434_v15  ;;  %v7519_v15 = vld [vmem:[#allocation2 + $0x8c] sm:$0x1]  ;;  %v4726_v1 = vshll.u32 %v4606_v26, 16  ;;  %v4730_v9 = vshrl.u32 %v4606_v26, 16  ;;  %v4741_v63 = vshrl.u32 %v4608_v58, 16  ;;  %v4744_v3 = vshll.u32 %v4608_v58, 16 }
 0x1ac   : > { %6912 = vmatprep.subr.bf16.mxu0 %v7438_v21  ;;  %v2219_v0 = vrot.slane %v7519_v15, 5  ;;  %v8898_v12 = vcombine.low %v4681_v16, %v4691_v29  ;;  %v7432_v4 = vld [vmem:[#allocation9 + $0xc8] sm:$0xff]   ;;  %v4719_v26 = vrot.slane %v4717_v40, 4  ;;  %v4736_v58 = vshll.u32 %v4607_v61, 16  ;;  %v8918_v61 = vld [vmem:[#allocation2 + $0x50] sm:$0x1] }
 0x1ad   : > { %6881 = vmatmul.mubr.bf16.gmra.mrb[12].mxu0 %v7427_v51  ;;  %v4708_v51 = vrot.slane %v4706_v13, 4  ;;  %v8896_v13 = vcombine.low %v4657_v37, %v4667_v44  ;;  %v8908_v44 = vrot.slane %v4712_v34, 5  ;;  %v8910_v16 = vrot.slane %v4726_v1, 5 }
 0x1ae   : > { %6657 = vmatmul.mubr.bf16.gmra.mrb[28].mxu1 %v9680_v46  ;;  %6884 = vmatprep.mubr.bf16.mxu0 %v7429_v41  ;;  %v8892_v11 = vsel %vm8368_vm14, %v2218_v5, %v2219_v0  ;;  %v4754_v41 = vshrl.u32 %v8884_v36, 16  ;;  %v4699_v5 = vor.u32 %v4698_v7, %v4695_v22  ;;  %v4611_v0 = vld [vmem:[#allocation2 + $0x54] sm:$0xf]  ;;  %v4732_v29 = vrot.slane %v4730_v9, 4  ;;  %v2098_v22 = vld [vmem:[#allocation2 + $0x90] sm:$0xe] }
 0x1af   : > { %6676 = vmatprep.mubr.bf16.mxu1 %v9681_v53  ;;  %6913 = vmatpush3.bf16.msra.mxu0 %v7438_v21  ;;  %v4750_v21 = vshll.u32 %v8884_v36, 16  ;;  %v4709_v46 = vor.u32 %v4708_v51, %v8886_v18  ;;  %v4722_v53 = vrot.slane %v4720_v32, 5  ;;  %v4743_v7 = vrot.slane %v4741_v63, 4 }
 0x1b0   : > { %6914 = vmatprep.subr.bf16.mxu0 %v7442_v59  ;;  %v4746_v51 = vrot.slane %v4744_v3, 5  ;;  %v4756_v32 = vrot.slane %v4754_v41, 4  ;;  %v4765_v34 = vshrl.u32 %v4611_v0, 16  ;;  %v4768_v37 = vshll.u32 %v4611_v0, 16 }
 0x1b1   : > { %v8915_v40 = vrot.slane %v4750_v21, 5  ;;  %v4774_v1 = vshll.u32 %v8903_v8, 16  ;;  %v4778_v9 = vshrl.u32 %v8903_v8, 16  ;;  %v4710_v63 = vrot.slane %v4709_v46, 4  ;;  %v8930_v46 = vld [vmem:[#allocation2 + $0x5c] sm:$0x1] }
 0x1b2   : > { %v4723_v3 = vor.u32 %v4722_v53, %v4719_v26  ;;  %v8925_v21 = vrot.slane %v4736_v58, 5  ;;  %v6105_v41 = vrot.slane %v2098_v22, 9  ;;  %v4747_v33 = vor.u32 %v4746_v51, %v4743_v7 }
 0x1b3   : > { %6915 = vmatpush3.bf16.msra.mxu0 %v7442_v59  ;;  %v9682_v59 = vcombine.low %v8711_v47, %v8715_v27  ;;  %v7436_v47 = vld [vmem:[#allocation9 + $0xd0] sm:$0xff]   ;;  %v4700_v27 = vrot.slane %v4699_v5, 4  ;;  %v4760_v5 = vshll.u32 %v8918_v61, 16  ;;  %v4770_v26 = vrot.slane %v4768_v37, 5 }
 0x1b4   : > { %6948 = vmatprep.subr.bf16.mxu0 %v8888_v10  ;;  %v8932_v53 = vrot.slane %v4774_v1, 5  ;;  %v4780_v58 = vrot.slane %v4778_v9, 4  ;;  %v4715_v24 = vsel %vm8020_vm8, %v4710_v63, %v8908_v44  ;;  %v4724_v7 = vrot.slane %v4723_v3, 4  ;;  %v7523_v1 = vld [vmem:[#allocation2 + $0xac] sm:$0xf] }
 0x1b5   : > { %6885 = vmatmul.mubr.bf16.gmra.mrb[16].mxu0 %v7431_v35  ;;  %v7520_v35 = vld [vmem:[#allocation2 + $0x94] sm:$0xf]  ;;  %v4705_v22 = vsel %vm8020_vm8, %v4700_v27, %v8886_v18  ;;  %v6106_v51 = vrot.slane %v2099_v23, 9  ;;  %v2237_v9 = vrot.slane %v7523_v1, 5  ;;  %v2232_v18 = vrot.slane %v2230_v39, 4 }
 0x1b6   : > { %6677 = vmatmul.mubr.bf16.vlgmr.msra.gmra.mrb[0].mxu1 %v9682_v59  ;;  %6888 = vmatprep.mubr.bf16.mxu0 %v7433_v52  ;;  %v2223_v0 = vrot.slane %v7520_v35, 5  ;;  %v7521_v59 = vld [vmem:[#allocation2 + $0x98] sm:$0x1]  ;;  %v4767_v52 = vrot.slane %v4765_v34, 4  ;;  %v9683_v35 = vcombine.low %v8743_v17, %v8749_v31  ;;  %v7524_v27 = vld [vmem:[#allocation2 + $0xa4] sm:$0x1]  ;;  %v9684_v63 = vcombine.low %v8755_v50, %v8783_v30 }
 0x1b7   : > { %6709 = vmatpush3.bf16.msra.mxu1 %v8675_v28  ;;  %6680 = vmatprep.mubr.bf16.mxu1 %v6111_v56  ;;  %v4733_v28 = vor.u32 %v4732_v29, %v8910_v16  ;;  %v2226_v15 = vrot.slane %v7521_v59, 5  ;;  %v4757_v56 = vor.u32 %v4756_v32, %v8915_v40  ;;  %v7437_v29 = vld [vmem:[#allocation2 + $0xa8] sm:$0xff]   ;;  %v2233_v59 = vrot.slane %v7524_v27, 5  ;;  %v7525_v50 = vld [vmem:[#allocation2 + $0xb8] sm:$0xf] }
 0x1b8   : > { %6710 = vmatprep.subr.bf16.mxu1 %v7432_v4  ;;  %v8942_v37 = vsel %vm8368_vm14, %v6105_v41, %v2223_v0  ;;  %v2225_v34 = vrot.slane %v2223_v0, 4  ;;  %v4748_v19 = vrot.slane %v4747_v33, 4  ;;  %v4784_v44 = vshll.u32 %v8930_v46, 16  ;;  %v2100_v23 = vld [vmem:[#allocation2 + $0xa8] sm:$0xe] }
 0x1b9   : > { %v4734_v32 = vrot.slane %v4733_v28, 4  ;;  %v4758_v3 = vrot.slane %v4757_v56, 4  ;;  %v4762_v28 = vrot.slane %v4760_v5, 5  ;;  %v4771_v41 = vor.u32 %v4770_v26, %v4767_v52  ;;  %v2101_v33 = vld [vmem:[#allocation2 + $0xb4] sm:$0xe]  ;;  %v7444_v56 = vld [vmem:[#allocation9 + $0xe0] sm:$0xff]  }
 0x1ba   : > { %v4781_v0 = vor.u32 %v4780_v58, %v8932_v53  ;;  %v8952_v17 = vcombine.low %v4705_v22, %v4715_v24  ;;  %v4729_v31 = vsel %vm8020_vm8, %v4724_v7, %v8910_v16  ;;  %v2244_v30 = vrot.slane %v7525_v50, 5  ;;  %v7526_v26 = vld [vmem:[#allocation2 + $0xb0] sm:$0x1]  ;;  %v7439_v7 = vld [vmem:[#allocation2 + $0xb4] sm:$0xff]  }
 0x1bb   : > { %6711 = vmatpush3.bf16.msra.mxu1 %v7432_v4  ;;  %v7440_v4 = vld [vmem:[#allocation9 + $0xd8] sm:$0xff]   ;;  %v8963_v5 = vsel %vm8368_vm14, %v2225_v34, %v2226_v15  ;;  %v2239_v52 = vrot.slane %v2237_v9, 4  ;;  %v2240_v58 = vrot.slane %v7526_v26, 5  ;;  %v4739_v16 = vsel %vm8020_vm8, %v4734_v32, %v8925_v21  ;;  %v8977_v15 = vld [vmem:[#allocation2 + $0x64] sm:$0xf] }
 0x1bc   : > { %6712 = vmatprep.subr.bf16.mxu1 %v7436_v47  ;;  %v4753_v22 = vsel %vm8020_vm8, %v4748_v19, %v8915_v40  ;;  %v8975_v24 = vrot.slane %v4784_v44, 5  ;;  %v8981_v34 = vrot.slane %v4771_v41, 4  ;;  %v8983_v1 = vrot.slane %v4781_v0, 4  ;;  %v7441_v32 = vld [vmem:[#allocation2 + $0xc0] sm:$0xff]   ;;  %v9023_v26 = vld [vmem:[#allocation2 + $0x70] sm:$0xf] }
 0x1bd   : > { %6889 = vmatmul.mubr.bf16.gmra.mrb[20].mxu0 %v7435_v60  ;;  %v8959_v60 = vsel %vm8368_vm14, %v6106_v51, %v2230_v39  ;;  %v8970_v39 = vsel %vm8368_vm14, %v2232_v18, %v2233_v59  ;;  %v4763_v51 = vsel %vm8020_vm8, %v4758_v3, %v4762_v28  ;;  %v6108_v21 = vrot.slane %v2101_v33, 9  ;;  %v7527_v18 = vld [vmem:[#allocation2 + $0xbc] sm:$0x1]  ;;  %v7446_v40 = vld [vmem:[#allocation9 + $0xe8] sm:$0xff]   ;;  %v4617_v33 = vld [vmem:[#allocation2 + $0x6c] sm:$0xf] }
 0x1be   : > { %6681 = vmatmul.mubr.bf16.gmra.mrb[4].mxu1 %v9683_v35  ;;  %6892 = vmatprep.mubr.bf16.mxu0 %v7437_v29  ;;  %9685 = vst [vmem:[#allocation19_spill] sm:$0xff] %v8959_v60  ;;  %v4614_v29 = vld [vmem:[#allocation2 + $0x60] sm:$0xf]  ;;  %9686 = vst [vmem:[#allocation20_spill] sm:$0xff] %v8970_v39  ;;  %v2246_v35 = vrot.slane %v2244_v30, 4  ;;  %v2247_v27 = vrot.slane %v7527_v18, 5  ;;  %v8998_v28 = vcombine.low %v4729_v31, %v4739_v16 }
 0x1bf   : > { %6684 = vmatprep.mubr.bf16.mxu1 %v9684_v63  ;;  %6713 = vmatpush3.bf16.msra.mxu1 %v7436_v47  ;;  %v6107_v47 = vrot.slane %v2100_v23, 9  ;;  %v4789_v59 = vshrl.u32 %v4614_v29, 16  ;;  %v4792_v19 = vshll.u32 %v4614_v29, 16  ;;  %v8991_v23 = vsel %vm8368_vm14, %v2239_v52, %v2240_v58  ;;  %v9021_v52 = vld [vmem:[#allocation2 + $0x68] sm:$0x1]  ;;  %9691 = vst [vmem:[#allocation23_spill] sm:$0xff] %v9023_v26 }
 0x1c0   : > { %6714 = vmatprep.subr.bf16.mxu1 %v7440_v4  ;;  %9688 = vst [vmem:[#allocation22_spill] sm:$0xff] %v8991_v23  ;;  %v4798_v63 = vshll.u32 %v8977_v15, 16  ;;  %v4802_v3 = vshrl.u32 %v8977_v15, 16  ;;  %v9004_v0 = vcombine.low %v4753_v22, %v4763_v51  ;;  %v9690_v50 = vcombine.low %v8787_v54, %v8797_v20  ;;  %v4620_v54 = vld [vmem:[#allocation2 + $0x78] sm:$0xf] }
 0x1c1   : > { %v8987_v44 = vsel %vm8368_vm14, %v6107_v47, %v2237_v9  ;;  %v7448_v47 = vld [vmem:[#allocation9 + $0xf0] sm:$0xff]   ;;  %v9019_v31 = vsel %vm8368_vm14, %v6108_v21, %v2244_v30  ;;  %v9029_v58 = vsel %vm8368_vm14, %v2246_v35, %v2247_v27  ;;  %v4791_v29 = vrot.slane %v4789_v59, 4  ;;  %v9031_v22 = vld [vmem:[#allocation2 + $0x7c] sm:$0xf]  ;;  %v4623_v30 = vld [vmem:[#allocation2 + $0x84] sm:$0xf] }
 0x1c2   : > { %9687 = vst [vmem:[#allocation21_spill] sm:$0xff] %v8987_v44  ;;  %v4794_v16 = vrot.slane %v4792_v19, 5  ;;  %9692 = vst [vmem:[#allocation24_spill] sm:$0xff] %v9031_v22  ;;  %v4804_v51 = vrot.slane %v4802_v3, 4  ;;  %v4813_v21 = vshrl.u32 %v4617_v33, 16  ;;  %v4816_v18 = vshll.u32 %v4617_v33, 16 }
 0x1c3   : > { %6715 = vmatpush3.bf16.msra.mxu1 %v7440_v4  ;;  %v9689_v4 = vcombine.low %v8759_v55, %v8793_v25  ;;  %v4826_v35 = vshrl.u32 %v9023_v26, 16  ;;  %v4837_v27 = vshrl.u32 %v4620_v54, 16  ;;  %v4840_v59 = vshll.u32 %v4620_v54, 16  ;;  %v7443_v19 = vld [vmem:[#allocation2 + $0xcc] sm:$0xff]   ;;  %v7450_v25 = vld [vmem:[#allocation9 + $0xf8] sm:$0xff]  }
 0x1c4   : > { %6716 = vmatprep.subr.bf16.mxu1 %v7444_v56  ;;  %v4850_v20 = vshrl.u32 %v9031_v22, 16  ;;  %v4864_v9 = vshll.u32 %v4623_v30, 16  ;;  %v4795_v3 = vor.u32 %v4794_v16, %v4791_v29  ;;  %v4808_v33 = vshll.u32 %v9021_v52, 16  ;;  %v4626_v39 = vld [vmem:[#allocation2 + $0x90] sm:$0xf] }
 0x1c5   : > { %6893 = vmatmul.mubr.bf16.gmra.mrb[24].mxu0 %v7439_v7  ;;  %v9033_v7 = vrot.slane %v4798_v63, 5  ;;  %v4861_v63 = vshrl.u32 %v4623_v30, 16  ;;  %v4815_v54 = vrot.slane %v4813_v21, 4  ;;  %v4818_v23 = vrot.slane %v4816_v18, 5  ;;  %v9053_v60 = vld [vmem:[#allocation2 + $0x94] sm:$0xf] }
 0x1c6   : > { %6685 = vmatmul.mubr.bf16.gmra.mrb[8].mxu1 %v9689_v4  ;;  %6896 = vmatprep.mubr.bf16.mxu0 %v7441_v32  ;;  %v9035_v32 = vld [vmem:[#allocation2 + $0x88] sm:$0xf]  ;;  %v4822_v4 = vshll.u32 %v9023_v26, 16  ;;  %v9695_v30 = vcombine.low %v8818_v2, %v8826_v48  ;;  %v4828_v29 = vrot.slane %v4826_v35, 4  ;;  %v4839_v16 = vrot.slane %v4837_v27, 4  ;;  %9696 = vst [vmem:[#allocation27_spill] sm:$0xff] %v9053_v60 }
 0x1c7   : > { %6688 = vmatprep.mubr.bf16.mxu1 %v9690_v50  ;;  %6717 = vmatpush3.bf16.msra.mxu1 %v7444_v56  ;;  %9693 = vst [vmem:[#allocation25_spill] sm:$0xff] %v9035_v32  ;;  %v9037_v56 = vld [vmem:[#allocation2 + $0x74] sm:$0x1]  ;;  %v4846_v50 = vshll.u32 %v9031_v22, 16  ;;  %v4870_v41 = vshll.u32 %v9035_v32, 16  ;;  %v4874_v55 = vshrl.u32 %v9035_v32, 16  ;;  %v4805_v26 = vor.u32 %v4804_v51, %v9033_v7 }
 0x1c8   : > { %6718 = vmatprep.subr.bf16.mxu1 %v7446_v40  ;;  %9694 = vst [vmem:[#allocation26_spill] sm:$0xff] %v9037_v56  ;;  %v4832_v44 = vshll.u32 %v9037_v56, 16  ;;  %v4842_v22 = vrot.slane %v4840_v59, 5  ;;  %v9697_v51 = vcombine.low %v8830_v49, %v8836_v42  ;;  %v9058_v21 = vld [vmem:[#allocation2 + $0x80] sm:$0x1]  ;;  %v4852_v32 = vrot.slane %v4850_v20, 4 }
 0x1c9   : > { %v9060_v18 = vrot.slane %v4846_v50, 5  ;;  %v4863_v56 = vrot.slane %v4861_v63, 4  ;;  %v4866_v2 = vrot.slane %v4864_v9, 5  ;;  %v9063_v48 = vld [vmem:[#allocation2 + $0x8c] sm:$0x1]  ;;  %v4876_v35 = vrot.slane %v4874_v55, 4 }
 0x1ca   : > { %v4885_v27 = vshrl.u32 %v4626_v39, 16  ;;  %v4888_v59 = vshll.u32 %v4626_v39, 16  ;;  %v9067_v49 = vrot.slane %v4795_v3, 4  ;;  %v9069_v42 = vrot.slane %v4808_v33, 5  ;;  %v7447_v33 = vld [vmem:[#allocation9 + $0x208] sm:$0xff]  }
 0x1cb   : > { %6719 = vmatpush3.bf16.msra.mxu1 %v7446_v40  ;;  %v9051_v40 = vrot.slane %v4822_v4, 5  ;;  %v9065_v4 = vrot.slane %v4870_v41, 5  ;;  %v4898_v20 = vshrl.u32 %v9053_v60, 16  ;;  %v4819_v9 = vor.u32 %v4818_v23, %v4815_v54  ;;  %v4629_v41 = vld [vmem:[#allocation2 + $0x9c] sm:$0xf] }
 0x1cc   : > { %6720 = vmatprep.subr.bf16.mxu1 %v7448_v47  ;;  %v4843_v50 = vor.u32 %v4842_v22, %v4839_v16  ;;  %v4853_v55 = vor.u32 %v4852_v32, %v9060_v18  ;;  %v4856_v39 = vshll.u32 %v9058_v21, 16  ;;  %v4867_v63 = vor.u32 %v4866_v2, %v4863_v56 }
 0x1cd   : > { %6897 = vmatmul.mubr.bf16.gmra.mrb[28].mxu0 %v7443_v19  ;;  %v4894_v19 = vshll.u32 %v9053_v60, 16  ;;  %v4880_v3 = vshll.u32 %v9063_v48, 16  ;;  %v9080_v60 = vld [vmem:[#allocation2 + $0x98] sm:$0x1]  ;;  %v4887_v23 = vrot.slane %v4885_v27, 4  ;;  %v4890_v54 = vrot.slane %v4888_v59, 5 }
 0x1ce   : > { %6689 = vmatmul.mubr.bf16.gmra.mrb[12].mxu1 %v9695_v30  ;;  %6916 = vmatprep.mubr.bf16.mxu0 %v8896_v13  ;;  %v4829_v13 = vor.u32 %v4828_v29, %v9051_v40  ;;  %v4806_v30 = vrot.slane %v4805_v26, 4  ;;  %v4900_v32 = vrot.slane %v4898_v20, 4  ;;  %v9087_v29 = vld [vmem:[#allocation2 + $0xa0] sm:$0xf]  ;;  %v4909_v56 = vshrl.u32 %v4629_v41, 16 }
 0x1cf   : > { %6692 = vmatprep.mubr.bf16.mxu1 %v9697_v51  ;;  %6721 = vmatpush3.bf16.msra.mxu1 %v7448_v47  ;;  %v9074_v47 = vrot.slane %v4832_v44, 5  ;;  %v4877_v51 = vor.u32 %v4876_v35, %v9065_v4  ;;  %v9082_v44 = vld [vmem:[#allocation9 + $0x100] sm:$0xff]   ;;  %v9085_v22 = vrot.slane %v4894_v19, 5  ;;  %v4912_v16 = vshll.u32 %v4629_v41, 16 }
 0x1d0   : > { %6722 = vmatprep.subr.bf16.mxu1 %v7450_v25  ;;  %9698 = vst [vmem:[#allocation28_spill] sm:$0xff] %v9082_v44  ;;  %v4801_v26 = vsel %vm8020_vm8, %v9067_v49, %v9033_v7  ;;  %v4820_v2 = vrot.slane %v4819_v9, 4  ;;  %v4830_v35 = vrot.slane %v4829_v13, 4  ;;  %v4844_v27 = vrot.slane %v4843_v50, 4  ;;  %v4632_v9 = vld [vmem:[#allocation2 + $0xa8] sm:$0xf] }
 0x1d1   : > { %v9700_v59 = vcombine.low %v8869_v14, %v8882_v6  ;;  %v4854_v19 = vrot.slane %v4853_v55, 4  ;;  %v4858_v20 = vrot.slane %v4856_v39, 5  ;;  %v4868_v41 = vrot.slane %v4867_v63, 4  ;;  %v9105_v6 = vld [vmem:[#allocation2 + $0xa4] sm:$0x1] }
 0x1d2   : > { %v4904_v7 = vshll.u32 %v9080_v60, 16  ;;  %v4918_v49 = vshll.u32 %v9087_v29, 16  ;;  %v4901_v14 = vor.u32 %v4900_v32, %v9085_v22  ;;  %v4911_v13 = vrot.slane %v4909_v56, 4  ;;  %v7451_v32 = vld [vmem:[#allocation9 + $0x218] sm:$0xff]  }
 0x1d3   : > { %6723 = vmatpush3.bf16.msra.mxu1 %v7450_v25  ;;  %v9699_v25 = vcombine.low %v8840_v62, %v8844_v45  ;;  %v4878_v62 = vrot.slane %v4877_v51, 4  ;;  %v4891_v45 = vor.u32 %v4890_v54, %v4887_v23  ;;  %v4914_v50 = vrot.slane %v4912_v16, 5 }
 0x1d4   : > { %6996 = vmatprep.subr.bf16.mxu1 %v9082_v44  ;;  %v4882_v44 = vrot.slane %v4880_v3, 5  ;;  %v4922_v55 = vshrl.u32 %v9087_v29, 16  ;;  %v4835_v39 = vsel %vm8020_vm8, %v4830_v35, %v9074_v47  ;;  %v4849_v63 = vsel %vm8020_vm8, %v4844_v27, %v9060_v18 }
 0x1d5   : > { %6917 = vmatmul.mubr.bf16.vlgmr.msra.gmra.mrb[0].mxu0 %v8898_v12  ;;  %v7449_v12 = vld [vmem:[#allocation9 + $0x210] sm:$0xff]   ;;  %v4859_v3 = vsel %vm8020_vm8, %v4854_v19, %v4858_v20  ;;  %v4873_v51 = vsel %vm8020_vm8, %v4868_v41, %v9065_v4  ;;  %v4936_v23 = vshll.u32 %v4632_v9, 16  ;;  %v9129_v47 = vrot.slane %v4891_v45, 4  ;;  %v5354_v20 = vld [vmem:[#allocation2 + $0x48] sm:$0xe]  ;;  %v7454_v45 = vld [vmem:[#allocation9 + $0x220] sm:$0xff]  }
 0x1d6   : > { %6693 = vmatmul.mubr.bf16.gmra.mrb[16].mxu1 %v9699_v25  ;;  %6949 = vmatpush3.bf16.msra.mxu0 %v8888_v10  ;;  %v4811_v10 = vsel %vm8020_vm8, %v4806_v30, %v9069_v42  ;;  %v9125_v42 = vld [vmem:[#allocation2 + $0xac] sm:$0xf]  ;;  %v4933_v30 = vshrl.u32 %v4632_v9, 16  ;;  %v9131_v54 = vrot.slane %v4904_v7, 5  ;;  %v4928_v18 = vshll.u32 %v9105_v6, 16 }
 0x1d7   : > { %6696 = vmatprep.mubr.bf16.mxu1 %v9700_v59  ;;  %6920 = vmatprep.mubr.bf16.mxu0 %v8952_v17  ;;  %v4825_v17 = vsel %vm8020_vm8, %v4820_v2, %v9051_v40  ;;  %v4883_v40 = vsel %vm8020_vm8, %v4878_v62, %v4882_v44  ;;  %v9134_v56 = vrot.slane %v4901_v14, 4  ;;  %v4915_v16 = vor.u32 %v4914_v50, %v4911_v13  ;;  %v9155_v19 = vld [vmem:[#allocation2 + $0xb0] sm:$0x1]  ;;  %v5355_v62 = vld [vmem:[#allocation2 + $0x54] sm:$0xe] }
 0x1d8   : > { %6950 = vmatprep.subr.bf16.mxu0 %v7447_v33  ;;  %v9136_v4 = vrot.slane %v4918_v49, 5  ;;  %v9138_v25 = vrot.slane %v4922_v55, 4  ;;  %v9702_v44 = vsel %vm8020_vm8, %v8983_v1, %v8975_v24  ;;  %v9703_v2 = vsel %vm8020_vm8, %v8981_v34, %v8932_v53  ;;  %v5356_v55 = vld [vmem:[#allocation2 + $0x60] sm:$0xe] }
 0x1d9   : > { %v6250_v35 = vcombine.low %v9703_v2, %v9702_v44  ;;  %v6124_v27 = vcombine.low %v9019_v31, %v9029_v58  ;;  %v6251_v59 = vcombine.low %v4801_v26, %v4811_v10  ;;  %v9162_v24 = vcombine.low %v4825_v17, %v4835_v39  ;;  %v9197_v39 = vld [vmem:[#allocation2 + $0xb8] sm:$0xf] }
 0x1da   : > { %6951 = vmatpush3.bf16.msra.mxu0 %v7447_v33  ;;  %v9701_v33 = vcombine.low %v8873_v43, %v8892_v11  ;;  %v4942_v43 = vshll.u32 %v9125_v42, 16  ;;  %v9704_v11 = vcombine.low %v8942_v37, %v8963_v5  ;;  %v9164_v1 = vrot.slane %v4933_v30, 4  ;;  %v9705_v44 = vld [vmem:[#allocation19_spill] sm:$0xff] }
 0x1db   : > { %6952 = vmatprep.subr.bf16.mxu0 %v7449_v12  ;;  %v9166_v53 = vrot.slane %v4936_v23, 5  ;;  %v4946_v34 = vshrl.u32 %v9125_v42, 16  ;;  %v9170_v26 = vcombine.low %v4849_v63, %v4859_v3  ;;  %v9172_v41 = vcombine.low %v4873_v51, %v4883_v40  ;;  %v5357_v23 = vld [vmem:[#allocation2 + $0x6c] sm:$0xe]  ;;  %v7457_v40 = vld [vmem:[#allocation9 + $0x228] sm:$0xff]  }
 0x1dc   : > { %v4897_v37 = vsel %vm8020_vm8, %v9129_v47, %v9085_v22  ;;  %v9178_v5 = vrot.slane %v4928_v18, 5  ;;  %v9184_v7 = vrot.slane %v4915_v16, 4  ;;  %v4925_v49 = vor.u32 %v9138_v25, %v9136_v4  ;;  %v4641_v47 = vld [vmem:[#allocation2 + $0xcc] sm:$0xf] }
 0x1dd   : > { %6921 = vmatmul.mubr.bf16.gmra.mrb[4].mxu0 %v8998_v28  ;;  %v4635_v28 = vld [vmem:[#allocation2 + $0xb4] sm:$0xf]  ;;  %v4952_v9 = vshll.u32 %v9155_v19, 16  ;;  %v6273_v14 = vrot.slane %v5354_v20, 9  ;;  %v5444_v13 = vrot.slane %v8884_v36, 5  ;;  %v5447_v50 = vrot.slane %v8918_v61, 5 }
 0x1de   : > { %6697 = vmatmul.mubr.bf16.gmra.mrb[20].mxu1 %v9701_v33  ;;  %6924 = vmatprep.mubr.bf16.mxu0 %v9004_v0  ;;  %v4907_v0 = vsel %vm8020_vm8, %v9134_v56, %v9131_v54  ;;  %v4939_v10 = vor.u32 %v9166_v53, %v9164_v1  ;;  %v9195_v17 = vrot.slane %v4946_v34, 4  ;;  %v4957_v63 = vshrl.u32 %v4635_v28, 16  ;;  %v9708_v1 = vld [vmem:[#allocation21_spill] sm:$0xff] }
 0x1df   : > { %6700 = vmatprep.mubr.bf16.mxu1 %v9704_v11  ;;  %6953 = vmatpush3.bf16.msra.mxu0 %v7449_v12  ;;  %v9189_v12 = vrot.slane %v4942_v43, 5  ;;  %v6274_v3 = vrot.slane %v5355_v62, 9  ;;  %v9201_v51 = vsel %vm8368_vm14, %v6273_v14, %v5444_v13  ;;  %v5446_v30 = vrot.slane %v5444_v13, 4  ;;  %v9711_v14 = vld [vmem:[#allocation23_spill] sm:$0xff]  ;;  %v7455_v54 = vld [vmem:[#allocation2 + $0x24] sm:$0xff]  }
 0x1e0   : > { %6954 = vmatprep.subr.bf16.mxu0 %v7451_v32  ;;  %v5451_v36 = vrot.slane %v8903_v8, 5  ;;  %v5454_v61 = vrot.slane %v8930_v46, 5  ;;  %v4960_v18 = vshll.u32 %v4635_v28, 16  ;;  %v6275_v16 = vrot.slane %v5356_v55, 9 }
 0x1e1   : > { %v5458_v25 = vrot.slane %v8977_v15, 5  ;;  %v5461_v33 = vrot.slane %v9021_v52, 5  ;;  %v4966_v43 = vshll.u32 %v9197_v39, 16  ;;  %v9213_v8 = vsel %vm8368_vm14, %v5446_v30, %v5447_v50  ;;  %v9709_v15 = vld [vmem:[#allocation22_spill] sm:$0xff] }
 0x1e2   : > { %v9217_v46 = vsel %vm8368_vm14, %v6274_v3, %v5451_v36  ;;  %v5453_v11 = vrot.slane %v5451_v36, 4  ;;  %v9710_v53 = vcombine.low %v9708_v1, %v9709_v15  ;;  %v6289_v52 = vcombine.low %v9201_v51, %v9213_v8  ;;  %v9712_v50 = vld [vmem:[#allocation26_spill] sm:$0xff]  ;;  %v9261_v1 = vld [vmem:[#allocation2 + $0xc4] sm:$0xf] }
 0x1e3   : > { %6955 = vmatpush3.bf16.msra.mxu0 %v7451_v32  ;;  %v9706_v32 = vld [vmem:[#allocation20_spill] sm:$0xff]  ;;  %v9226_v34 = vsel %vm8368_vm14, %v6275_v16, %v5458_v25  ;;  %v5460_v20 = vrot.slane %v5458_v25, 4  ;;  %v6276_v28 = vrot.slane %v5357_v23, 9  ;;  %v9228_v62 = vrot.slane %v4925_v49, 4  ;;  %v7460_v30 = vld [vmem:[#allocation9 + $0x230] sm:$0xff]  }
 0x1e4   : > { %6956 = vmatprep.subr.bf16.mxu0 %v7454_v45  ;;  %v9707_v2 = vcombine.low %v9705_v44, %v9706_v32  ;;  %v5465_v13 = vrot.slane %v9711_v14, 5  ;;  %v5468_v55 = vrot.slane %v9712_v50, 5  ;;  %v9236_v3 = vrot.slane %v4952_v9, 5  ;;  %v2984_v49 = vld [vmem:[#allocation2 + $0x78] sm:$0xf]  ;;  %v7452_v44 = vld [vmem:[#allocation2 + $0xc] sm:$0xff]  }
 0x1e5   : > { %6925 = vmatmul.mubr.bf16.gmra.mrb[8].mxu0 %v6250_v35  ;;  %v9232_v35 = vsel %vm8368_vm14, %v5453_v11, %v5454_v61  ;;  %v4970_v36 = vshrl.u32 %v9197_v39, 16  ;;  %v9245_v61 = vrot.slane %v4939_v10, 4  ;;  %v4638_v23 = vld [vmem:[#allocation2 + $0xc0] sm:$0xf]  ;;  %v4949_v32 = vor.u32 %v9195_v17, %v9189_v12  ;;  %v5358_v10 = vld [vmem:[#allocation2 + $0x78] sm:$0xe] }
 0x1e6   : > { %6701 = vmatmul.mubr.bf16.gmra.mrb[24].mxu1 %v9707_v2  ;;  %6928 = vmatprep.mubr.bf16.mxu0 %v6251_v59  ;;  %v9251_v9 = vsel %vm8368_vm14, %v6276_v28, %v5465_v13  ;;  %v5467_v25 = vrot.slane %v5465_v13, 4  ;;  %v9255_v2 = vrot.slane %v4957_v63, 4  ;;  %v9259_v11 = vrot.slane %v4966_v43, 5  ;;  %v9713_v28 = vld [vmem:[#allocation17_spill] sm:$0xff]  ;;  %v9714_v14 = vld [vmem:[#allocation18_spill] sm:$0xff]  ;;  %v9715_v16 = vld [vmem:[#allocation24_spill] sm:$0xff] }
 0x1e7   : > { %6704 = vmatprep.mubr.bf16.mxu1 %v9710_v53  ;;  %6957 = vmatpush3.bf16.msra.mxu0 %v7454_v45  ;;  %v9243_v45 = vsel %vm8368_vm14, %v5460_v20, %v5461_v33  ;;  %v9257_v33 = vrot.slane %v4960_v18, 5  ;;  %v3222_v53 = vshrl.u32 %v2984_v49, 16  ;;  %v3225_v20 = vshll.u32 %v2984_v49, 16  ;;  %v5359_v63 = vld [vmem:[#allocation2 + $0x84] sm:$0xe] }
 0x1e8   : > { %6958 = vmatprep.subr.bf16.mxu0 %v7457_v40  ;;  %v9265_v15 = vsel %vm8368_vm14, %v5467_v25, %v5468_v55  ;;  %v3244_v17 = vsel %vm8020_vm8, %v9714_v14, %v9713_v28  ;;  %v9271_v18 = vrot.slane %v4970_v36, 4  ;;  %v4981_v43 = vshrl.u32 %v4638_v23, 16  ;;  %v7547_v8 = vld [vmem:[#allocation2 + $0x8c] sm:$0x1] }
 0x1e9   : > { %v4984_v13 = vshll.u32 %v4638_v23, 16  ;;  %v3224_v55 = vrot.slane %v3222_v53, 4  ;;  %v3227_v49 = vrot.slane %v3225_v20, 5  ;;  %v6277_v25 = vrot.slane %v5358_v10, 9  ;;  %v9288_v10 = vld [vmem:[#allocation2 + $0xbc] sm:$0x1] }
 0x1ea   : > { %v5472_v59 = vrot.slane %v9715_v16, 5  ;;  %v4950_v36 = vrot.slane %v4949_v32, 4  ;;  %v4990_v28 = vshll.u32 %v9261_v1, 16  ;;  %v5475_v23 = vrot.slane %v9058_v21, 5  ;;  %v7453_v53 = vld [vmem:[#allocation2 + $0x18] sm:$0xff]  }
 0x1eb   : > { %6959 = vmatpush3.bf16.msra.mxu0 %v7457_v40  ;;  %v7463_v40 = vld [vmem:[#allocation9 + $0x238] sm:$0xff]   ;;  %v6278_v14 = vrot.slane %v5359_v63, 9  ;;  %v3228_v50 = vor.u32 %v3227_v49, %v3224_v55  ;;  %v4994_v32 = vshrl.u32 %v9261_v1, 16  ;;  %v5482_v21 = vrot.slane %v9063_v48, 5  ;;  %v9347_v49 = vld [vmem:[#allocation2 + $0xc8] sm:$0x1] }
 0x1ec   : > { %6960 = vmatprep.subr.bf16.mxu0 %v7460_v30  ;;  %v9285_v31 = vsel %vm8368_vm14, %v6277_v25, %v5472_v59  ;;  %v5474_v58 = vrot.slane %v5472_v59, 4  ;;  %v6255_v48 = vcombine.low %v4897_v37, %v4907_v0  ;;  %v4921_v63 = vsel %vm8020_vm8, %v9184_v7, %v9136_v4  ;;  %v9323_v37 = vld [vmem:[#allocation2 + $0xd0] sm:$0xf]  ;;  %v9717_v0 = vld [vmem:[#allocation16_spill] sm:$0xff] }
 0x1ed   : > { %6929 = vmatmul.mubr.bf16.gmra.mrb[12].mxu0 %v9162_v24  ;;  %v4983_v24 = vrot.slane %v4981_v43, 4  ;;  %v4931_v43 = vsel %vm8020_vm8, %v9228_v62, %v9178_v5  ;;  %v4963_v56 = vor.u32 %v9257_v33, %v9255_v2  ;;  %v4976_v22 = vshll.u32 %v9288_v10, 16  ;;  %v9718_v25 = vld [vmem:[#allocation28_spill] sm:$0xff] }
 0x1ee   : > { %6705 = vmatmul.mubr.bf16.gmra.mrb[28].mxu1 %v6124_v27  ;;  %6932 = vmatprep.mubr.bf16.mxu0 %v9170_v26  ;;  %v9716_v27 = vld [vmem:[#allocation25_spill] sm:$0xff]  ;;  %v3229_v26 = vrot.slane %v3228_v50, 4  ;;  %v9332_v7 = vrot.slane %v4990_v28, 5  ;;  %v4996_v62 = vrot.slane %v4994_v32, 4  ;;  %v4945_v33 = vsel %vm8020_vm8, %v9245_v61, %v9189_v12 }
 0x1ef   : > { %6724 = vmatprep.mubr.bf16.mxu1 %v7452_v44  ;;  %6961 = vmatpush3.bf16.msra.mxu0 %v7460_v30  ;;  %v5479_v16 = vrot.slane %v9716_v27, 5  ;;  %v4986_v44 = vrot.slane %v4984_v13, 5  ;;  %v9294_v30 = vsel %vm8368_vm14, %v5474_v58, %v5475_v23  ;;  %v4973_v55 = vor.u32 %v9271_v18, %v9259_v11  ;;  %v5360_v58 = vld [vmem:[#allocation2 + $0x90] sm:$0xe]  ;;  %v7529_v12 = vld [vmem:[#allocation9 + $0x108] sm:$0xff]  }
 0x1f0   : > { %6962 = vmatprep.subr.bf16.mxu0 %v7463_v40  ;;  %v6293_v13 = vcombine.low %v9285_v31, %v9294_v30  ;;  %v3234_v4 = vsel %vm8020_vm8, %v3229_v26, %v9717_v0  ;;  %v5005_v28 = vshrl.u32 %v4641_v47, 16  ;;  %v5008_v23 = vshll.u32 %v4641_v47, 16  ;;  %v9719_v26 = vld [vmem:[#allocation27_spill] sm:$0xff]  ;;  %v3002_v31 = vld [vmem:[#allocation2 + $0xc0] sm:$0xf] }
 0x1f1   : > { %v9298_v59 = vsel %vm8368_vm14, %v6278_v14, %v5479_v16  ;;  %v5481_v20 = vrot.slane %v5479_v16, 4  ;;  %v9334_v50 = vcombine.low %v3234_v4, %v3244_v17  ;;  %v4987_v17 = vor.u32 %v4986_v44, %v4983_v24  ;;  %v7456_v44 = vld [vmem:[#allocation2 + $0x30] sm:$0xff]  }
 0x1f2   : > { %v5014_v14 = vshll.u32 %v9323_v37, 16  ;;  %v6256_v61 = vcombine.low %v4921_v63, %v4931_v43  ;;  %v4964_v27 = vrot.slane %v4963_v56, 4  ;;  %v4997_v16 = vor.u32 %v4996_v62, %v9332_v7  ;;  %v7530_v56 = vld [vmem:[#allocation9 + $0x110] sm:$0xff]  }
 0x1f3   : > { %6963 = vmatpush3.bf16.msra.mxu0 %v7463_v40  ;;  %v9330_v5 = vsel %vm8368_vm14, %v5481_v20, %v5482_v21  ;;  %v4955_v40 = vsel %vm8020_vm8, %v4950_v36, %v9236_v3  ;;  %v4978_v3 = vrot.slane %v4976_v22, 5  ;;  %v5018_v36 = vshrl.u32 %v9323_v37, 16 }
 0x1f4   : > { %v6294_v2 = vcombine.low %v9298_v59, %v9330_v5  ;;  %v6257_v18 = vcombine.low %v4945_v33, %v4955_v40  ;;  %v5000_v24 = vshll.u32 %v9347_v49, 16  ;;  %v4974_v32 = vrot.slane %v4973_v55, 4  ;;  %v9363_v55 = vld [vmem:[#allocation2 + $0xd4] sm:$0x1] }
 0x1f5   : > { %6933 = vmatmul.mubr.bf16.gmra.mrb[16].mxu0 %v9172_v41  ;;  %v5361_v41 = vld [vmem:[#allocation2 + $0x9c] sm:$0xe]  ;;  %v4988_v21 = vrot.slane %v4987_v17, 4  ;;  %v5486_v20 = vrot.slane %v9719_v26, 5  ;;  %v5007_v63 = vrot.slane %v5005_v28, 4  ;;  %v5010_v43 = vrot.slane %v5008_v23, 5 }
 0x1f6   : > { %6725 = vmatmul.mubr.bf16.vlgmr.msra.gmra.mrb[0].mxu1 %v7453_v53  ;;  %6936 = vmatprep.mubr.bf16.mxu0 %v6255_v48  ;;  %v6279_v53 = vrot.slane %v5360_v58, 9  ;;  %v9356_v22 = vrot.slane %v5014_v14, 5  ;;  %v5489_v48 = vrot.slane %v9080_v60, 5  ;;  %v5020_v47 = vrot.slane %v5018_v36, 4  ;;  %v5350_v36 = vld [vmem:[#allocation2 + $0x18] sm:$0xe] }
 0x1f7   : > { %7004 = vmatpush3.bf16.msra.mxu1 %v9718_v25  ;;  %6728 = vmatprep.mubr.bf16.mxu1 %v7455_v54  ;;  %v7458_v54 = vld [vmem:[#allocation2 + $0x3c] sm:$0xff]   ;;  %v5488_v4 = vrot.slane %v5486_v20, 4  ;;  %v6280_v62 = vrot.slane %v5361_v41, 9  ;;  %v4998_v33 = vrot.slane %v4997_v16, 4  ;;  %v5002_v40 = vrot.slane %v5000_v24, 5  ;;  %v7459_v41 = vld [vmem:[#allocation2 + $0x48] sm:$0xff]  }
 0x1f8   : > { %6997 = vmatprep.subr.bf16.mxu1 %v7529_v12  ;;  %v9361_v0 = vsel %vm8368_vm14, %v6279_v53, %v5486_v20  ;;  %v5493_v17 = vrot.slane %v9087_v29, 5  ;;  %v5496_v25 = vrot.slane %v9105_v6, 5  ;;  %v4969_v28 = vsel %vm8020_vm8, %v4964_v27, %v9259_v11  ;;  %v7531_v11 = vld [vmem:[#allocation9 + $0x118] sm:$0xff]  }
 0x1f9   : > { %v9369_v60 = vsel %vm8368_vm14, %v5488_v4, %v5489_v48  ;;  %v4979_v6 = vsel %vm8020_vm8, %v4974_v32, %v4978_v3  ;;  %v5011_v58 = vor.u32 %v5010_v43, %v5007_v63  ;;  %v4993_v27 = vsel %vm8020_vm8, %v4988_v21, %v9332_v7  ;;  %v5362_v32 = vld [vmem:[#allocation2 + $0xa8] sm:$0xe]  ;;  %v7461_v26 = vld [vmem:[#allocation2 + $0x54] sm:$0xff]   ;;  %v7533_v43 = vld [vmem:[#allocation9 + $0x120] sm:$0xff]  }
 0x1fa   : > { %v6295_v23 = vcombine.low %v9361_v0, %v9369_v60  ;;  %v9378_v14 = vsel %vm8368_vm14, %v6280_v62, %v5493_v17  ;;  %v5495_v29 = vrot.slane %v5493_v17, 4  ;;  %v5003_v16 = vsel %vm8020_vm8, %v4998_v33, %v5002_v40  ;;  %v5363_v33 = vld [vmem:[#allocation2 + $0xb4] sm:$0xe]  ;;  %v7535_v40 = vld [vmem:[#allocation2 + $0x28] sm:$0xf] }
 0x1fb   : > { %7005 = vmatpush3.bf16.msra.mxu1 %v7529_v12  ;;  %v5021_v12 = vor.u32 %v5020_v47, %v9356_v22  ;;  %v6258_v53 = vcombine.low %v4969_v28, %v4979_v6  ;;  %v6269_v20 = vrot.slane %v5350_v36, 9  ;;  %v5012_v7 = vrot.slane %v5011_v58, 4  ;;  %v5351_v28 = vld [vmem:[#allocation2 + $0x24] sm:$0xe] }
 0x1fc   : > { %6998 = vmatprep.subr.bf16.mxu1 %v7530_v56  ;;  %v9391_v3 = vsel %vm8368_vm14, %v5495_v29, %v5496_v25  ;;  %v6281_v4 = vrot.slane %v5362_v32, 9  ;;  %v5500_v62 = vrot.slane %v9125_v42, 5  ;;  %v5423_v17 = vrot.slane %v7535_v40, 5 }
 0x1fd   : > { %6937 = vmatmul.mubr.bf16.gmra.mrb[20].mxu0 %v6256_v61  ;;  %v5024_v61 = vshll.u32 %v9363_v55, 16  ;;  %v5022_v21 = vrot.slane %v5021_v12, 4  ;;  %v5503_v58 = vrot.slane %v9155_v19, 5  ;;  %v5017_v42 = vsel %vm8020_vm8, %v5012_v7, %v9356_v22  ;;  %v7538_v7 = vld [vmem:[#allocation2 + $0x2c] sm:$0x1] }
 0x1fe   : > { %6729 = vmatmul.mubr.bf16.gmra.mrb[4].mxu1 %v7456_v44  ;;  %6940 = vmatprep.mubr.bf16.mxu0 %v6257_v18  ;;  %v7532_v18 = vld [vmem:[#allocation2 + $0x1c] sm:$0xf]  ;;  %v6296_v44 = vcombine.low %v9378_v14, %v9391_v3  ;;  %v9400_v29 = vsel %vm8368_vm14, %v6281_v4, %v5500_v62  ;;  %v5502_v6 = vrot.slane %v5500_v62, 4  ;;  %v5510_v22 = vrot.slane %v9288_v10, 5  ;;  %v7540_v4 = vld [vmem:[#allocation9 + $0x130] sm:$0xff]  }
 0x1ff   : > { %6732 = vmatprep.mubr.bf16.mxu1 %v7458_v54  ;;  %7006 = vmatpush3.bf16.msra.mxu1 %v7530_v56  ;;  %v5416_v24 = vrot.slane %v7532_v18, 5  ;;  %v6259_v54 = vcombine.low %v4993_v27, %v5003_v16  ;;  %v5026_v63 = vrot.slane %v5024_v61, 5  ;;  %v7534_v56 = vld [vmem:[#allocation2 + $0x20] sm:$0x1]  ;;  %v7536_v61 = vld [vmem:[#allocation2 + $0x34] sm:$0xf] }
 0x200   : > { %6999 = vmatprep.subr.bf16.mxu1 %v7531_v11  ;;  %v5419_v47 = vrot.slane %v7534_v56, 5  ;;  %v5430_v36 = vrot.slane %v7536_v61, 5  ;;  %v7537_v16 = vld [vmem:[#allocation9 + $0x128] sm:$0xff]   ;;  %v5352_v18 = vld [vmem:[#allocation2 + $0x30] sm:$0xe]  ;;  %v9412_v19 = vsel %vm8368_vm14, %v5502_v6, %v5503_v58  ;;  %v6270_v32 = vrot.slane %v5351_v28, 9 }
 0x201   : > { %v5418_v48 = vrot.slane %v5416_v24, 4  ;;  %v5417_v25 = vsel %vm8368_vm14, %v6269_v20, %v5416_v24  ;;  %v5027_v12 = vsel %vm8020_vm8, %v5022_v21, %v5026_v63  ;;  %v5507_v24 = vrot.slane %v9197_v39, 5  ;;  %v5353_v6 = vld [vmem:[#allocation2 + $0x3c] sm:$0xe]  ;;  %v7541_v58 = vld [vmem:[#allocation2 + $0x40] sm:$0xf] }
 0x202   : > { %v6260_v20 = vcombine.low %v5017_v42, %v5027_v12  ;;  %v5426_v21 = vrot.slane %v7538_v7, 5  ;;  %v6271_v56 = vrot.slane %v5352_v18, 9  ;;  %v5432_v39 = vrot.slane %v5430_v36, 4  ;;  %v2981_v18 = vld [vmem:[#allocation2 + $0x6c] sm:$0xf] }
 0x203   : > { %7007 = vmatpush3.bf16.msra.mxu1 %v7531_v11  ;;  %v6282_v11 = vrot.slane %v5363_v33, 9  ;;  %v5420_v27 = vsel %vm8368_vm14, %v5418_v48, %v5419_v47  ;;  %v7539_v47 = vld [vmem:[#allocation2 + $0x38] sm:$0x1]  ;;  %v5364_v33 = vld [vmem:[#allocation2 + $0xc0] sm:$0xe]  ;;  %v5437_v42 = vrot.slane %v7541_v58, 5 }
 0x204   : > { %7000 = vmatprep.subr.bf16.mxu1 %v7533_v43  ;;  %v6285_v48 = vcombine.low %v5417_v25, %v5420_v27  ;;  %v5433_v10 = vrot.slane %v7539_v47, 5  ;;  %v5424_v25 = vsel %vm8368_vm14, %v6270_v32, %v5423_v17  ;;  %v5431_v12 = vsel %vm8368_vm14, %v6271_v56, %v5430_v36  ;;  %v5365_v27 = vld [vmem:[#allocation2 + $0xcc] sm:$0xe]  ;;  %v7544_v47 = vld [vmem:[#allocation2 + $0x70] sm:$0xf] }
 0x205   : > { %6941 = vmatmul.mubr.bf16.gmra.mrb[24].mxu0 %v6258_v53  ;;  %v5425_v53 = vrot.slane %v5423_v17, 4  ;;  %v9420_v63 = vsel %vm8368_vm14, %v6282_v11, %v5507_v24  ;;  %v6283_v11 = vrot.slane %v5364_v33, 9  ;;  %v7465_v17 = vld [vmem:[#allocation2 + $0x78] sm:$0xff]   ;;  %v5439_v7 = vrot.slane %v5437_v42, 4 }
 0x206   : > { %6733 = vmatmul.mubr.bf16.gmra.mrb[8].mxu1 %v7459_v41  ;;  %6944 = vmatprep.mubr.bf16.mxu0 %v6259_v54  ;;  %v7462_v41 = vld [vmem:[#allocation2 + $0x60] sm:$0xff]   ;;  %v7464_v54 = vld [vmem:[#allocation2 + $0x6c] sm:$0xff]   ;;  %v5434_v61 = vsel %vm8368_vm14, %v5432_v39, %v5433_v10  ;;  %v5517_v36 = vrot.slane %v9347_v49, 5  ;;  %v3207_v10 = vshll.u32 %v7544_v47, 16  ;;  %v5521_v33 = vrot.slane %v9323_v37, 5 }
 0x207   : > { %6736 = vmatprep.mubr.bf16.mxu1 %v7461_v26  ;;  %7008 = vmatpush3.bf16.msra.mxu1 %v7533_v43  ;;  %v6297_v26 = vcombine.low %v9400_v29, %v9412_v19  ;;  %v5509_v43 = vrot.slane %v5507_v24, 4  ;;  %v5427_v28 = vsel %vm8368_vm14, %v5425_v53, %v5426_v21  ;;  %v5514_v53 = vrot.slane %v9261_v1, 5 }
 0x208   : > { %7001 = vmatprep.subr.bf16.mxu1 %v7537_v16  ;;  %v6286_v24 = vcombine.low %v5424_v25, %v5427_v28  ;;  %v6284_v21 = vrot.slane %v5365_v27, 9  ;;  %v5524_v1 = vrot.slane %v9363_v55, 5 }
 0x209   : > { %v9424_v62 = vsel %vm8368_vm14, %v5509_v43, %v5510_v22  ;;  %v6272_v22 = vrot.slane %v5353_v6, 9  ;;  %v3198_v43 = vshrl.u32 %v2981_v18, 16  ;;  %v9440_v56 = vsel %vm8368_vm14, %v6283_v11, %v5514_v53 }
 0x20a   : > { %v6298_v40 = vcombine.low %v9420_v63, %v9424_v62  ;;  %v5516_v39 = vrot.slane %v5514_v53, 4  ;;  %v9452_v28 = vsel %vm8368_vm14, %v6284_v21, %v5521_v33  ;;  %v5523_v6 = vrot.slane %v5521_v33, 4 }
 0x20b   : > { %7009 = vmatpush3.bf16.msra.mxu1 %v7537_v16  ;;  %v7542_v16 = vld [vmem:[#allocation9 + $0x138] sm:$0xff]   ;;  %v5438_v37 = vsel %vm8368_vm14, %v6272_v22, %v5437_v42  ;;  %v3200_v58 = vrot.slane %v3198_v43, 4  ;;  %v2990_v43 = vld [vmem:[#allocation2 + $0x90] sm:$0xf] }
 0x20c   : > { %7002 = vmatprep.subr.bf16.mxu1 %v7540_v4  ;;  %v9446_v49 = vsel %vm8368_vm14, %v5516_v39, %v5517_v36  ;;  %v9460_v27 = vsel %vm8368_vm14, %v5523_v6, %v5524_v1  ;;  %v7545_v22 = vld [vmem:[#allocation2 + $0x74] sm:$0x1] }
 0x20d   : > { %6945 = vmatmul.mubr.bf16.gmra.mrb[28].mxu0 %v6260_v20  ;;  %v7466_v20 = vld [vmem:[#allocation2 + $0x84] sm:$0xff]   ;;  %v6299_v25 = vcombine.low %v9440_v56, %v9446_v49 }
 0x20e   : > { %6737 = vmatmul.mubr.bf16.gmra.mrb[12].mxu1 %v7462_v41  ;;  %6964 = vmatprep.mubr.bf16.mxu0 %v6285_v48  ;;  %v7543_v41 = vld [vmem:[#allocation2 + $0x44] sm:$0x1]  ;;  %v3201_v48 = vshll.u32 %v2981_v18, 16  ;;  %v6300_v18 = vcombine.low %v9452_v28, %v9460_v27 }
 0x20f   : > { %6740 = vmatprep.mubr.bf16.mxu1 %v7464_v54  ;;  %7010 = vmatpush3.bf16.msra.mxu1 %v7540_v4  ;;  %v5440_v32 = vrot.slane %v7543_v41, 5  ;;  %v6287_v54 = vcombine.low %v5431_v12, %v5434_v61  ;;  %v3211_v4 = vshrl.u32 %v7544_v47, 16  ;;  %v3209_v61 = vrot.slane %v3207_v10, 5  ;;  %v2987_v41 = vld [vmem:[#allocation2 + $0x84] sm:$0xf]  ;;  %v7469_v47 = vld [vmem:[#allocation2 + $0xa8] sm:$0xff]  }
 0x210   : > { %7003 = vmatprep.subr.bf16.mxu1 %v7542_v16  ;;  %v3203_v12 = vrot.slane %v3201_v48, 5  ;;  %v7470_v10 = vld [vmem:[#allocation2 + $0xb4] sm:$0xff]  }
 0x211   : > { %v5441_v55 = vsel %vm8368_vm14, %v5439_v7, %v5440_v32  ;;  %v3213_v11 = vrot.slane %v3211_v4, 4  ;;  %v3246_v32 = vshrl.u32 %v2987_v41, 16  ;;  %v7546_v7 = vld [vmem:[#allocation2 + $0x88] sm:$0xf] }
 0x212   : > { %v3204_v53 = vor.u32 %v3203_v12, %v3200_v58  ;;  %v3255_v57 = vshll.u32 %v7546_v7, 16  ;;  %v3259_v36 = vshrl.u32 %v7546_v7, 16  ;;  %v2993_v58 = vld [vmem:[#allocation2 + $0x9c] sm:$0xf] }
 0x213   : > { %7011 = vmatpush3.bf16.msra.mxu1 %v7542_v16  ;;  %v7467_v16 = vld [vmem:[#allocation2 + $0x90] sm:$0xff]   ;;  %v3214_v42 = vor.u32 %v3213_v11, %v3209_v61  ;;  %v3248_v4 = vrot.slane %v3246_v32, 4 }
 0x214   : > { %v3205_v21 = vrot.slane %v3204_v53, 4  ;;  %v9467_v1 = vrot.slane %v3255_v57, 5  ;;  %v3261_v6 = vrot.slane %v3259_v36, 4  ;;  %v7548_v11 = vld [vmem:[#allocation2 + $0x94] sm:$0xf]  ;;  %v9721_v57 = vcombine.low %v9226_v34, %v9243_v45  ;;  %v7471_v36 = vld [vmem:[#allocation2 + $0xc0] sm:$0xff]  }
 0x215   : > { %6965 = vmatmul.mubr.bf16.vlgmr.msra.gmra.mrb[0].mxu0 %v6286_v24  ;;  %v7468_v24 = vld [vmem:[#allocation2 + $0x9c] sm:$0xff]   ;;  %v3215_v48 = vrot.slane %v3214_v42, 4  ;;  %v7551_v45 = vld [vmem:[#allocation2 + $0xa4] sm:$0x1] }
 0x216   : > { %6741 = vmatmul.mubr.bf16.gmra.mrb[16].mxu1 %v7465_v17  ;;  %6968 = vmatprep.mubr.bf16.mxu0 %v6287_v54  ;;  %v6288_v17 = vcombine.low %v5438_v37, %v5441_v55  ;;  %v3249_v54 = vshll.u32 %v2987_v41, 16  ;;  %v3270_v37 = vshrl.u32 %v2990_v43, 16  ;;  %v3273_v55 = vshll.u32 %v2990_v43, 16  ;;  %v7549_v53 = vld [vmem:[#allocation2 + $0xa0] sm:$0xf] }
 0x217   : > { %6744 = vmatprep.mubr.bf16.mxu1 %v7466_v20  ;;  %v3217_v20 = vshll.u32 %v7545_v22, 16  ;;  %v3210_v12 = vsel %vm8020_vm8, %v3205_v21, %v3209_v61  ;;  %v3297_v41 = vshll.u32 %v2993_v58, 16  ;;  %v3303_v42 = vshll.u32 %v7549_v53, 16 }
 0x218   : > { %v3251_v33 = vrot.slane %v3249_v54, 5  ;;  %v3307_v22 = vshrl.u32 %v7549_v53, 16  ;;  %v3262_v32 = vor.u32 %v3261_v6, %v9467_v1  ;;  %v3272_v54 = vrot.slane %v3270_v37, 4  ;;  %v7550_v37 = vld [vmem:[#allocation2 + $0x98] sm:$0x1] }
 0x219   : > { %v3219_v39 = vrot.slane %v3217_v20, 5  ;;  %v9720_v20 = vcombine.low %v9217_v46, %v9232_v35  ;;  %v3275_v7 = vrot.slane %v3273_v55, 5  ;;  %v9482_v46 = vrot.slane %v3303_v42, 5 }
 0x21a   : > { %v3252_v61 = vor.u32 %v3251_v33, %v3248_v4  ;;  %v3309_v35 = vrot.slane %v3307_v22, 4  ;;  %v3263_v33 = vrot.slane %v3262_v32, 4  ;;  %v3289_v55 = vshll.u32 %v7550_v37, 16  ;;  %v7554_v37 = vld [vmem:[#allocation2 + $0xb0] sm:$0x1] }
 0x21b   : > { %v3220_v51 = vsel %vm8020_vm8, %v3215_v48, %v3219_v39  ;;  %v3276_v6 = vor.u32 %v3275_v7, %v3272_v54  ;;  %v9722_v53 = vcombine.low %v9251_v9, %v9265_v15  ;;  %v7553_v7 = vld [vmem:[#allocation2 + $0xb8] sm:$0xf] }
 0x21c   : > { %v6165_v21 = vcombine.low %v3210_v12, %v3220_v51  ;;  %v3253_v4 = vrot.slane %v3252_v61, 4  ;;  %v3291_v61 = vrot.slane %v3289_v55, 5  ;;  %v3355_v9 = vshrl.u32 %v7553_v7, 16 }
 0x21d   : > { %6969 = vmatmul.mubr.bf16.gmra.mrb[4].mxu0 %v6288_v17  ;;  %v3283_v17 = vshrl.u32 %v7548_v11, 16  ;;  %v3337_v55 = vshll.u32 %v7554_v37, 16 }
 0x21e   : > { %6745 = vmatmul.mubr.bf16.gmra.mrb[20].mxu1 %v7467_v16  ;;  %6972 = vmatprep.mubr.bf16.mxu0 %v6289_v52  ;;  %v3265_v52 = vshll.u32 %v7547_v8, 16  ;;  %v3279_v16 = vshll.u32 %v7548_v11, 16  ;;  %v3313_v8 = vshll.u32 %v7551_v45, 16  ;;  %v3258_v42 = vsel %vm8020_vm8, %v3253_v4, %v9467_v1 }
 0x21f   : > { %6748 = vmatprep.mubr.bf16.mxu1 %v7468_v24  ;;  %v3294_v24 = vshrl.u32 %v2993_v58, 16  ;;  %v3285_v39 = vrot.slane %v3283_v17, 4  ;;  %v3299_v58 = vrot.slane %v3297_v41, 5  ;;  %v7552_v17 = vld [vmem:[#allocation2 + $0xac] sm:$0xf]  ;;  %v3339_v59 = vrot.slane %v3337_v55, 5 }
 0x220   : > { %v3267_v43 = vrot.slane %v3265_v52, 5  ;;  %v9480_v48 = vrot.slane %v3279_v16, 5  ;;  %v2999_v52 = vld [vmem:[#allocation2 + $0xb4] sm:$0xf]  ;;  %v3310_v16 = vor.u32 %v3309_v35, %v9482_v46  ;;  %v3331_v41 = vshrl.u32 %v7552_v17, 16 }
 0x221   : > { %v3342_v32 = vshrl.u32 %v2999_v52, 16  ;;  %v3345_v54 = vshll.u32 %v2999_v52, 16  ;;  %v7555_v52 = vld [vmem:[#allocation2 + $0xc4] sm:$0xf] }
 0x222   : > { %v3286_v34 = vor.u32 %v3285_v39, %v9480_v48  ;;  %v3268_v22 = vsel %vm8020_vm8, %v3263_v33, %v3267_v43  ;;  %v3311_v1 = vrot.slane %v3310_v16, 4  ;;  %v3333_v35 = vrot.slane %v3331_v41, 4 }
 0x223   : > { %v6167_v43 = vcombine.low %v3258_v42, %v3268_v22  ;;  %v3347_v4 = vrot.slane %v3345_v54, 5  ;;  %v3379_v16 = vshrl.u32 %v7555_v52, 16 }
 0x224   : > { %v3287_v15 = vrot.slane %v3286_v34, 4 }
 0x225   : > { %6973 = vmatmul.mubr.bf16.gmra.mrb[8].mxu0 %v9720_v20  ;;  %v3277_v20 = vrot.slane %v3276_v6, 4  ;;  %v3357_v6 = vrot.slane %v3355_v9, 4  ;;  %v7557_v9 = vld [vmem:[#allocation2 + $0xc8] sm:$0x1] }
 0x226   : > { %6749 = vmatmul.mubr.bf16.gmra.mrb[24].mxu1 %v7469_v47  ;;  %6976 = vmatprep.mubr.bf16.mxu0 %v9721_v57  ;;  %v3296_v47 = vrot.slane %v3294_v24, 4  ;;  %v3327_v24 = vshll.u32 %v7552_v17, 16  ;;  %v3351_v57 = vshll.u32 %v7553_v7, 16  ;;  %v7556_v17 = vld [vmem:[#allocation2 + $0xbc] sm:$0x1] }
 0x227   : > { %6752 = vmatprep.mubr.bf16.mxu1 %v7470_v10  ;;  %v2996_v10 = vld [vmem:[#allocation2 + $0xa8] sm:$0xf]  ;;  %v3282_v30 = vsel %vm8020_vm8, %v3277_v20, %v9480_v48  ;;  %v3366_v48 = vshrl.u32 %v3002_v31, 16 }
 0x228   : > { %v3318_v12 = vshrl.u32 %v2996_v10, 16  ;;  %v3321_v51 = vshll.u32 %v2996_v10, 16  ;;  %v3300_v11 = vor.u32 %v3299_v58, %v3296_v47  ;;  %v3329_v58 = vrot.slane %v3327_v24, 5 }
 0x229   : > { %v3344_v10 = vrot.slane %v3342_v32, 4  ;;  %v3353_v33 = vrot.slane %v3351_v57, 5  ;;  %v3361_v24 = vshll.u32 %v7556_v17, 16  ;;  %v3368_v5 = vrot.slane %v3366_v48, 4 }
 0x22a   : > { %v3323_v39 = vrot.slane %v3321_v51, 5  ;;  %v3301_v47 = vrot.slane %v3300_v11, 4  ;;  %v3369_v51 = vshll.u32 %v3002_v31, 16  ;;  %v3375_v11 = vshll.u32 %v7555_v52, 16 }
 0x22b   : > { %v3363_v7 = vrot.slane %v3361_v24, 5 }
 0x22c   : > { %v3306_v34 = vsel %vm8020_vm8, %v3301_v47, %v9482_v46  ;;  %v3358_v46 = vor.u32 %v3357_v6, %v3353_v33  ;;  %v3377_v20 = vrot.slane %v3375_v11, 5 }
 0x22d   : > { %6977 = vmatmul.mubr.bf16.gmra.mrb[12].mxu0 %v9722_v53 }
 0x22e   : > { %6753 = vmatmul.mubr.bf16.gmra.mrb[28].mxu1 %v7471_v36  ;;  %6980 = vmatprep.mubr.bf16.mxu0 %v6293_v13  ;;  %v3315_v36 = vrot.slane %v3313_v8, 5  ;;  %v3292_v13 = vsel %vm8020_vm8, %v3287_v15, %v3291_v61  ;;  %v3381_v61 = vrot.slane %v3379_v16, 4  ;;  %v3359_v54 = vrot.slane %v3358_v46, 4 }
 0x22f   : > { %6788 = vmatprep.mubr.bf16.mxu1 %v6165_v21  ;;  %v3320_v21 = vrot.slane %v3318_v12, 4  ;;  %v3334_v12 = vor.u32 %v3333_v35, %v3329_v58  ;;  %v6168_v41 = vcombine.low %v3282_v30, %v3292_v13  ;;  %v3385_v15 = vshll.u32 %v7557_v9, 16 }
 0x230   : > { %v3316_v45 = vsel %vm8020_vm8, %v3311_v1, %v3315_v36  ;;  %v3382_v57 = vor.u32 %v3381_v61, %v3377_v20 }
 0x231   : > { %v3324_v8 = vor.u32 %v3323_v39, %v3320_v21  ;;  %v6169_v53 = vcombine.low %v3306_v34, %v3316_v45  ;;  %v3335_v22 = vrot.slane %v3334_v12, 4  ;;  %v3364_v21 = vsel %vm8020_vm8, %v3359_v54, %v3363_v7 }
 0x232   : > { %v3383_v39 = vrot.slane %v3382_v57, 4  ;;  %v3387_v47 = vrot.slane %v3385_v15, 5 }
 0x233   : > { %v3325_v42 = vrot.slane %v3324_v8, 4  ;;  %v3340_v60 = vsel %vm8020_vm8, %v3335_v22, %v3339_v59 }
 0x234   : > { %v3388_v19 = vsel %vm8020_vm8, %v3383_v39, %v3387_v47 }
 0x235   : > { %6981 = vmatmul.mubr.bf16.gmra.mrb[16].mxu0 %v6294_v2  ;;  %v3371_v2 = vrot.slane %v3369_v51, 5  ;;  %v3330_v0 = vsel %vm8020_vm8, %v3325_v42, %v3329_v58 }
 0x236   : > { %6789 = vmatmul.mubr.bf16.vlgmr.msra.gmra.mrb[16].mxu1 %v9334_v50  ;;  %6984 = vmatprep.mubr.bf16.mxu0 %v6295_v23  ;;  %v3348_v50 = vor.u32 %v3347_v4, %v3344_v10  ;;  %v6170_v14 = vcombine.low %v3330_v0, %v3340_v60 }
 0x237   : > { %6792 = vmatprep.mubr.bf16.mxu1 %v6167_v43  ;;  %v3372_v23 = vor.u32 %v3371_v2, %v3368_v5 }
 0x238   : > { %v3349_v32 = vrot.slane %v3348_v50, 4 }
 0x23a   : > { %v3354_v36 = vsel %vm8020_vm8, %v3349_v32, %v3353_v33 }
 0x23b   : > { %v6171_v3 = vcombine.low %v3354_v36, %v3364_v21 }
 0x23d   : > { %6985 = vmatmul.mubr.bf16.gmra.mrb[20].mxu0 %v6296_v44  ;;  %v3373_v44 = vrot.slane %v3372_v23, 4 }
 0x23e   : > { %6793 = vmatmul.mubr.bf16.gmra.mrb[20].mxu1 %v6168_v41  ;;  %6988 = vmatprep.mubr.bf16.mxu0 %v6297_v26 }
 0x23f   : > { %6796 = vmatprep.mubr.bf16.mxu1 %v6169_v53  ;;  %v3378_v29 = vsel %vm8020_vm8, %v3373_v44, %v3377_v20 }
 0x240   : > { %v6172_v26 = vcombine.low %v3378_v29, %v3388_v19 }
 0x245   : > { %6989 = vmatmul.mubr.bf16.gmra.mrb[24].mxu0 %v6298_v40 }
 0x246   : > { %6797 = vmatmul.mubr.bf16.gmra.mrb[24].mxu1 %v6170_v14  ;;  %6992 = vmatprep.mubr.bf16.mxu0 %v6299_v25 }
 0x247   : > { %6800 = vmatprep.mubr.bf16.mxu1 %v6171_v3 }
 0x24d   : > { %6993 = vmatmul.mubr.bf16.gmra.mrb[28].mxu0 %v6300_v18 }
 0x24e   : > { %6801 = vmatmul.mubr.bf16.gmra.mrb[28].mxu1 %v6172_v26 }
 0x2c9   : > { %v6726_v1 = vpop.f32.mrb[0].mxu1 }
 0x2ca   : > { %v2798_v63 = vpop.f32.mrb[1].mxu1 }
 0x2cb   : > { %v6727_v62 = vpop.f32.mrb[2].mxu1 }
 0x2cc   : > { %v2801_v40 = vpop.f32.mrb[3].mxu1 }
 0x2d1   : > { %v6730_v58 = vpop.f32.mrb[4].mxu1 }
 0x2d2   : > { %v2814_v35 = vpop.f32.mrb[5].mxu1 }
 0x2d3   : > { %v6731_v43 = vpop.f32.mrb[6].mxu1 }
 0x2d4   : > { %v2817_v38 = vpop.f32.mrb[7].mxu1 }
 0x2d9   : > { %v6734_v10 = vpop.f32.mrb[8].mxu1 }
 0x2da   : > { %v2830_v4 = vpop.f32.mrb[9].mxu1 }
 0x2db   : > { %v6735_v33 = vpop.f32.mrb[10].mxu1 }
 0x2dc   : > { %v2833_v56 = vpop.f32.mrb[11].mxu1 }
 0x2e1   : > { %v6738_v49 = vpop.f32.mrb[12].mxu1 }
 0x2e2   : > { %v2846_v25 = vpop.f32.mrb[13].mxu1 }
 0x2e3   : > { %v6739_v6 = vpop.f32.mrb[14].mxu1 }
 0x2e4   : > { %v2849_v31 = vpop.f32.mrb[15].mxu1 }
 0x2e8   : > { %v6966_v30 = vpop.f32.mrb[0].mxu0 }
 0x2e9   : > { %v7012_v28 = vadd.f32 %v6966_v30, %v6726_v1  ;;  %v5689_v27 = vpop.f32.mrb[1].mxu0 }
 0x2ea   : > { %v7013_v18 = vadd.f32 %v5689_v27, %v2798_v63  ;;  %v6967_v13 = vpop.f32.mrb[2].mxu0 }
 0x2eb   : > { %5850 = vst [vmem:[%s9543_s21 + $0x10] sm:$0xff] %v7012_v28  ;;  %v7014_v37 = vadd.f32 %v6967_v13, %v6727_v62  ;;  %v5692_v55 = vpop.f32.mrb[3].mxu0 }
 0x2ec   : > { %5848 = vst [vmem:[%s9543_s21] sm:$0xff] %v7013_v18  ;;  %v7015_v34 = vadd.f32 %v5692_v55, %v2801_v40 }
 0x2ed   : > { %5851 = vst [vmem:[%s9543_s21 + $0x18] sm:$0xff] %v7014_v37 }
 0x2ee   : > { %5849 = vst [vmem:[%s9543_s21 + $0x8] sm:$0xff] %v7015_v34 }
 0x2f0   : > { %v6970_v45 = vpop.f32.mrb[4].mxu0 }
 0x2f1   : > { %v7016_v8 = vadd.f32 %v6970_v45, %v6730_v58  ;;  %v5705_v12 = vpop.f32.mrb[5].mxu0 }
 0x2f2   : > { %v7017_v48 = vadd.f32 %v5705_v12, %v2814_v35  ;;  %v6971_v51 = vpop.f32.mrb[6].mxu0 }
 0x2f3   : > { %5854 = vst [vmem:[%s9543_s21 + $0x30] sm:$0xff] %v7016_v8  ;;  %v7018_v52 = vadd.f32 %v6971_v51, %v6731_v43  ;;  %v5708_v11 = vpop.f32.mrb[7].mxu0 }
 0x2f4   : > { %5852 = vst [vmem:[%s9543_s21 + $0x20] sm:$0xff] %v7017_v48  ;;  %v7019_v16 = vadd.f32 %v5708_v11, %v2817_v38 }
 0x2f5   : > { %5855 = vst [vmem:[%s9543_s21 + $0x38] sm:$0xff] %v7018_v52 }
 0x2f6   : > { %5853 = vst [vmem:[%s9543_s21 + $0x28] sm:$0xff] %v7019_v16 }
 0x2f8   : > { %v6974_v50 = vpop.f32.mrb[8].mxu0 }
 0x2f9   : > { %v7020_v46 = vadd.f32 %v6974_v50, %v6734_v10  ;;  %v5721_v17 = vpop.f32.mrb[9].mxu0 }
 0x2fa   : > { %v7021_v24 = vadd.f32 %v5721_v17, %v2830_v4  ;;  %v6975_v41 = vpop.f32.mrb[10].mxu0 }
 0x2fb   : > { %5858 = vst [vmem:[%s9543_s21 + $0x50] sm:$0xff] %v7020_v46  ;;  %v7022_v53 = vadd.f32 %v6975_v41, %v6735_v33  ;;  %v5724_v42 = vpop.f32.mrb[11].mxu0 }
 0x2fc   : > { %5856 = vst [vmem:[%s9543_s21 + $0x40] sm:$0xff] %v7021_v24  ;;  %v7023_v22 = vadd.f32 %v5724_v42, %v2833_v56 }
 0x2fd   : > { %5859 = vst [vmem:[%s9543_s21 + $0x58] sm:$0xff] %v7022_v53 }
 0x2fe   : > { %5857 = vst [vmem:[%s9543_s21 + $0x48] sm:$0xff] %v7023_v22 }
 0x300   : > { %v6978_v59 = vpop.f32.mrb[12].mxu0 }
 0x301   : > { %v7024_v5 = vadd.f32 %v6978_v59, %v6738_v49  ;;  %v5737_v2 = vpop.f32.mrb[13].mxu0 }
 0x302   : > { %v7025_v20 = vadd.f32 %v5737_v2, %v2846_v25  ;;  %v6979_v61 = vpop.f32.mrb[14].mxu0 }
 0x303   : > { %5862 = vst [vmem:[%s9543_s21 + $0x70] sm:$0xff] %v7024_v5  ;;  %v7026_v32 = vadd.f32 %v6979_v61, %v6739_v6  ;;  %v5740_v54 = vpop.f32.mrb[15].mxu0 }
 0x304   : > { %5860 = vst [vmem:[%s9543_s21 + $0x60] sm:$0xff] %v7025_v20  ;;  %v7027_v7 = vadd.f32 %v5740_v54, %v2849_v31 }
 0x305   : > { %5863 = vst [vmem:[%s9543_s21 + $0x78] sm:$0xff] %v7026_v32 }
 0x306   : > { %5861 = vst [vmem:[%s9543_s21 + $0x68] sm:$0xff] %v7027_v7 }
 0x308   : > { %v6982_v23 = vpop.f32.mrb[16].mxu0 }
 0x309   : > { %v6790_v0 = vpop.f32.mrb[16].mxu1  ;;  %v5753_v15 = vpop.f32.mrb[17].mxu0 }
 0x30a   : > { %v3616_v60 = vpop.f32.mrb[17].mxu1  ;;  %v7028_v57 = vadd.f32 %v6982_v23, %v6790_v0  ;;  %v6983_v14 = vpop.f32.mrb[18].mxu0 }
 0x30b   : > { %v6791_v9 = vpop.f32.mrb[18].mxu1  ;;  %v7029_v36 = vadd.f32 %v5753_v15, %v3616_v60  ;;  %v5756_v44 = vpop.f32.mrb[19].mxu0 }
 0x30c   : > { %v3619_v21 = vpop.f32.mrb[19].mxu1  ;;  %5866 = vst [vmem:[%s9543_s21 + $0x90] sm:$0xff] %v7028_v57  ;;  %v7030_v3 = vadd.f32 %v6983_v14, %v6791_v9 }
 0x30d   : > { %5864 = vst [vmem:[%s9543_s21 + $0x80] sm:$0xff] %v7029_v36  ;;  %v7031_v39 = vadd.f32 %v5756_v44, %v3619_v21 }
 0x30e   : > { %5867 = vst [vmem:[%s9543_s21 + $0x98] sm:$0xff] %v7030_v3 }
 0x30f   : > { %5865 = vst [vmem:[%s9543_s21 + $0x88] sm:$0xff] %v7031_v39 }
 0x310   : > { %v6986_v19 = vpop.f32.mrb[20].mxu0 }
 0x311   : > { %v6794_v47 = vpop.f32.mrb[20].mxu1  ;;  %v5769_v63 = vpop.f32.mrb[21].mxu0 }
 0x312   : > { %v3632_v29 = vpop.f32.mrb[21].mxu1  ;;  %v7032_v26 = vadd.f32 %v6986_v19, %v6794_v47  ;;  %v6987_v58 = vpop.f32.mrb[22].mxu0 }
 0x313   : > { %v6795_v1 = vpop.f32.mrb[22].mxu1  ;;  %v7033_v62 = vadd.f32 %v5769_v63, %v3632_v29  ;;  %v5772_v43 = vpop.f32.mrb[23].mxu0 }
 0x314   : > { %v3635_v40 = vpop.f32.mrb[23].mxu1  ;;  %5870 = vst [vmem:[%s9543_s21 + $0xb0] sm:$0xff] %v7032_v26  ;;  %v7034_v35 = vadd.f32 %v6987_v58, %v6795_v1 }
 0x315   : > { %5868 = vst [vmem:[%s9543_s21 + $0xa0] sm:$0xff] %v7033_v62  ;;  %v7035_v38 = vadd.f32 %v5772_v43, %v3635_v40 }
 0x316   : > { %5871 = vst [vmem:[%s9543_s21 + $0xb8] sm:$0xff] %v7034_v35 }
 0x317   : > { %5869 = vst [vmem:[%s9543_s21 + $0xa8] sm:$0xff] %v7035_v38 }
 0x318   : > { %v6990_v33 = vpop.f32.mrb[24].mxu0 }
 0x319   : > { %v6798_v10 = vpop.f32.mrb[24].mxu1  ;;  %v5785_v25 = vpop.f32.mrb[25].mxu0 }
 0x31a   : > { %v3648_v4 = vpop.f32.mrb[25].mxu1  ;;  %v7036_v56 = vadd.f32 %v6990_v33, %v6798_v10  ;;  %v6991_v30 = vpop.f32.mrb[26].mxu0 }
 0x31b   : > { %v6799_v49 = vpop.f32.mrb[26].mxu1  ;;  %v7037_v6 = vadd.f32 %v5785_v25, %v3648_v4  ;;  %v5788_v27 = vpop.f32.mrb[27].mxu0 }
 0x31c   : > { %v3651_v31 = vpop.f32.mrb[27].mxu1  ;;  %5874 = vst [vmem:[%s9543_s21 + $0xd0] sm:$0xff] %v7036_v56  ;;  %v7038_v28 = vadd.f32 %v6991_v30, %v6799_v49 }
 0x31d   : > { %5872 = vst [vmem:[%s9543_s21 + $0xc0] sm:$0xff] %v7037_v6  ;;  %v7039_v18 = vadd.f32 %v5788_v27, %v3651_v31 }
 0x31e   : > { %5875 = vst [vmem:[%s9543_s21 + $0xd8] sm:$0xff] %v7038_v28 }
 0x31f   : > { %5873 = vst [vmem:[%s9543_s21 + $0xc8] sm:$0xff] %v7039_v18 }
 0x320   : > { %v6994_v55 = vpop.f32.mrb[28].mxu0 }
 0x321   : > { %v6802_v13 = vpop.f32.mrb[28].mxu1  ;;  %v5801_v8 = vpop.f32.mrb[29].mxu0 }
 0x322   : > { %v3664_v37 = vpop.f32.mrb[29].mxu1  ;;  %v7040_v34 = vadd.f32 %v6994_v55, %v6802_v13  ;;  %v6995_v51 = vpop.f32.mrb[30].mxu0 }
 0x323   : > { %v6803_v45 = vpop.f32.mrb[30].mxu1  ;;  %v7041_v12 = vadd.f32 %v5801_v8, %v3664_v37  ;;  %v5804_v11 = vpop.f32.mrb[31].mxu0 }
 0x324   : > { %v3667_v48 = vpop.f32.mrb[31].mxu1  ;;  %5878 = vst [vmem:[%s9543_s21 + $0xf0] sm:$0xff] %v7040_v34  ;;  %v7042_v52 = vadd.f32 %v6995_v51, %v6803_v45 }
 0x325   : > { %5876 = vst [vmem:[%s9543_s21 + $0xe0] sm:$0xff] %v7041_v12  ;;  %v7043_v16 = vadd.f32 %v5804_v11, %v3667_v48 }
 0x326   : > { %5879 = vst [vmem:[%s9543_s21 + $0xf8] sm:$0xff] %v7042_v52 }
 0x327   : > { %5877 = vst [vmem:[%s9543_s21 + $0xe8] sm:$0xff] %v7043_v16 }
 0x328   : > { %7685 = shalt.err (!%p7682_p13)
}
 0x329   : > { %s7686_s26 = scalar_lea.hbm %s9579_s7, 4096  ;;  %s7690_s9 = scalar_lea.hbm %s9632_s4, 8192 }
 0x32a   : > { %p7687_p0 = scmp.ne.s32.totalorder %s9579_s7, %s7686_s26  ;;  %p7691_p9 = scmp.lt.u32.totalorder %s9579_s7, %s9632_s4 }
 0x32b   : > { %p7692_p12 = scmp.lt.u32.totalorder %s7690_s9, %s7686_s26  ;;  %p7694_p1 = scmp.lt.u32.totalorder %s7686_s26, %s9579_s7 }
 0x32c   : > { %p7688_p5 = pnand %p7687_p0, %p7928_p6 }
 0x32d   : > { %p7693_p2 = por %p7692_p12, %p7691_p9 }
 0x32e   : > { %p7689_p11 = pneg %p7688_p5 }
 0x32f   : > { %p7695_p4 = por %p7694_p1, %p7693_p2 }
 0x331   : > { %p7696_p8 = pnand %p7695_p4, %p7689_p11 }
 0x333   : > { %7699 = shalt.err (!%p7696_p8)
}
 0x334   : > { %s7758_s21 = smov 128   ;;  %s7759_s23 = smov 8  }
 0x335   : > { %7282 = dma.vmem_to_hbm [thread:$0]  (%p7928_p6), %s9581_s29, 4096, %s9579_s7, %s5881_s19, %s7758_s21, %s7758_s21, %s7759_s23  }
 0x336 PF: > { %s5909_s6 = sand.u32 1, %s7734_s15   ;;  %p9723_p3 = scmp.ne.s32.totalorder %s9649_s22, 0 }
 0x337   : > { %p9724_p7 = scmp.ge.s32.totalorder %s7746_s18, 2  ;;  %s5910_s27 = scalar_lea.sflag [#allocation5], %s5909_s6 }
 0x339   : > { %p7299_p10 = pnand %p9724_p7, %p9723_p3 }
 0x33b   : > { %7729 = dma.done.wait (!%p7299_p10), %s5910_s27, 4096  }
 0x33c   : > { %7731 = vsyncadd (!%p7299_p10), %s5910_s27, 4294963200  ;;  %p19_p13 = scmp.ge.s32.totalorder %s7914_s25, 4   ;;  %s9725_s15 = smov %s7738_s16 }
 0x33d   : > { %s9726_s16 = smov %s7742_s17  ;;  %s9727_s17 = smov %s7924_s13 }
 0x33e   : > { %s9728_s18 = smov %s7914_s25  ;;  %21 = sbr.rel (!%p19_p13) target bundleno = 7 (0x7), region = 104 }
 0x345   :  { %5915 = vsyncpa [#allocation4], 1 }
 0x346   :  { %5917 = vsyncpa [#allocation4 + $0x1], 1 }
 0x347   :  { %5918 = vsyncpa [#allocation7], 1 }
 0x348   :  { %5919 = vsyncpa [#allocation10], 1 }
 0x349   :  { %5920 = vsyncpa [#allocation5], 1 }
 0x34a   :  { %5922 = vsyncpa [#allocation5 + $0x1], 1 }

</bundles_post_ra>
